<compile_context>
chip_gen: v7x
topology: tpu7x:2x2x1
jax: 0.10.0
libtpu: 0.0.40
codegen_flags: <defaults>
</compile_context>

<pallas_src>
import functools

import jax
import jax.numpy as jnp
from jax.experimental import pallas as pl
from jax.experimental.pallas import tpu as pltpu


FEAT_DIM = 1280            # EfficientNetV2-S classifier in_features
STEM_CH = 24               # stem conv output channels (EfficientNetV2-S)
NUM_REGIONS = 15
K_IM2COL = 3 * 3 * 3       # Cin * kh * kw = 27
K_PAD = 32                 # im2col contraction padded to a sublane multiple


def _device_tunables():
    """Per-TPU-generation choices: SiLU dtype and stem-channel padding."""
    try:
        kind = jax.devices()[0].device_kind.lower()
    except Exception:
        kind = ""
    old_gen = any(t in kind for t in ("v2", "v3", "v4", "v5"))
    # v6e/v7x have bf16 VPU/EUP -> halve the dominant (ts,1280) elementwise work.
    silu_dtype = jnp.float32 if old_gen else jnp.bfloat16
    # v5e is MXU-tighter: pad stem channels only to 32 (24 real) instead of 128.
    sc_pad = 32 if old_gen else 128
    return silu_dtype, sc_pad


# ---------------------------------------------------------------------------
# Fused kernel: stem conv (K-major im2col matmul) + SiLU -> 1x1 conv + SiLU ->
#               GAP accumulate -> (last tile) mask + FiLM + 2-layer MLP head
# ---------------------------------------------------------------------------
def _backbone_film_mlp_kernel(r_ref, patches_ref, stem_w_ref, stem_b_ref,
                              head_w_ref, head_b_ref, rs_ref, rb_ref,
                              w1_ref, b1_ref, w2_ref, b2_ref,
                              o_ref, acc_ref, *, inv_s, s_valid, silu_dtype):
    s = pl.program_id(1)
    last = pl.num_programs(1) - 1

    @pl.when(s == 0)
    def _():
        acc_ref[...] = jnp.zeros_like(acc_ref)

    patches = patches_ref[0]                          # (K_PAD, ts) bf16, lane-dense
    ts = patches.shape[1]

    # stem 3x3/s2 conv as matmul; patches are K-major so contract dim 0 of both
    # operands (bf16 MXU, f32 accumulation).
    stem = jax.lax.dot_general(
        patches, stem_w_ref[...],
        dimension_numbers=(((0,), (0,)), ((), ())),
        preferred_element_type=jnp.float32)           # (ts, SC_PAD) f32
    stem = stem + stem_b_ref[...]
    stem = stem * jax.nn.sigmoid(stem)                # SiLU (small, f32)

    # 1x1 conv to 1280 features; wide SiLU in silu_dtype (bf16 on v6e/v7x)
    feat = jnp.dot(stem.astype(jnp.bfloat16), head_w_ref[...],
                   preferred_element_type=jnp.float32)          # (ts, 1280) f32
    feat = (feat + head_b_ref[...]).astype(silu_dtype)
    feat = feat * jax.nn.sigmoid(feat)                # SiLU

    def accumulate(f):
        # per-sublane partial sums: pure VPU vreg adds; XLU collapse deferred to finalize
        part = jnp.sum(f.astype(jnp.float32).reshape(ts // 8, 8, FEAT_DIM), axis=0)
        acc_ref[...] += part                          # (8, 1280) f32

    @pl.when(s != last)
    def _():
        accumulate(feat)                              # steady state: no mask

    @pl.when(s == last)
    def _():
        # only the last spatial tile can contain padded rows -> mask here only
        row = s * ts + jax.lax.broadcasted_iota(jnp.int32, (ts, 1), 0)
        accumulate(jnp.where(row < s_valid, feat, jnp.zeros((), silu_dtype)))

        # global-average-pool finalize (single cross-sublane reduce)
        pooled = jnp.sum(acc_ref[...], axis=0, keepdims=True) * inv_s   # (1, 1280)
        # region FiLM (embeddings gathered via scalar-prefetch index_map)
        z = pooled * rs_ref[0] + rb_ref[0]
        # fc head: Linear -> ReLU -> (Dropout = identity, eval) -> Linear
        h = jnp.dot(z.astype(jnp.bfloat16), w1_ref[...],
                    preferred_element_type=jnp.float32) + b1_ref[...]
        h = jnp.maximum(h, 0.0)
        o = jnp.dot(h.astype(jnp.bfloat16), w2_ref[...],
                    preferred_element_type=jnp.float32) + b2_ref[...]
        o_ref[0] = o.astype(o_ref.dtype)


def fused_forward(pp, patches, r, s_valid, *, ts):
    """patches: (B, K_PAD, S_pad) bf16; r: (B,) int32; returns (B, out_dim) f32."""
    B, K_P, S_pad = patches.shape
    n_s = S_pad // ts
    SCP = pp["stem_w"].shape[1]
    HID = pp["fc1_w"].shape[1]
    O = pp["fc2_w"].shape[1]
    silu_dtype, _ = _device_tunables()

    out = pl.pallas_call(
        functools.partial(_backbone_film_mlp_kernel, inv_s=1.0 / s_valid,
                          s_valid=s_valid, silu_dtype=silu_dtype),
        out_shape=jax.ShapeDtypeStruct((B, 1, O), jnp.float32),
        grid_spec=pltpu.PrefetchScalarGridSpec(
            num_scalar_prefetch=1,
            grid=(B, n_s),
            in_specs=[
                pl.BlockSpec((1, K_P, ts), lambda b, s, r: (b, 0, s)),        # patches
                pl.BlockSpec((K_P, SCP), lambda b, s, r: (0, 0)),             # stem_w
                pl.BlockSpec((1, SCP), lambda b, s, r: (0, 0)),               # stem_b
                pl.BlockSpec((SCP, FEAT_DIM), lambda b, s, r: (0, 0)),        # head_w
                pl.BlockSpec((1, FEAT_DIM), lambda b, s, r: (0, 0)),          # head_b
                pl.BlockSpec((1, 1, FEAT_DIM), lambda b, s, r: (r[b], 0, 0)), # region_scale
                pl.BlockSpec((1, 1, FEAT_DIM), lambda b, s, r: (r[b], 0, 0)), # region_bias
                pl.BlockSpec((FEAT_DIM, HID), lambda b, s, r: (0, 0)),        # fc1_w (bf16)
                pl.BlockSpec((1, HID), lambda b, s, r: (0, 0)),               # fc1_b
                pl.BlockSpec((HID, O), lambda b, s, r: (0, 0)),               # fc2_w (bf16)
                pl.BlockSpec((1, O), lambda b, s, r: (0, 0)),                 # fc2_b
            ],
            out_specs=pl.BlockSpec((1, 1, O), lambda b, s, r: (b, 0, 0)),
            scratch_shapes=[pltpu.VMEM((8, FEAT_DIM), jnp.float32)],
        ),
        compiler_params=pltpu.CompilerParams(
            dimension_semantics=("parallel", "arbitrary"),
            vmem_limit_bytes=48 * 1024 * 1024,
        ),
    )(r, patches,
      pp["stem_w"], pp["stem_b"], pp["head_w"], pp["head_b"],
      pp["region_scale"], pp["region_bias"],
      pp["fc1_w"], pp["fc1_b"], pp["fc2_w"], pp["fc2_b"])
    return out.reshape(B, O)


# ---------------------------------------------------------------------------
# Glue: K-major im2col patch extraction (matches PyTorch (Cin,kh,kw) flatten order)
# ---------------------------------------------------------------------------
def im2col_s2_kmajor(x_nchw, kh=3, kw=3, stride=2, pad=1):
    B, C, H, W = x_nchw.shape
    xp = jnp.pad(x_nchw, ((0, 0), (0, 0), (pad, pad), (pad, pad)))
    Ho = (H + 2 * pad - kh) // stride + 1
    Wo = (W + 2 * pad - kw) // stride + 1
    taps = [xp[:, :, i:i + stride * Ho:stride, j:j + stride * Wo:stride]
            for i in range(kh) for j in range(kw)]
    p = jnp.stack(taps, axis=2)                       # (B, C, 9, Ho, Wo)
    p = p.reshape(B, C * kh * kw, Ho * Wo)            # K index = c*9 + (i*3+j)
    return p, Ho, Wo


# ---------------------------------------------------------------------------
# Parameters
# ---------------------------------------------------------------------------
def init_params(key, hidden_dim, out_dim):
    ks = jax.random.split(key, 8)

    def nrm(k, shape, scale=0.05):
        return (scale * jax.random.normal(k, shape)).astype(jnp.float32)

    return {
        # stem conv, PyTorch layout (Cout,Cin,kh,kw) pre-flattened to (Cin*kh*kw, Cout)
        "stem_w": nrm(ks[0], (K_IM2COL, STEM_CH)),
        "stem_b": nrm(ks[1], (STEM_CH,)),
        # backbone head 1x1 conv to 1280
        "head_w": nrm(ks[2], (STEM_CH, FEAT_DIM)),
        "head_b": nrm(ks[3], (FEAT_DIM,)),
        # region embeddings
        "region_scale": nrm(ks[4], (NUM_REGIONS, FEAT_DIM), scale=1.0),
        "region_bias": nrm(ks[5], (NUM_REGIONS, FEAT_DIM), scale=1.0),
        # fc head
        "fc1_w": nrm(ks[6], (FEAT_DIM, hidden_dim)),
        "fc1_b": jnp.zeros((hidden_dim,), jnp.float32),
        "fc2_w": nrm(ks[7], (hidden_dim, out_dim)),
        "fc2_b": jnp.zeros((out_dim,), jnp.float32),
    }


def prepare_params(p):
    """One-time host packing: pad K to 32 / stem channels to SC_PAD, bf16 MXU weights."""
    _, sc_pad = _device_tunables()
    stem_w = jnp.zeros((K_PAD, sc_pad), jnp.bfloat16)
    stem_w = stem_w.at[:K_IM2COL, :STEM_CH].set(p["stem_w"].astype(jnp.bfloat16))
    stem_b = jnp.zeros((1, sc_pad), jnp.float32)
    stem_b = stem_b.at[:, :STEM_CH].set(p["stem_b"][None, :])
    head_w = jnp.zeros((sc_pad, FEAT_DIM), jnp.bfloat16)
    head_w = head_w.at[:STEM_CH, :].set(p["head_w"].astype(jnp.bfloat16))
    return {
        "stem_w": stem_w,
        "stem_b": stem_b,
        "head_w": head_w,
        "head_b": p["head_b"].reshape(1, FEAT_DIM),
        "region_scale": p["region_scale"].reshape(NUM_REGIONS, 1, FEAT_DIM),
        "region_bias": p["region_bias"].reshape(NUM_REGIONS, 1, FEAT_DIM),
        "fc1_w": p["fc1_w"].astype(jnp.bfloat16),
        "fc1_b": p["fc1_b"].reshape(1, -1),
        "fc2_w": p["fc2_w"].astype(jnp.bfloat16),
        "fc2_b": p["fc2_b"].reshape(1, -1),
    }


# ---------------------------------------------------------------------------
# Forward
# ---------------------------------------------------------------------------
@functools.partial(jax.jit, static_argnames=("ts",))
def latlong_predictor_forward(prepped, x, r, *, ts=1024):
    """x: (B, 3, H, W) float32 NCHW, r: (B,) int32 region ids -> (B, out_dim)."""
    patches, Ho, Wo = im2col_s2_kmajor(x)             # (B, 27, S) f32, K-major
    S = Ho * Wo

    # spatial tile: multiple of 128 (patches' lane axis), capped by padded S
    s128 = ((S + 127) // 128) * 128
    ts_eff = max(128, min((ts // 128) * 128, s128))
    S_pad = ((S + ts_eff - 1) // ts_eff) * ts_eff

    patches = jnp.pad(patches, ((0, 0), (0, K_PAD - K_IM2COL), (0, S_pad - S)))
    patches = patches.astype(jnp.bfloat16)

    # (dropout in backbone.classifier and in the fc head are identity at eval time)
    return fused_forward(prepped, patches, r, S, ts=ts_eff)


if __name__ == "__main__":
    key = jax.random.PRNGKey(0)
    k_param, k_x, k_r = jax.random.split(key, 3)

    # 30x30 input -> 15x15 = 225 output positions: 2 spatial tiles at ts=128, with a
    # ragged (masked) last tile, exercising accumulate + mask + finalize paths.
    B, H, W = 2, 30, 30
    hidden_dim, out_dim = 128, 2

    params = init_params(k_param, hidden_dim, out_dim)
    prepped = prepare_params(params)
    x = jax.random.normal(k_x, (B, 3, H, W), dtype=jnp.float32)
    r = jax.random.randint(k_r, (B,), 0, NUM_REGIONS, dtype=jnp.int32)

    out = latlong_predictor_forward(prepped, x, r, ts=128)
    out = jax.block_until_ready(out)
    assert out.shape == (B, out_dim), out.shape
    print("KERNEL_OK")
</pallas_src>

<mosaic_0001>
module attributes {stable_mosaic.version = 11 : i64} {
  func.func @_backbone_film_mlp_kernel(%arg0: i32, %arg1: i32, %arg2: memref<2xi32, #tpu.memory_space<smem>>, %arg3: memref<1x32x128xbf16, #tpu.memory_space<vmem>>, %arg4: memref<32x128xbf16, #tpu.memory_space<vmem>>, %arg5: memref<1x128xf32, #tpu.memory_space<vmem>>, %arg6: memref<128x1280xbf16, #tpu.memory_space<vmem>>, %arg7: memref<1x1280xf32, #tpu.memory_space<vmem>>, %arg8: memref<1x1x1280xf32, #tpu.memory_space<vmem>>, %arg9: memref<1x1x1280xf32, #tpu.memory_space<vmem>>, %arg10: memref<1280x128xbf16, #tpu.memory_space<vmem>>, %arg11: memref<1x128xf32, #tpu.memory_space<vmem>>, %arg12: memref<128x2xbf16, #tpu.memory_space<vmem>>, %arg13: memref<1x2xf32, #tpu.memory_space<vmem>>, %arg14: memref<1x1x2xf32, #tpu.memory_space<vmem>>, %arg15: memref<8x1280xf32, #tpu.memory_space<vmem>>) attributes {dimension_semantics = [#tpu.dimension_semantics<parallel>, #tpu.dimension_semantics<arbitrary>], iteration_bounds = array<i64: 2, 2>, scalar_prefetch = 1 : i64, scratch_operands = 1 : i64, tpu.core_type = #tpu.core_type<tc>, window_params = [{transform_indices = @transform_0, window_bounds = array<i64: 1, 32, 128>}, {pipeline_mode = #tpu.pipeline_mode<synchronous>, transform_indices = @transform_1, window_bounds = array<i64: 32, 128>}, {pipeline_mode = #tpu.pipeline_mode<synchronous>, transform_indices = @transform_2, window_bounds = array<i64: 1, 128>}, {pipeline_mode = #tpu.pipeline_mode<synchronous>, transform_indices = @transform_3, window_bounds = array<i64: 128, 1280>}, {pipeline_mode = #tpu.pipeline_mode<synchronous>, transform_indices = @transform_4, window_bounds = array<i64: 1, 1280>}, {transform_indices = @transform_5, window_bounds = array<i64: 1, 1, 1280>}, {transform_indices = @transform_6, window_bounds = array<i64: 1, 1, 1280>}, {pipeline_mode = #tpu.pipeline_mode<synchronous>, transform_indices = @transform_7, window_bounds = array<i64: 1280, 128>}, {pipeline_mode = #tpu.pipeline_mode<synchronous>, transform_indices = @transform_8, window_bounds = array<i64: 1, 128>}, {pipeline_mode = #tpu.pipeline_mode<synchronous>, transform_indices = @transform_9, window_bounds = array<i64: 128, 2>}, {pipeline_mode = #tpu.pipeline_mode<synchronous>, transform_indices = @transform_10, window_bounds = array<i64: 1, 2>}, {transform_indices = @transform_11, window_bounds = array<i64: 1, 1, 2>}]} {
    %c0_i32 = arith.constant 0 : i32
    %0 = arith.cmpi eq, %arg1, %c0_i32 : i32
    %1 = arith.extui %0 : i1 to i32
    %c0_i32_0 = arith.constant 0 : i32
    %2 = arith.cmpi ne, %1, %c0_i32_0 : i32
    scf.if %2 {
      %cst_17 = arith.constant 0.000000e+00 : f32
      %35 = vector.broadcast %cst_17 : f32 to vector<8x1280xf32>
      %c0_18 = arith.constant 0 : index
      %c0_19 = arith.constant 0 : index
      %36 = vector.load %arg15[%c0_18, %c0_19] : memref<8x1280xf32, #tpu.memory_space<vmem>>, vector<8x1280xf32>
      tpu.vector_store %arg15[%c0_18, %c0_19], %35 {strides = array<i32>} : memref<8x1280xf32, #tpu.memory_space<vmem>>, vector<8x1280xf32>,
    } else {
    }
    %c0 = arith.constant 0 : index
    %c0_1 = arith.constant 0 : index
    %c0_2 = arith.constant 0 : index
    %3 = vector.load %arg3[%c0, %c0_1, %c0_2] : memref<1x32x128xbf16, #tpu.memory_space<vmem>>, vector<1x32x128xbf16>
    %4 = vector.shape_cast %3 : vector<1x32x128xbf16> to vector<32x128xbf16>
    %c0_3 = arith.constant 0 : index
    %c0_4 = arith.constant 0 : index
    %5 = vector.load %arg4[%c0_3, %c0_4] : memref<32x128xbf16, #tpu.memory_space<vmem>>, vector<32x128xbf16>
    %cst = arith.constant dense<0.000000e+00> : vector<128x128xf32>
    %6 = tpu.matmul %4, %5, %cst {dimension_numbers = #tpu.dot_dimension_numbers<[0], [0], [1], [1], [0, 1, 1, 1], [], []>} : vector<32x128xbf16>, vector<32x128xbf16>, vector<128x128xf32> -> vector<128x128xf32>
    %c0_5 = arith.constant 0 : index
    %c0_6 = arith.constant 0 : index
    %7 = vector.load %arg5[%c0_5, %c0_6] : memref<1x128xf32, #tpu.memory_space<vmem>>, vector<1x128xf32>
    %8 = vector.broadcast %7 : vector<1x128xf32> to vector<128x128xf32>
    %9 = arith.addf %6, %8 : vector<128x128xf32>
    %10 = arith.negf %9 : vector<128x128xf32>
    %11 = math.exp %10 : vector<128x128xf32>
    %cst_7 = arith.constant 1.000000e+00 : f32
    %12 = vector.broadcast %cst_7 : f32 to vector<128x128xf32>
    %13 = arith.addf %12, %11 : vector<128x128xf32>
    %14 = arith.divf %12, %13 : vector<128x128xf32>
    %15 = arith.mulf %9, %14 : vector<128x128xf32>
    %16 = arith.truncf %15 : vector<128x128xf32> to vector<128x128xbf16>
    %c0_8 = arith.constant 0 : index
    %c0_9 = arith.constant 0 : index
    %17 = vector.load %arg6[%c0_8, %c0_9] : memref<128x1280xbf16, #tpu.memory_space<vmem>>, vector<128x1280xbf16>
    %cst_10 = arith.constant dense<0.000000e+00> : vector<128x1280xf32>
    %18 = tpu.matmul %16, %17, %cst_10 {dimension_numbers = #tpu.dot_dimension_numbers<[1], [0], [0], [1], [0, 0, 1, 1], [], []>} : vector<128x128xbf16>, vector<128x1280xbf16>, vector<128x1280xf32> -> vector<128x1280xf32>
    %c0_11 = arith.constant 0 : index
    %c0_12 = arith.constant 0 : index
    %19 = vector.load %arg7[%c0_11, %c0_12] : memref<1x1280xf32, #tpu.memory_space<vmem>>, vector<1x1280xf32>
    %20 = vector.broadcast %19 : vector<1x1280xf32> to vector<128x1280xf32>
    %21 = arith.addf %18, %20 : vector<128x1280xf32>
    %22 = arith.truncf %21 : vector<128x1280xf32> to vector<128x1280xbf16>
    %23 = arith.negf %22 : vector<128x1280xbf16>
    %24 = math.exp %23 : vector<128x1280xbf16>
    %cst_13 = arith.constant 1.000000e+00 : bf16
    %25 = vector.broadcast %cst_13 : bf16 to vector<128x1280xbf16>
    %26 = arith.addf %25, %24 : vector<128x1280xbf16>
    %27 = arith.divf %25, %26 : vector<128x1280xbf16>
    %28 = arith.mulf %22, %27 : vector<128x1280xbf16>
    %c1_i32 = arith.constant 1 : i32
    %29 = arith.cmpi ne, %arg1, %c1_i32 : i32
    %30 = arith.extui %29 : i1 to i32
    %c0_i32_14 = arith.constant 0 : i32
    %31 = arith.cmpi ne, %30, %c0_i32_14 : i32
    scf.if %31 {
      %35 = arith.extf %28 : vector<128x1280xbf16> to vector<128x1280xf32>
      %36 = vector.shape_cast %35 : vector<128x1280xf32> to vector<16x8x1280xf32>
      %cst_17 = arith.constant dense<0.000000e+00> : vector<8x1280xf32>
      %37 = vector.multi_reduction <add>, %36, %cst_17 [0] : vector<16x8x1280xf32> to vector<8x1280xf32>
      %c0_18 = arith.constant 0 : index
      %c0_19 = arith.constant 0 : index
      %38 = vector.load %arg15[%c0_18, %c0_19] : memref<8x1280xf32, #tpu.memory_space<vmem>>, vector<8x1280xf32>
      %39 = arith.addf %38, %37 : vector<8x1280xf32>
      %c0_20 = arith.constant 0 : index
      %c0_21 = arith.constant 0 : index
      %40 = vector.load %arg15[%c0_20, %c0_21] : memref<8x1280xf32, #tpu.memory_space<vmem>>, vector<8x1280xf32>
      tpu.vector_store %arg15[%c0_20, %c0_21], %39 {strides = array<i32>} : memref<8x1280xf32, #tpu.memory_space<vmem>>, vector<8x1280xf32>,
    } else {
    }
    %c1_i32_15 = arith.constant 1 : i32
    %32 = arith.cmpi eq, %arg1, %c1_i32_15 : i32
    %33 = arith.extui %32 : i1 to i32
    %c0_i32_16 = arith.constant 0 : i32
    %34 = arith.cmpi ne, %33, %c0_i32_16 : i32
    scf.if %34 {
      %c128_i32 = arith.constant 128 : i32
      %35 = arith.muli %arg1, %c128_i32 : i32
      %36 = tpu.iota {dimensions = array<i32: 0>} : vector<128x1xi32>
      %37 = vector.broadcast %35 : i32 to vector<128x1xi32>
      %38 = arith.addi %37, %36 : vector<128x1xi32>
      %c225_i32 = arith.constant 225 : i32
      %39 = vector.broadcast %c225_i32 : i32 to vector<128x1xi32>
      %40 = arith.cmpi slt, %38, %39 : vector<128x1xi32>
      %cst_17 = arith.constant 0.000000e+00 : bf16
      %41 = vector.shape_cast %40 : vector<128x1xi1> to vector<128x1xi1>
      %42 = vector.broadcast %41 : vector<128x1xi1> to vector<128x1280xi1>
      %43 = vector.broadcast %cst_17 : bf16 to vector<128x1280xbf16>
      %44 = arith.select %42, %28, %43 : vector<128x1280xi1>, vector<128x1280xbf16>
      %45 = arith.extf %44 : vector<128x1280xbf16> to vector<128x1280xf32>
      %46 = vector.shape_cast %45 : vector<128x1280xf32> to vector<16x8x1280xf32>
      %cst_18 = arith.constant dense<0.000000e+00> : vector<8x1280xf32>
      %47 = vector.multi_reduction <add>, %46, %cst_18 [0] : vector<16x8x1280xf32> to vector<8x1280xf32>
      %c0_19 = arith.constant 0 : index
      %c0_20 = arith.constant 0 : index
      %48 = vector.load %arg15[%c0_19, %c0_20] : memref<8x1280xf32, #tpu.memory_space<vmem>>, vector<8x1280xf32>
      %49 = arith.addf %48, %47 : vector<8x1280xf32>
      %c0_21 = arith.constant 0 : index
      %c0_22 = arith.constant 0 : index
      %50 = vector.load %arg15[%c0_21, %c0_22] : memref<8x1280xf32, #tpu.memory_space<vmem>>, vector<8x1280xf32>
      tpu.vector_store %arg15[%c0_21, %c0_22], %49 {strides = array<i32>} : memref<8x1280xf32, #tpu.memory_space<vmem>>, vector<8x1280xf32>,
      %c0_23 = arith.constant 0 : index
      %c0_24 = arith.constant 0 : index
      %51 = vector.load %arg15[%c0_23, %c0_24] : memref<8x1280xf32, #tpu.memory_space<vmem>>, vector<8x1280xf32>
      %cst_25 = arith.constant dense<0.000000e+00> : vector<1280xf32>
      %52 = vector.multi_reduction <add>, %51, %cst_25 [0] : vector<8x1280xf32> to vector<1280xf32>
      %53 = vector.shape_cast %52 : vector<1280xf32> to vector<1x1280xf32>
      %cst_26 = arith.constant 0.00444444455 : f32
      %54 = vector.broadcast %cst_26 : f32 to vector<1x1280xf32>
      %55 = arith.mulf %53, %54 : vector<1x1280xf32>
      %c0_27 = arith.constant 0 : index
      %c0_28 = arith.constant 0 : index
      %c0_29 = arith.constant 0 : index
      %56 = vector.load %arg8[%c0_27, %c0_28, %c0_29] : memref<1x1x1280xf32, #tpu.memory_space<vmem>>, vector<1x1x1280xf32>
      %57 = vector.shape_cast %56 : vector<1x1x1280xf32> to vector<1x1280xf32>
      %58 = arith.mulf %55, %57 : vector<1x1280xf32>
      %c0_30 = arith.constant 0 : index
      %c0_31 = arith.constant 0 : index
      %c0_32 = arith.constant 0 : index
      %59 = vector.load %arg9[%c0_30, %c0_31, %c0_32] : memref<1x1x1280xf32, #tpu.memory_space<vmem>>, vector<1x1x1280xf32>
      %60 = vector.shape_cast %59 : vector<1x1x1280xf32> to vector<1x1280xf32>
      %61 = arith.addf %58, %60 : vector<1x1280xf32>
      %62 = arith.truncf %61 : vector<1x1280xf32> to vector<1x1280xbf16>
      %c0_33 = arith.constant 0 : index
      %c0_34 = arith.constant 0 : index
      %63 = vector.load %arg10[%c0_33, %c0_34] : memref<1280x128xbf16, #tpu.memory_space<vmem>>, vector<1280x128xbf16>
      %cst_35 = arith.constant dense<0.000000e+00> : vector<1x128xf32>
      %64 = tpu.matmul %62, %63, %cst_35 {dimension_numbers = #tpu.dot_dimension_numbers<[1], [0], [0], [1], [0, 0, 1, 1], [], []>} : vector<1x1280xbf16>, vector<1280x128xbf16>, vector<1x128xf32> -> vector<1x128xf32>
      %c0_36 = arith.constant 0 : index
      %c0_37 = arith.constant 0 : index
      %65 = vector.load %arg11[%c0_36, %c0_37] : memref<1x128xf32, #tpu.memory_space<vmem>>, vector<1x128xf32>
      %66 = arith.addf %64, %65 : vector<1x128xf32>
      %cst_38 = arith.constant 0.000000e+00 : f32
      %67 = vector.broadcast %cst_38 : f32 to vector<1x128xf32>
      %68 = arith.maximumf %66, %67 : vector<1x128xf32>
      %69 = arith.truncf %68 : vector<1x128xf32> to vector<1x128xbf16>
      %c0_39 = arith.constant 0 : index
      %c0_40 = arith.constant 0 : index
      %70 = vector.load %arg12[%c0_39, %c0_40] : memref<128x2xbf16, #tpu.memory_space<vmem>>, vector<128x2xbf16>
      %cst_41 = arith.constant dense<0.000000e+00> : vector<1x2xf32>
      %71 = tpu.matmul %69, %70, %cst_41 {dimension_numbers = #tpu.dot_dimension_numbers<[1], [0], [0], [1], [0, 0, 1, 1], [], []>} : vector<1x128xbf16>, vector<128x2xbf16>, vector<1x2xf32> -> vector<1x2xf32>
      %c0_42 = arith.constant 0 : index
      %c0_43 = arith.constant 0 : index
      %72 = vector.load %arg13[%c0_42, %c0_43] : memref<1x2xf32, #tpu.memory_space<vmem>>, vector<1x2xf32>
      %73 = arith.addf %71, %72 : vector<1x2xf32>
      %c0_44 = arith.constant 0 : index
      %c0_45 = arith.constant 0 : index
      %c0_46 = arith.constant 0 : index
      %74 = vector.load %arg14[%c0_44, %c0_45, %c0_46] : memref<1x1x2xf32, #tpu.memory_space<vmem>>, vector<1x1x2xf32>
      %75 = vector.shape_cast %74 : vector<1x1x2xf32> to vector<1x2xf32>
      %76 = vector.shape_cast %73 : vector<1x2xf32> to vector<1x1x2xf32>
      tpu.vector_store %arg14[%c0_44, %c0_45, %c0_46], %76 {strides = array<i32>} : memref<1x1x2xf32, #tpu.memory_space<vmem>>, vector<1x1x2xf32>,
    } else {
    }
    return
  }
  func.func @transform_0(%arg0: i32, %arg1: i32, %arg2: memref<2xi32, #tpu.memory_space<smem>>) -> (i32, i32, i32) {
    %c0_i32 = arith.constant 0 : i32
    %c0_i32_0 = arith.constant 0 : i32
    return %arg0, %c0_i32, %arg1 : i32, i32, i32
  }
  func.func @transform_1(%arg0: i32, %arg1: i32, %arg2: memref<2xi32, #tpu.memory_space<smem>>) -> (i32, i32) {
    %c0_i32 = arith.constant 0 : i32
    %c0_i32_0 = arith.constant 0 : i32
    %c0_i32_1 = arith.constant 0 : i32
    return %c0_i32, %c0_i32_0 : i32, i32
  }
  func.func @transform_2(%arg0: i32, %arg1: i32, %arg2: memref<2xi32, #tpu.memory_space<smem>>) -> (i32, i32) {
    %c0_i32 = arith.constant 0 : i32
    %c0_i32_0 = arith.constant 0 : i32
    %c0_i32_1 = arith.constant 0 : i32
    return %c0_i32, %c0_i32_0 : i32, i32
  }
  func.func @transform_3(%arg0: i32, %arg1: i32, %arg2: memref<2xi32, #tpu.memory_space<smem>>) -> (i32, i32) {
    %c0_i32 = arith.constant 0 : i32
    %c0_i32_0 = arith.constant 0 : i32
    %c0_i32_1 = arith.constant 0 : i32
    return %c0_i32, %c0_i32_0 : i32, i32
  }
  func.func @transform_4(%arg0: i32, %arg1: i32, %arg2: memref<2xi32, #tpu.memory_space<smem>>) -> (i32, i32) {
    %c0_i32 = arith.constant 0 : i32
    %c0_i32_0 = arith.constant 0 : i32
    %c0_i32_1 = arith.constant 0 : i32
    return %c0_i32, %c0_i32_0 : i32, i32
  }
  func.func @transform_5(%arg0: i32, %arg1: i32, %arg2: memref<2xi32, #tpu.memory_space<smem>>) -> (i32, i32, i32) {
    %0 = arith.index_cast %arg0 : i32 to index
    %1 = memref.load %arg2[%0] : memref<2xi32, #tpu.memory_space<smem>>
    %c0_i32 = arith.constant 0 : i32
    %c0_i32_0 = arith.constant 0 : i32
    %c0_i32_1 = arith.constant 0 : i32
    return %1, %c0_i32, %c0_i32_0 : i32, i32, i32
  }
  func.func @transform_6(%arg0: i32, %arg1: i32, %arg2: memref<2xi32, #tpu.memory_space<smem>>) -> (i32, i32, i32) {
    %0 = arith.index_cast %arg0 : i32 to index
    %1 = memref.load %arg2[%0] : memref<2xi32, #tpu.memory_space<smem>>
    %c0_i32 = arith.constant 0 : i32
    %c0_i32_0 = arith.constant 0 : i32
    %c0_i32_1 = arith.constant 0 : i32
    return %1, %c0_i32, %c0_i32_0 : i32, i32, i32
  }
  func.func @transform_7(%arg0: i32, %arg1: i32, %arg2: memref<2xi32, #tpu.memory_space<smem>>) -> (i32, i32) {
    %c0_i32 = arith.constant 0 : i32
    %c0_i32_0 = arith.constant 0 : i32
    %c0_i32_1 = arith.constant 0 : i32
    return %c0_i32, %c0_i32_0 : i32, i32
  }
  func.func @transform_8(%arg0: i32, %arg1: i32, %arg2: memref<2xi32, #tpu.memory_space<smem>>) -> (i32, i32) {
    %c0_i32 = arith.constant 0 : i32
    %c0_i32_0 = arith.constant 0 : i32
    %c0_i32_1 = arith.constant 0 : i32
    return %c0_i32, %c0_i32_0 : i32, i32
  }
  func.func @transform_9(%arg0: i32, %arg1: i32, %arg2: memref<2xi32, #tpu.memory_space<smem>>) -> (i32, i32) {
    %c0_i32 = arith.constant 0 : i32
    %c0_i32_0 = arith.constant 0 : i32
    %c0_i32_1 = arith.constant 0 : i32
    return %c0_i32, %c0_i32_0 : i32, i32
  }
  func.func @transform_10(%arg0: i32, %arg1: i32, %arg2: memref<2xi32, #tpu.memory_space<smem>>) -> (i32, i32) {
    %c0_i32 = arith.constant 0 : i32
    %c0_i32_0 = arith.constant 0 : i32
    %c0_i32_1 = arith.constant 0 : i32
    return %c0_i32, %c0_i32_0 : i32, i32
  }
  func.func @transform_11(%arg0: i32, %arg1: i32, %arg2: memref<2xi32, #tpu.memory_space<smem>>) -> (i32, i32, i32) {
    %c0_i32 = arith.constant 0 : i32
    %c0_i32_0 = arith.constant 0 : i32
    %c0_i32_1 = arith.constant 0 : i32
    return %arg0, %c0_i32, %c0_i32_0 : i32, i32, i32
  }
}

</mosaic_0001>

<bundles_post_ra>
// kernel: latlong_predictor_forward.1
= control target key start
LH: loop header
LB: loop body
LE: loop exit
PB: predicated region body
PF: predicated region fallthrough
CT: control target
= control target key end

     0   :  { %s8590_s0 = inlined_call_operand.vmem [shape: s32[2], index: 0, kind: input, shape index: {}]   ;;  %s8591_s1 = inlined_call_operand.vmem [shape: bf16[2,32,256], index: 1, kind: input, shape index: {}]   ;;  %s8592_s2 = inlined_call_operand.vmem [shape: bf16[32,128], index: 2, kind: input, shape index: {}]   ;;  %s8593_s3 = inlined_call_operand.vmem [shape: f32[1,128], index: 3, kind: input, shape index: {}]   ;;  %s8594_s4 = inlined_call_operand.vmem [shape: bf16[128,1280], index: 4, kind: input, shape index: {}]   ;;  %s8595_s5 = inlined_call_operand.vmem [shape: f32[1,1280], index: 5, kind: input, shape index: {}]   ;;  %s8596_s6 = inlined_call_operand.vmem [shape: f32[15,1,1280], index: 6, kind: input, shape index: {}]   ;;  %s8597_s7 = inlined_call_operand.vmem [shape: f32[15,1,1280], index: 7, kind: input, shape index: {}]   ;;  %s8598_s8 = inlined_call_operand.vmem [shape: bf16[1280,128], index: 8, kind: input, shape index: {}]   ;;  %s8599_s9 = inlined_call_operand.vmem [shape: f32[1,128], index: 9, kind: input, shape index: {}]   ;;  %s8600_s10 = inlined_call_operand.vmem [shape: bf16[128,2], index: 10, kind: input, shape index: {}]   ;;  %s8601_s11 = inlined_call_operand.vmem [shape: f32[1,2], index: 11, kind: input, shape index: {}]   ;;  %s8602_s12 = inlined_call_operand.hbm [shape: f32[2,1,2], index: 12, kind: output, shape index: {}]  }
   0x1   :  { %8694 = sst [smem:[#allocation91_spill]] %s8591_s1  ;;  %s17_s23 = sshll.u32 %s8590_s0, 4  ;;  %s18_s23 = int_to_ptr.vmem [resolvable:$true] %s17_s23 }
   0x2   :  { %8695 = sst [smem:[#allocation92_spill]] %s8599_s9  ;;  %s6015_s24 = scalar_lea.vmem %s18_s23, 16 }
   0x3   :  { %8696 = sst [smem:[#allocation93_spill]] %s8601_s11  ;;  %p6016_p0 = scmp.ne.s32.totalorder %s18_s23, %s6015_s24 }
   0x4   :  { %8697 = sst [smem:[#allocation94_spill]] %s8602_s12  ;;  %p6020_p1 = scmp.lt.s32.totalorder %s18_s23, %s18_s23 }
   0x5   :  { %p6021_p2 = scmp.lt.s32.totalorder %s6015_s24, %s6015_s24 }
   0x7   :  { %p6022_p3 = por %p6021_p2, %p6020_p1 }
   0x9   :  { %p6023_p4 = pnand %p6022_p3, %p6016_p0 }
   0xb   :  { %6026 = shalt.err (!%p6023_p4)  }
   0xc   :  { %s6141_s25 = smov [#allocation4]  }
   0xd   :  { %20 = dma.vmem_to_smem %s18_s23, 16, %s6141_s25, [#allocation3] }
   0xe   :  { %6095 = dma.done.wait [#allocation3], 16 }
   0xf   :  { %6096 = vsyncadd [#allocation3], 4294967280 }
  0x10   :  { %22 = sfence }
  0x11   :  { %23 = vsyncpa [#allocation7], 0 }
  0x12   :  { %25 = vsyncpa [#allocation7 + $0x1], 0  ;;  %s6216_s26 = smov 0   ;;  %s6218_s27 = smov 0  }
  0x13   :  { %s6220_s0 = smov 0   ;;  %s6222_s28 = smov 0  }
  0x14   :  { %s6224_s29 = smov 0   ;;  %s6226_s30 = smov 0  }
  0x15   :  { %s6228_s13 = smov 0   ;;  %s6230_s14 = smov 0  }
  0x16   :  { %s6232_s15 = smov 0   ;;  %s6234_s16 = smov 0  }
  0x17 LB: > { %8698 = sst [smem:[#allocation10_spill]] %s6103_s26  ;;  %s4836_s17 = sadd.s32 4294967295, %s6139_s16   ;;  %s6139_s16 = sphi %s6234_s16, %s31_s16   ;;  %s6135_s15 = sphi %s6232_s15, %s8938_s15   ;;  %s6131_s14 = sphi %s6230_s14, %s8937_s14   ;;  %s6127_s13 = sphi %s6228_s13, %s8936_s13   ;;  %s6123_s30 = sphi %s6226_s30, %s8935_s30   ;;  %s6119_s29 = sphi %s6224_s29, %s8943_s29   ;;  %s6115_s28 = sphi %s6222_s28, %s8942_s28   ;;  %s6111_s0 = sphi %s6220_s0, %s8941_s0   ;;  %s6107_s27 = sphi %s6218_s27, %s8940_s27   ;;  %s6103_s26 = sphi %s6216_s26, %s8939_s26  }
  0x18   : > { %8699 = sst [smem:[#allocation11_spill]] %s6131_s14  ;;  %s4837_s18 = sadd.s32 4294967294, %s6139_s16  }
  0x19   : > { %8700 = sst [smem:[#allocation12_spill]] %s6135_s15  ;;  %s40_s19 = sadd.s32 1, %s6131_s14 }
  0x1a   : > { %s43_s20 = sadd.s32 1, %s6135_s15  ;;  %p41_p5 = scmp.ge.s32.totalorder %s40_s19, 2 }
  0x1b   : > { %s52_s21 = sadd.s32 1, %s6119_s29  ;;  %p59_p6 = scmp.ne.s32.totalorder %s6119_s29, %s6115_s28 }
  0x1c   : > { %p60_p7 = scmp.eq.s32.totalorder %s6139_s16, 0  ;;  %s8945_s19 = smov (%p41_p5, %s40_s19), 0 }
  0x1d   : > { %8701 = sst [smem:[#allocation13_spill]] %s8945_s19  ;;  %s8947_s20 = smov (!%p41_p5, %s43_s20), %s6135_s15 }
  0x1e   : > { %s48_s22 = ssub.s32 %s6131_s14, %s8945_s19  ;;  %p6279_p8 = por %p60_p7, %p59_p6 }
  0x1f   : > { %p45_p9 = scmp.ge.s32.totalorder %s8947_s20, 2  ;;  %s302_s24 = sadd.s32 1, %s6111_s0 }
  0x20   : > { %p312_p10 = scmp.ne.s32.totalorder %s6111_s0, %s6107_s27  ;;  %p313_p11 = scmp.eq.s32.totalorder %s4836_s17, 3 }
  0x21   : > { %s8949_s20 = smov (%p45_p9, %s8947_s20), 0  ;;  %p318_p13 = scmp.ne.s32.totalorder %s6107_s27, %s6103_s26 }
  0x22   : > { %8703 = sst [smem:[#allocation14_spill]] %s8949_s20  ;;  %p6288_p12 = por %p313_p11, %p312_p10 }
  0x23   : > { %s47_s12 = ssub.s32 %s6135_s15, %s8949_s20  ;;  %p319_p0 = scmp.eq.s32.totalorder %s4837_s18, 3 }
  0x24   : > { %s49_s19 = sor.u32 %s48_s22, %s47_s12  ;;  %p300_p1 = scmp.eq.s32.totalorder %s47_s12, 0 }
  0x25   : > { %p50_p2 = scmp.eq.s32.totalorder %s49_s19, 0  ;;  %p6296_p3 = por %p319_p0, %p318_p13 }
  0x26   : > { %s6301_s9 = scalar_select %p300_p1, %s6111_s0, %s302_s24  }
  0x27   : > { %s8705_s11 = scalar_select %p6296_p3, 1, 0 }
  0x28   : > { %s6304_s17 = scalar_select %p50_p2, %s6119_s29, %s52_s21  }
  0x29   : > { %8706 = sst [smem:[#allocation15_spill]] %s8705_s11  ;;  %p4839_p4 = scmp.ge.s32.totalorder %s6139_s16, 4 }
  0x2b   : > { %359 = sbr.rel (%p4839_p4) target bundleno = 62 (0x3e), region = 48 }
  0x32   : > { %362 = sbr.rel (!%p6279_p8) target bundleno = 62 (0x3e), region = 52  ;;  %s364_s18 = sand.u32 (%p6279_p8), 1, %s6119_s29  }
  0x33   : > { %s4841_s12 = sshll.u32 (%p6279_p8), %s6135_s15, 3  ;;  %s4840_s19 = sshll.u32 (%p6279_p8), %s364_s18, 4 }
  0x34   : > { %s368_s22 = sadd.s32 (%p6279_p8), %s6131_s14, %s4841_s12  ;;  %s8707_s1 = sld [smem:[#allocation91_spill]] (%p6279_p8) }
  0x35   : > { %s4842_s20 = sshll.u32 (%p6279_p8), %s368_s22, 2  ;;  %s366_s21 = scalar_lea.vmem (%p6279_p8), [#allocation5], %s4840_s19 }
  0x3a   : > { %s370_s24 = scalar_lea.vmem %s8707_s1, %s4842_s20 }
  0x3b   : > { %v386_v0 = vld [vmem:[%s370_s24] sm:$0xf]  ;;  %v388_v1 = vld [vmem:[%s370_s24 + $0x8] sm:$0xf]  ;;  %v390_v2 = vld [vmem:[%s370_s24 + $0x10] sm:$0xf] }
  0x3c   : > { %387 = vst [vmem:[%s366_s21] sm:$0xf] %v386_v0  ;;  %389 = vst [vmem:[%s366_s21 + $0x4] sm:$0xf] %v388_v1  ;;  %v392_v3 = vld [vmem:[%s370_s24 + $0x18] sm:$0xf] }
  0x3d   : > { %391 = vst [vmem:[%s366_s21 + $0x8] sm:$0xf] %v390_v2  ;;  %393 = vst [vmem:[%s366_s21 + $0xc] sm:$0xf] %v392_v3 }
  0x3e PF: > { %p4843_p5 = scmp.ge.s32.totalorder %s6139_s16, 1  ;;  %p441_p6 = scmp.lt.s32.totalorder %s6139_s16, 5 }
  0x40   : > { %p442_p7 = pnand %p4843_p5, %p441_p6 }
  0x42   : > { %445 = sbr.rel (%p442_p7) target bundleno = 1620 (0x654), region = 101 }
  0x49   : > { %s448_s11 = sand.u32 1, %s6115_s28   ;;  %s494_s26 = sand.u32 1, %s6107_s27  }
  0x4a   : > { %s4844_s20 = sshll.u32 %s448_s11, 4  ;;  %s496_s23 = sld [smem:[#allocation4 + %s6127_s13]] }
  0x4b   : > { %s502_s18 = sld [smem:[#allocation4 + %s6127_s13]]  ;;  %s450_s28 = scalar_lea.vmem [#allocation5], %s4844_s20 }
  0x4c   : > { %s6333_s11 = scalar_lea.vmem [#allocation6], %s494_s26  ;;  %p4845_p10 = scmp.ne.s32.totalorder %s6123_s30, 0 }
  0x4d   : > { %v6142_v4 = vmov (!%p4845_p10), 0.0  }
  0x4e   : > { %516 = vst [vmem:[#allocation2] sm:$0xff] (!%p4845_p10), %v6142_v4  ;;  %517 = vst [vmem:[#allocation2 + $0x8] sm:$0xff] (!%p4845_p10), %v6142_v4 }
  0x4f   : > { %518 = vst [vmem:[#allocation2 + $0x10] sm:$0xff] (!%p4845_p10), %v6142_v4  ;;  %519 = vst [vmem:[#allocation2 + $0x18] sm:$0xff] (!%p4845_p10), %v6142_v4 }
  0x50   : > { %p497_p8 = scmp.lt.s32.totalorder %s496_s23, 14  ;;  %515 = sbr.rel (%p4845_p10) target bundleno = 87 (0x57), region = 109  ;;  %520 = vst [vmem:[#allocation2 + $0x20] sm:$0xff] (!%p4845_p10), %v6142_v4  ;;  %521 = vst [vmem:[#allocation2 + $0x28] sm:$0xff] (!%p4845_p10), %v6142_v4 }
  0x51   : > { %p503_p9 = scmp.lt.s32.totalorder %s502_s18, 14  ;;  %522 = vst [vmem:[#allocation2 + $0x30] sm:$0xff] (!%p4845_p10), %v6142_v4  ;;  %523 = vst [vmem:[#allocation2 + $0x38] sm:$0xff] (!%p4845_p10), %v6142_v4 }
  0x52   : > { %s8951_s23 = smov (!%p497_p8, %s496_s23), 14  ;;  %524 = vst [vmem:[#allocation2 + $0x40] sm:$0xff] (!%p4845_p10), %v6142_v4  ;;  %525 = vst [vmem:[#allocation2 + $0x48] sm:$0xff] (!%p4845_p10), %v6142_v4 }
  0x53   : > { %s8953_s18 = smov (!%p503_p9, %s502_s18), 14  ;;  %s5322_s12 = smul.u32 10, %s8951_s23 }
  0x54   : > { %s5323_s19 = smul.u32 10, %s8953_s18 }
  0x55   : > { %s6324_s21 = scalar_lea.vmem %s8596_s6, %s5322_s12 }
  0x56   : > { %s6329_s14 = scalar_lea.vmem %s8597_s7, %s5323_s19 }
  0x57 PF: > { %v5417_v5 = vld [vmem:[%s450_s28] sm:$0xff]   ;;  %v5418_v6 = vld [vmem:[%s450_s28 + $0x8] sm:$0xff]   ;;  %vm581_vm0 = vcmask 261120   ;;  %v6143_v34 = vmov 0   ;;  %p5035_p11 = scmp.eq.s32.totalorder %s6123_s30, 1 }
  0x58   : > { %553 = vxpose.xlu0.c.b16.start [1/2] (short) %v5417_v5, 128  ;;  %v5419_v7 = vld [vmem:[%s8592_s2] sm:$0xff]   ;;  %v5420_v8 = vld [vmem:[%s8592_s2 + $0x8] sm:$0xff]   ;;  %v5426_v19 = vld [vmem:[%s8594_s4 + $0x54] ss:$40 sps:$4 sm:$0xff]   ;;  %1429 = vmatprep.mubr.bf16.mxu1 %v6143_v34 }
  0x59   : > { %5266 = vmatprep.subr.bf16.mxu0 %v5419_v7  ;;  %v5423_v17 = vld [vmem:[%s8594_s4 + $0x4] ss:$40 sps:$4 sm:$0xff]   ;;  %v5421_v18 = vld [vmem:[%s8594_s4] ss:$40 sps:$4 sm:$0xff]   ;;  %v5424_v20 = vld [vmem:[%s8594_s4 + $0x50] ss:$40 sps:$4 sm:$0xff]  }
  0x5a   : > { %5267 = vmatpush3.bf16.msra.mxu0 %v5419_v7  ;;  %5306 = vmatprep.subr.bf16.mxu1 %v5423_v17  ;;  %v5429_v21 = vld [vmem:[%s8594_s4 + $0xa4] ss:$40 sps:$4 sm:$0xff]   ;;  %v5427_v22 = vld [vmem:[%s8594_s4 + $0xa0] ss:$40 sps:$4 sm:$0xff]   ;;  %v5432_v23 = vld [vmem:[%s8594_s4 + $0xf4] ss:$40 sps:$4 sm:$0xff]  }
  0x5b   : > { %5268 = vmatprep.subr.bf16.mxu0 %v5420_v8  ;;  %5314 = vmatpush1.bf16.msra.mxu1 %v5421_v18  ;;  %v5430_v24 = vld [vmem:[%s8594_s4 + $0xf0] ss:$40 sps:$4 sm:$0xff]   ;;  %v5435_v25 = vld [vmem:[%s8594_s4 + $0x144] ss:$40 sps:$4 sm:$0xff]   ;;  %v5433_v26 = vld [vmem:[%s8594_s4 + $0x140] ss:$40 sps:$4 sm:$0xff]  }
  0x5c   : > { %554 = vxpose.xlu0.c.b16.end [2/2] (short) %v5418_v6, 128  ;;  %5307 = vmatprep.subr.bf16.mxu1 %v5426_v19  ;;  %v5438_v27 = vld [vmem:[%s8594_s4 + $0x194] ss:$40 sps:$4 sm:$0xff]   ;;  %v5436_v28 = vld [vmem:[%s8594_s4 + $0x190] ss:$40 sps:$4 sm:$0xff]   ;;  %v5441_v29 = vld [vmem:[%s8594_s4 + $0x1e4] ss:$40 sps:$4 sm:$0xff]  }
  0x5d   : > { %v5439_v30 = vld [vmem:[%s8594_s4 + $0x1e0] ss:$40 sps:$4 sm:$0xff]   ;;  %v5444_v31 = vld [vmem:[%s8594_s4 + $0x234] ss:$40 sps:$4 sm:$0xff]   ;;  %v5442_v32 = vld [vmem:[%s8594_s4 + $0x230] ss:$40 sps:$4 sm:$0xff]  }
  0x5e   : > { %5269 = vmatpush3.bf16.msra.mxu0 %v5420_v8  ;;  %v5447_v33 = vld [vmem:[%s8594_s4 + $0xc] ss:$40 sps:$4 sm:$0xff]   ;;  %v6409_v36 = vld [vmem:[%s8593_s3] ss:$0 sm:$0xff] }
  0x5f   : > { %1357 = vmatprep.subr.bf16.mxu0 %v5423_v17  ;;  %5315 = vmatpush1.bf16.msra.mxu1 %v5424_v20  ;;  %v5459_v35 = vld [vmem:[%s8594_s4 + $0x14] ss:$40 sps:$4 sm:$0xff]  }
  0x60   : > { %5308 = vmatprep.subr.bf16.mxu1 %v5429_v21 }
  0x63   : > { %5316 = vmatpush1.bf16.msra.mxu1 %v5427_v22 }
  0x64   : > { %5309 = vmatprep.subr.bf16.mxu1 %v5432_v23 }
  0x67   : > { %5317 = vmatpush1.bf16.msra.mxu1 %v5430_v24 }
  0x68   : > { %5310 = vmatprep.subr.bf16.mxu1 %v5435_v25 }
  0x6b   : > { %5318 = vmatpush1.bf16.msra.mxu1 %v5433_v26 }
  0x6c   : > { %5311 = vmatprep.subr.bf16.mxu1 %v5438_v27 }
  0x6f   : > { %5319 = vmatpush1.bf16.msra.mxu1 %v5436_v28 }
  0x70   : > { %5312 = vmatprep.subr.bf16.mxu1 %v5441_v29 }
  0x73   : > { %5320 = vmatpush1.bf16.msra.mxu1 %v5439_v30 }
  0x74   : > { %5313 = vmatprep.subr.bf16.mxu1 %v5444_v31 }
  0x77   : > { %5321 = vmatpush1.bf16.msra.mxu1 %v5442_v32 }
  0x78   : > { %1583 = vmatprep.subr.bf16.mxu1 %v5459_v35 }
  0xbe   : > { %v561_v9 = vpop.trf.xlu0 }
  0xbf   : > { %5270 = vmatprep.mubr.msk.bf16.mxu0 %vm581_vm0, %v561_v9 }
  0xc2   : > { %v562_v10 = vpop.trf.xlu0 }
  0xc3   : > { %5271 = vmatmul.mubr.msk.bf16.vlgmr.msra.gmra.mrb[0].mxu0 %vm581_vm0, %v562_v10 }
  0xc4   : > { %1358 = vmatpush1.bf16.msra.mxu0 %v5421_v18 }
  0xc5   : > { %1359 = vmatprep.subr.bf16.mxu0 %v5426_v19 }
  0xc6   : > { %v563_v11 = vpop.trf.xlu0 }
  0xc7   : > { %5274 = vmatprep.mubr.msk.bf16.mxu0 %vm581_vm0, %v563_v11 }
  0xc8   : > { %1360 = vmatpush1.bf16.msra.mxu0 %v5424_v20 }
  0xc9   : > { %1361 = vmatprep.subr.bf16.mxu0 %v5429_v21 }
  0xca   : > { %v564_v12 = vpop.trf.xlu0 }
  0xcb   : > { %5275 = vmatmul.mubr.msk.bf16.gmra.mrb[4].mxu0 %vm581_vm0, %v564_v12 }
  0xcc   : > { %1362 = vmatpush1.bf16.msra.mxu0 %v5427_v22 }
  0xcd   : > { %1363 = vmatprep.subr.bf16.mxu0 %v5432_v23 }
  0xce   : > { %v565_v13 = vpop.trf.xlu0 }
  0xcf   : > { %5278 = vmatprep.mubr.msk.bf16.mxu0 %vm581_vm0, %v565_v13 }
  0xd0   : > { %1364 = vmatpush1.bf16.msra.mxu0 %v5430_v24 }
  0xd1   : > { %1365 = vmatprep.subr.bf16.mxu0 %v5435_v25 }
  0xd2   : > { %v566_v14 = vpop.trf.xlu0 }
  0xd3   : > { %5279 = vmatmul.mubr.msk.bf16.gmra.mrb[8].mxu0 %vm581_vm0, %v566_v14 }
  0xd4   : > { %1366 = vmatpush1.bf16.msra.mxu0 %v5433_v26 }
  0xd5   : > { %1367 = vmatprep.subr.bf16.mxu0 %v5438_v27 }
  0xd6   : > { %v567_v15 = vpop.trf.xlu0 }
  0xd7   : > { %5282 = vmatprep.mubr.msk.bf16.mxu0 %vm581_vm0, %v567_v15 }
  0xd8   : > { %1368 = vmatpush1.bf16.msra.mxu0 %v5436_v28 }
  0xd9   : > { %1369 = vmatprep.subr.bf16.mxu0 %v5441_v29 }
  0xda   : > { %v568_v16 = vpop.trf.xlu0 }
  0xdb   : > { %5283 = vmatmul.mubr.msk.bf16.gmra.mrb[12].mxu0 %vm581_vm0, %v568_v16 }
  0xdc   : > { %1370 = vmatpush1.bf16.msra.mxu0 %v5439_v30  ;;  %1389 = vmatprep.mubr.bf16.mxu0 %v6143_v34 }
  0xdd   : > { %1371 = vmatprep.subr.bf16.mxu0 %v5444_v31 }
  0xe0   : > { %1372 = vmatpush1.bf16.msra.mxu0 %v5442_v32 }
  0xe1   : > { %1470 = vmatprep.subr.bf16.mxu0 %v5447_v33 }
 0x196   : > { %v5272_v37 = vpop.f32.mrb[0].mxu0 }
 0x197   : > { %v6412_v38 = vadd.f32 %v5272_v37, %v6409_v36  ;;  %v640_v39 = vpop.f32.mrb[1].mxu0 }
 0x198   : > { %v6415_v40 = vadd.f32 %v6409_v36, %v640_v39  ;;  %v5273_v41 = vpop.f32.mrb[2].mxu0 }
 0x199   : > { %v4861_v42 = vmul.f32 -1.442695, %v6412_v38  ;;  %v6419_v43 = vadd.f32 %v5273_v41, %v6409_v36  ;;  %v643_v44 = vpop.f32.mrb[3].mxu0 }
 0x19a   : > { %v4859_v45 = vmul.f32 -1.442695, %v6415_v40  ;;  %v6423_v46 = vadd.f32 %v6409_v36, %v643_v44 }
 0x19b   : > { %5541 = vpow2.f32 %v4861_v42  ;;  %v4862_v47 = vmul.f32 -1.442695, %v6419_v43 }
 0x19c   : > { %5543 = vpow2.f32 %v4859_v45  ;;  %v4860_v48 = vmul.f32 -1.442695, %v6423_v46 }
 0x19d   : > { %5545 = vpow2.f32 %v4862_v47 }
 0x19e   : > { %5547 = vpow2.f32 %v4860_v48  ;;  %v5276_v49 = vpop.f32.mrb[4].mxu0 }
 0x19f   : > { %v6428_v50 = vadd.f32 %v5276_v49, %v6409_v36  ;;  %v656_v51 = vpop.f32.mrb[5].mxu0 }
 0x1a0   : > { %v6431_v52 = vadd.f32 %v6409_v36, %v656_v51  ;;  %v5277_v53 = vpop.f32.mrb[6].mxu0 }
 0x1a1   : > { %v4865_v54 = vmul.f32 -1.442695, %v6428_v50  ;;  %v6435_v55 = vadd.f32 %v5277_v53, %v6409_v36  ;;  %v659_v56 = vpop.f32.mrb[7].mxu0 }
 0x1a2   : > { %v4863_v57 = vmul.f32 -1.442695, %v6431_v52  ;;  %v6439_v58 = vadd.f32 %v6409_v36, %v659_v56 }
 0x1a3   : > { %5549 = vpow2.f32 %v4865_v54  ;;  %v4866_v59 = vmul.f32 -1.442695, %v6435_v55 }
 0x1a4   : > { %5551 = vpow2.f32 %v4863_v57  ;;  %v4864_v60 = vmul.f32 -1.442695, %v6439_v58  ;;  %v5445_v57 = vld [vmem:[%s8594_s4 + $0x8] ss:$40 sps:$4 sm:$0xff]  }
 0x1a5   : > { %v5542_v61 = vpop.eup %5541  ;;  %5553 = vpow2.f32 %v4866_v59 }
 0x1a6   : > { %v5544_v62 = vpop.eup %5543  ;;  %v753_v63 = vadd.f32 1.0, %v5542_v61  ;;  %5555 = vpow2.f32 %v4864_v60  ;;  %v5280_v0 = vpop.f32.mrb[8].mxu0 }
 0x1a7   : > { %v5546_v1 = vpop.eup %5545  ;;  %v751_v2 = vadd.f32 1.0, %v5544_v62  ;;  %v6444_v3 = vadd.f32 %v5280_v0, %v6409_v36  ;;  %v672_v4 = vpop.f32.mrb[9].mxu0  ;;  %v5448_v0 = vld [vmem:[%s8594_s4 + $0x58] ss:$40 sps:$4 sm:$0xff]  }
 0x1a8   : > { %v5548_v5 = vpop.eup %5547  ;;  %5557 = vrcp.f32 %v753_v63  ;;  %v754_v6 = vadd.f32 1.0, %v5546_v1  ;;  %v6447_v7 = vadd.f32 %v6409_v36, %v672_v4  ;;  %v5281_v8 = vpop.f32.mrb[10].mxu0 }
 0x1a9   : > { %5559 = vrcp.f32 %v751_v2  ;;  %v752_v9 = vadd.f32 1.0, %v5548_v5  ;;  %v4869_v10 = vmul.f32 -1.442695, %v6444_v3  ;;  %v6451_v11 = vadd.f32 %v5281_v8, %v6409_v36  ;;  %v675_v12 = vpop.f32.mrb[11].mxu0  ;;  %v5453_v2 = vld [vmem:[%s8594_s4 + $0xac] ss:$40 sps:$4 sm:$0xff]  }
 0x1aa   : > { %5561 = vrcp.f32 %v754_v6  ;;  %v4867_v13 = vmul.f32 -1.442695, %v6447_v7  ;;  %v6455_v14 = vadd.f32 %v6409_v36, %v675_v12 }
 0x1ab   : > { %5563 = vrcp.f32 %v752_v9  ;;  %v4870_v15 = vmul.f32 -1.442695, %v6451_v11 }
 0x1ac   : > { %5565 = vpow2.f32 %v4869_v10  ;;  %v4868_v16 = vmul.f32 -1.442695, %v6455_v14 }
 0x1ad   : > { %v5550_v17 = vpop.eup %5549  ;;  %5567 = vpow2.f32 %v4867_v13 }
 0x1ae   : > { %v5552_v18 = vpop.eup %5551  ;;  %v757_v19 = vadd.f32 1.0, %v5550_v17  ;;  %5569 = vpow2.f32 %v4870_v15  ;;  %v5284_v20 = vpop.f32.mrb[12].mxu0 }
 0x1af   : > { %v5554_v21 = vpop.eup %5553  ;;  %v755_v22 = vadd.f32 1.0, %v5552_v18  ;;  %5571 = vpow2.f32 %v4868_v16  ;;  %v6460_v23 = vadd.f32 %v5284_v20, %v6409_v36  ;;  %v688_v24 = vpop.f32.mrb[13].mxu0  ;;  %v5451_v16 = vld [vmem:[%s8594_s4 + $0xa8] ss:$40 sps:$4 sm:$0xff]  }
 0x1b0   : > { %v5556_v25 = vpop.eup %5555  ;;  %5573 = vrcp.f32 %v757_v19  ;;  %v758_v26 = vadd.f32 1.0, %v5554_v21  ;;  %v6463_v27 = vadd.f32 %v6409_v36, %v688_v24  ;;  %v5285_v28 = vpop.f32.mrb[14].mxu0  ;;  %v5454_v21 = vld [vmem:[%s8594_s4 + $0xf8] ss:$40 sps:$4 sm:$0xff]   ;;  %v5462_v24 = vld [vmem:[%s8594_s4 + $0x14c] ss:$40 sps:$4 sm:$0xff]  }
 0x1b1   : > { %5575 = vrcp.f32 %v755_v22  ;;  %v756_v29 = vadd.f32 1.0, %v5556_v25  ;;  %v4873_v30 = vmul.f32 -1.442695, %v6460_v23  ;;  %v6467_v31 = vadd.f32 %v5285_v28, %v6409_v36  ;;  %v691_v32 = vpop.f32.mrb[15].mxu0 }
 0x1b2   : > { %v5558_v33 = vpop.eup %5557  ;;  %5577 = vrcp.f32 %v758_v26  ;;  %v4871_v35 = vmul.f32 -1.442695, %v6463_v27  ;;  %v6471_v37 = vadd.f32 %v6409_v36, %v691_v32 }
 0x1b3   : > { %v5560_v39 = vpop.eup %5559  ;;  %5579 = vrcp.f32 %v756_v29  ;;  %v4874_v41 = vmul.f32 -1.442695, %v6467_v31  ;;  %v801_v47 = vmul.f32 %v5558_v33, %v6412_v38  ;;  %v5460_v33 = vld [vmem:[%s8594_s4 + $0x148] ss:$40 sps:$4 sm:$0xff]  }
 0x1b4   : > { %v5562_v42 = vpop.eup %5561  ;;  %5581 = vpow2.f32 %v4873_v30  ;;  %v4872_v44 = vmul.f32 -1.442695, %v6471_v37  ;;  %v799_v51 = vmul.f32 %v5560_v39, %v6415_v40  ;;  %v5450_v40 = vld [vmem:[%s8594_s4 + $0x5c] ss:$40 sps:$4 sm:$0xff]   ;;  %v5457_v39 = vld [vmem:[%s8594_s4 + $0x10] ss:$40 sps:$4 sm:$0xff]  }
 0x1b5   : > { %v5564_v45 = vpop.eup %5563  ;;  %v802_v48 = vmul.f32 %v5562_v42, %v6419_v43  ;;  %5583 = vpow2.f32 %v4871_v35 }
 0x1b6   : > { %v5566_v49 = vpop.eup %5565  ;;  %v800_v36 = vmul.f32 %v5564_v45, %v6423_v46  ;;  %5585 = vpow2.f32 %v4874_v41  ;;  %v5466_v41 = vld [vmem:[%s8594_s4 + $0x198] ss:$40 sps:$4 sm:$0xff]   ;;  %v5474_v45 = vld [vmem:[%s8594_s4 + $0x1ec] ss:$40 sps:$4 sm:$0xff]  }
 0x1b7   : > { %v5568_v53 = vpop.eup %5567  ;;  %v6479_v54 = vpack.c.bf16 %v802_v48, %v801_v47  ;;  %v761_v56 = vadd.f32 1.0, %v5566_v49  ;;  %5587 = vpow2.f32 %v4872_v44  ;;  %v5463_v44 = vld [vmem:[%s8594_s4 + $0x60] ss:$40 sps:$4 sm:$0xff]   ;;  %v5471_v48 = vld [vmem:[%s8594_s4 + $0xb4] ss:$40 sps:$4 sm:$0xff]  }
 0x1b8   : > { %v5570_v59 = vpop.eup %5569  ;;  %v6484_v38 = vpack.c.bf16 %v800_v36, %v799_v51  ;;  %v759_v43 = vadd.f32 1.0, %v5568_v53 }
 0x1b9   : > { %v5572_v60 = vpop.eup %5571  ;;  %5589 = vrcp.f32 %v761_v56  ;;  %v762_v46 = vadd.f32 1.0, %v5570_v59 }
 0x1ba   : > { %v5574_v61 = vpop.eup %5573  ;;  %5591 = vrcp.f32 %v759_v43  ;;  %v760_v62 = vadd.f32 1.0, %v5572_v60  ;;  %1390 = vmatmul.mubr.bf16.vlgmr.msra.gmra.mrb[16].mxu0 %v6484_v38  ;;  %v5478_v43 = vld [vmem:[%s8594_s4 + $0x238] ss:$40 sps:$4 sm:$0xff]   ;;  %v5495_v60 = vld [vmem:[%s8594_s4 + $0x1c] ss:$40 sps:$4 sm:$0xff]  }
 0x1bb   : > { %v5576_v63 = vpop.eup %5575  ;;  %5593 = vrcp.f32 %v762_v46  ;;  %1471 = vmatpush1.bf16.msra.mxu0 %v5445_v57  ;;  %1399 = vmatprep.mubr.bf16.mxu0 %v6143_v34  ;;  %v805_v5 = vmul.f32 %v5574_v61, %v6428_v50  ;;  %v5472_v57 = vld [vmem:[%s8594_s4 + $0x1e8] ss:$40 sps:$4 sm:$0xff]   ;;  %v5483_v46 = vld [vmem:[%s8594_s4 + $0x154] ss:$40 sps:$4 sm:$0xff]  }
 0x1bc   : > { %v5578_v1 = vpop.eup %5577  ;;  %5595 = vrcp.f32 %v760_v62  ;;  %1472 = vmatprep.subr.bf16.mxu0 %v5450_v40  ;;  %v803_v9 = vmul.f32 %v5576_v63, %v6431_v52  ;;  %v5456_v52 = vld [vmem:[%s8594_s4 + $0xfc] ss:$40 sps:$4 sm:$0xff]   ;;  %v5475_v40 = vld [vmem:[%s8594_s4 + $0x100] ss:$40 sps:$4 sm:$0xff]   ;;  %v5481_v61 = vld [vmem:[%s8594_s4 + $0x150] ss:$40 sps:$4 sm:$0xff]  }
 0x1bd   : > { %v5580_v4 = vpop.eup %5579  ;;  %v806_v6 = vmul.f32 %v5578_v1, %v6435_v55  ;;  %v5486_v62 = vld [vmem:[%s8594_s4 + $0x1a4] ss:$40 sps:$4 sm:$0xff]   ;;  %v5493_v63 = vld [vmem:[%s8594_s4 + $0x18] ss:$40 sps:$4 sm:$0xff]  }
 0x1be   : > { %v5582_v8 = vpop.eup %5581  ;;  %v804_v10 = vmul.f32 %v5580_v4, %v6439_v58  ;;  %v5484_v1 = vld [vmem:[%s8594_s4 + $0x1a0] ss:$40 sps:$4 sm:$0xff]  }
 0x1bf   : > { %v5584_v12 = vpop.eup %5583  ;;  %v6501_v13 = vpack.c.bf16 %v806_v6, %v805_v5  ;;  %v765_v15 = vadd.f32 1.0, %v5582_v8  ;;  %1473 = vmatpush1.bf16.msra.mxu0 %v5448_v0  ;;  %v5501_v0 = vld [vmem:[%s8594_s4 + $0x6c] ss:$40 sps:$4 sm:$0xff]   ;;  %v5499_v4 = vld [vmem:[%s8594_s4 + $0x68] ss:$40 sps:$4 sm:$0xff]  }
 0x1c0   : > { %v5586_v17 = vpop.eup %5585  ;;  %v6506_v18 = vpack.c.bf16 %v804_v10, %v803_v9  ;;  %v763_v50 = vadd.f32 1.0, %v5584_v12  ;;  %1474 = vmatprep.subr.bf16.mxu0 %v5453_v2  ;;  %v5489_v2 = vld [vmem:[%s8594_s4 + $0x1f4] ss:$40 sps:$4 sm:$0xff]   ;;  %v5487_v6 = vld [vmem:[%s8594_s4 + $0x1f0] ss:$40 sps:$4 sm:$0xff]  }
 0x1c1   : > { %v5588_v55 = vpop.eup %5587  ;;  %5597 = vrcp.f32 %v765_v15  ;;  %v766_v58 = vadd.f32 1.0, %v5586_v17  ;;  %v5507_v5 = vld [vmem:[%s8594_s4 + $0xbc] ss:$40 sps:$4 sm:$0xff]   ;;  %v5505_v9 = vld [vmem:[%s8594_s4 + $0xb8] ss:$40 sps:$4 sm:$0xff]  }
 0x1c2   : > { %5599 = vrcp.f32 %v763_v50  ;;  %v764_v19 = vadd.f32 1.0, %v5588_v55  ;;  %1400 = vmatmul.mubr.bf16.gmra.mrb[20].mxu0 %v6479_v54  ;;  %v5492_v8 = vld [vmem:[%s8594_s4 + $0x244] ss:$40 sps:$4 sm:$0xff]   ;;  %v5490_v12 = vld [vmem:[%s8594_s4 + $0x240] ss:$40 sps:$4 sm:$0xff]  }
 0x1c3   : > { %v5590_v20 = vpop.eup %5589  ;;  %5601 = vrcp.f32 %v766_v58  ;;  %1475 = vmatpush1.bf16.msra.mxu0 %v5451_v16  ;;  %1409 = vmatprep.mubr.bf16.mxu0 %v6143_v34  ;;  %v5513_v10 = vld [vmem:[%s8594_s4 + $0x10c] ss:$40 sps:$4 sm:$0xff]   ;;  %v5511_v16 = vld [vmem:[%s8594_s4 + $0x108] ss:$40 sps:$4 sm:$0xff]   ;;  %v5519_v17 = vld [vmem:[%s8594_s4 + $0x15c] ss:$40 sps:$4 sm:$0xff]  }
 0x1c4   : > { %v5592_v22 = vpop.eup %5591  ;;  %5603 = vrcp.f32 %v764_v19  ;;  %1476 = vmatprep.subr.bf16.mxu0 %v5456_v52  ;;  %v809_v28 = vmul.f32 %v5590_v20, %v6444_v3  ;;  %v5468_v3 = vld [vmem:[%s8594_s4 + $0x19c] ss:$40 sps:$4 sm:$0xff]   ;;  %v5496_v50 = vld [vmem:[%s8594_s4 + $0x20] ss:$40 sps:$4 sm:$0xff]   ;;  %v5525_v58 = vld [vmem:[%s8594_s4 + $0x1ac] ss:$40 sps:$4 sm:$0xff]  }
 0x1c5   : > { %v5594_v25 = vpop.eup %5593  ;;  %v807_v30 = vmul.f32 %v5592_v22, %v6447_v7  ;;  %v5465_v7 = vld [vmem:[%s8594_s4 + $0x64] ss:$40 sps:$4 sm:$0xff]   ;;  %v5504_v52 = vld [vmem:[%s8594_s4 + $0x74] ss:$40 sps:$4 sm:$0xff]   ;;  %v5517_v55 = vld [vmem:[%s8594_s4 + $0x158] ss:$40 sps:$4 sm:$0xff]  }
 0x1c6   : > { %v5596_v26 = vpop.eup %5595  ;;  %v810_v29 = vmul.f32 %v5594_v25, %v6451_v11  ;;  %v5498_v15 = vld [vmem:[%s8594_s4 + $0x24] ss:$40 sps:$4 sm:$0xff]   ;;  %v5502_v19 = vld [vmem:[%s8594_s4 + $0x70] ss:$40 sps:$4 sm:$0xff]   ;;  %v5516_v25 = vld [vmem:[%s8594_s4 + $0x114] ss:$40 sps:$4 sm:$0xff]  }
 0x1c7   : > { %v808_v32 = vmul.f32 %v5596_v26, %v6455_v14  ;;  %1477 = vmatpush1.bf16.msra.mxu0 %v5454_v21  ;;  %v5510_v20 = vld [vmem:[%s8594_s4 + $0xc4] ss:$40 sps:$4 sm:$0xff]   ;;  %v5523_v21 = vld [vmem:[%s8594_s4 + $0x1a8] ss:$40 sps:$4 sm:$0xff]   ;;  %v5529_v26 = vld [vmem:[%s8594_s4 + $0x1f8] ss:$40 sps:$4 sm:$0xff]  }
 0x1c8   : > { %v6526_v35 = vpack.c.bf16 %v810_v29, %v809_v28  ;;  %1478 = vmatprep.subr.bf16.mxu0 %v5462_v24  ;;  %v5531_v22 = vld [vmem:[%s8594_s4 + $0x1fc] ss:$40 sps:$4 sm:$0xff]   ;;  %v5508_v24 = vld [vmem:[%s8594_s4 + $0xc0] ss:$40 sps:$4 sm:$0xff]   ;;  %v5534_v28 = vld [vmem:[%s8594_s4 + $0x24c] ss:$40 sps:$4 sm:$0xff]  }
 0x1c9   : > { %v6534_v11 = vpack.c.bf16 %v808_v32, %v807_v30  ;;  %v5514_v29 = vld [vmem:[%s8594_s4 + $0x110] ss:$40 sps:$4 sm:$0xff]   ;;  %v5522_v30 = vld [vmem:[%s8594_s4 + $0x164] ss:$40 sps:$4 sm:$0xff]  }
 0x1ca   : > { %1410 = vmatmul.mubr.bf16.gmra.mrb[24].mxu0 %v6506_v18  ;;  %v5532_v32 = vld [vmem:[%s8594_s4 + $0x248] ss:$40 sps:$4 sm:$0xff]  }
 0x1cb   : > { %v5598_v14 = vpop.eup %5597  ;;  %1430 = vmatmul.mubr.bf16.vlgmr.msra.gmra.mrb[0].mxu1 %v6534_v11  ;;  %1479 = vmatpush1.bf16.msra.mxu0 %v5460_v33  ;;  %v5520_v33 = vld [vmem:[%s8594_s4 + $0x160] ss:$40 sps:$4 sm:$0xff]  }
 0x1cc   : > { %v5600_v42 = vpop.eup %5599  ;;  %1584 = vmatpush1.bf16.msra.mxu1 %v5457_v39  ;;  %1480 = vmatprep.subr.bf16.mxu0 %v5468_v3  ;;  %v813_v51 = vmul.f32 %v5598_v14, %v6460_v23  ;;  %v5469_v23 = vld [vmem:[%s8594_s4 + $0xb0] ss:$40 sps:$4 sm:$0xff]   ;;  %v5528_v39 = vld [vmem:[%s8594_s4 + $0x1b4] ss:$40 sps:$4 sm:$0xff]   ;;  %v5535_v14 = vld [vmem:[%s8594_s4 + $0x200] ss:$40 sps:$4 sm:$0xff]  }
 0x1cd   : > { %v5602_v47 = vpop.eup %5601  ;;  %1585 = vmatprep.subr.bf16.mxu1 %v5465_v7  ;;  %1419 = vmatprep.mubr.bf16.mxu0 %v6143_v34  ;;  %v811_v53 = vmul.f32 %v5600_v42, %v6463_v27  ;;  %v5526_v3 = vld [vmem:[%s8594_s4 + $0x1b0] ss:$40 sps:$4 sm:$0xff]   ;;  %v5537_v7 = vld [vmem:[%s8594_s4 + $0x204] ss:$40 sps:$4 sm:$0xff]  }
 0x1ce   : > { %v5604_v49 = vpop.eup %5603  ;;  %v814_v36 = vmul.f32 %v5602_v47, %v6467_v31  ;;  %1439 = vmatprep.mubr.bf16.mxu1 %v6143_v34  ;;  %v5480_v31 = vld [vmem:[%s8594_s4 + $0x23c] ss:$40 sps:$4 sm:$0xff]   ;;  %v5538_v42 = vld [vmem:[%s8594_s4 + $0x250] ss:$40 sps:$4 sm:$0xff]  }
 0x1cf   : > { %v812_v56 = vmul.f32 %v5604_v49, %v6471_v37  ;;  %1481 = vmatpush1.bf16.msra.mxu0 %v5466_v41  ;;  %v5477_v37 = vld [vmem:[%s8594_s4 + $0x104] ss:$40 sps:$4 sm:$0xff]   ;;  %v5540_v41 = vld [vmem:[%s8594_s4 + $0x254] ss:$40 sps:$4 sm:$0xff]  }
 0x1d0   : > { %v6562_v59 = vpack.c.bf16 %v814_v36, %v813_v51  ;;  %1586 = vmatpush1.bf16.msra.mxu1 %v5463_v44  ;;  %1482 = vmatprep.subr.bf16.mxu0 %v5474_v45 }
 0x1d1   : > { %v6570_v27 = vpack.c.bf16 %v812_v56, %v811_v53  ;;  %1587 = vmatprep.subr.bf16.mxu1 %v5471_v48 }
 0x1d2   : > { %1420 = vmatmul.mubr.bf16.gmra.mrb[28].mxu0 %v6501_v13 }
 0x1d3   : > { %1440 = vmatmul.mubr.bf16.gmra.mrb[4].mxu1 %v6526_v35  ;;  %1483 = vmatpush1.bf16.msra.mxu0 %v5472_v57 }
 0x1d4   : > { %1588 = vmatpush1.bf16.msra.mxu1 %v5469_v23  ;;  %1484 = vmatprep.subr.bf16.mxu0 %v5480_v31 }
 0x1d5   : > { %1589 = vmatprep.subr.bf16.mxu1 %v5477_v37  ;;  %1449 = vmatprep.mubr.bf16.mxu1 %v6143_v34 }
 0x1d6   : > { %1502 = vmatprep.mubr.bf16.mxu0 %v6143_v34 }
 0x1d7   : > { %1485 = vmatpush1.bf16.msra.mxu0 %v5478_v43 }
 0x1d8   : > { %1590 = vmatpush1.bf16.msra.mxu1 %v5475_v40  ;;  %1696 = vmatprep.subr.bf16.mxu0 %v5495_v60 }
 0x1d9   : > { %1591 = vmatprep.subr.bf16.mxu1 %v5483_v46 }
 0x1da   : > { %1503 = vmatmul.mubr.bf16.vlgmr.msra.gmra.mrb[32].mxu0 %v6484_v38 }
 0x1db   : > { %1450 = vmatmul.mubr.bf16.gmra.mrb[8].mxu1 %v6570_v27  ;;  %1512 = vmatprep.mubr.bf16.mxu0 %v6143_v34 }
 0x1dc   : > { %1592 = vmatpush1.bf16.msra.mxu1 %v5481_v61  ;;  %1459 = vmatprep.mubr.bf16.mxu1 %v6143_v34 }
 0x1dd   : > { %1593 = vmatprep.subr.bf16.mxu1 %v5486_v62  ;;  %1697 = vmatpush1.bf16.msra.mxu0 %v5493_v63 }
 0x1de   : > { %1698 = vmatprep.subr.bf16.mxu0 %v5501_v0 }
 0x1e0   : > { %1594 = vmatpush1.bf16.msra.mxu1 %v5484_v1 }
 0x1e1   : > { %1595 = vmatprep.subr.bf16.mxu1 %v5489_v2  ;;  %1699 = vmatpush1.bf16.msra.mxu0 %v5499_v4 }
 0x1e2   : > { %1513 = vmatmul.mubr.bf16.gmra.mrb[36].mxu0 %v6479_v54  ;;  %1700 = vmatprep.subr.bf16.mxu0 %v5507_v5 }
 0x1e3   : > { %1460 = vmatmul.mubr.bf16.gmra.mrb[12].mxu1 %v6562_v59  ;;  %1522 = vmatprep.mubr.bf16.mxu0 %v6143_v34 }
 0x1e4   : > { %1596 = vmatpush1.bf16.msra.mxu1 %v5487_v6  ;;  %1615 = vmatprep.mubr.bf16.mxu1 %v6143_v34 }
 0x1e5   : > { %1597 = vmatprep.subr.bf16.mxu1 %v5492_v8  ;;  %1701 = vmatpush1.bf16.msra.mxu0 %v5505_v9 }
 0x1e6   : > { %1702 = vmatprep.subr.bf16.mxu0 %v5513_v10 }
 0x1e8   : > { %1598 = vmatpush1.bf16.msra.mxu1 %v5490_v12 }
 0x1e9   : > { %1809 = vmatprep.subr.bf16.mxu1 %v5498_v15  ;;  %1703 = vmatpush1.bf16.msra.mxu0 %v5511_v16 }
 0x1ea   : > { %1523 = vmatmul.mubr.bf16.gmra.mrb[40].mxu0 %v6506_v18  ;;  %1704 = vmatprep.subr.bf16.mxu0 %v5519_v17 }
 0x1eb   : > { %1616 = vmatmul.mubr.bf16.vlgmr.msra.gmra.mrb[16].mxu1 %v6484_v38  ;;  %1532 = vmatprep.mubr.bf16.mxu0 %v6143_v34 }
 0x1ec   : > { %1810 = vmatpush1.bf16.msra.mxu1 %v5496_v50  ;;  %1625 = vmatprep.mubr.bf16.mxu1 %v6143_v34 }
 0x1ed   : > { %1811 = vmatprep.subr.bf16.mxu1 %v5504_v52  ;;  %1705 = vmatpush1.bf16.msra.mxu0 %v5517_v55 }
 0x1ee   : > { %1706 = vmatprep.subr.bf16.mxu0 %v5525_v58 }
 0x1f0   : > { %1812 = vmatpush1.bf16.msra.mxu1 %v5502_v19 }
 0x1f1   : > { %1813 = vmatprep.subr.bf16.mxu1 %v5510_v20  ;;  %1707 = vmatpush1.bf16.msra.mxu0 %v5523_v21 }
 0x1f2   : > { %1533 = vmatmul.mubr.bf16.gmra.mrb[44].mxu0 %v6501_v13  ;;  %1708 = vmatprep.subr.bf16.mxu0 %v5531_v22 }
 0x1f3   : > { %1626 = vmatmul.mubr.bf16.gmra.mrb[20].mxu1 %v6479_v54  ;;  %1542 = vmatprep.mubr.bf16.mxu0 %v6143_v34 }
 0x1f4   : > { %1635 = vmatprep.mubr.bf16.mxu1 %v6143_v34  ;;  %1814 = vmatpush1.bf16.msra.mxu1 %v5508_v24 }
 0x1f5   : > { %1815 = vmatprep.subr.bf16.mxu1 %v5516_v25  ;;  %1709 = vmatpush1.bf16.msra.mxu0 %v5529_v26 }
 0x1f6   : > { %1710 = vmatprep.subr.bf16.mxu0 %v5534_v28 }
 0x1f8   : > { %1816 = vmatpush1.bf16.msra.mxu1 %v5514_v29 }
 0x1f9   : > { %1817 = vmatprep.subr.bf16.mxu1 %v5522_v30  ;;  %1711 = vmatpush1.bf16.msra.mxu0 %v5532_v32 }
 0x1fa   : > { %1543 = vmatmul.mubr.bf16.gmra.mrb[48].mxu0 %v6534_v11 }
 0x1fb   : > { %1636 = vmatmul.mubr.bf16.gmra.mrb[24].mxu1 %v6506_v18  ;;  %1552 = vmatprep.mubr.bf16.mxu0 %v6143_v34 }
 0x1fc   : > { %1645 = vmatprep.mubr.bf16.mxu1 %v6143_v34  ;;  %1818 = vmatpush1.bf16.msra.mxu1 %v5520_v33 }
 0x1fd   : > { %1819 = vmatprep.subr.bf16.mxu1 %v5528_v39 }
 0x200   : > { %1820 = vmatpush1.bf16.msra.mxu1 %v5526_v3 }
 0x201   : > { %1821 = vmatprep.subr.bf16.mxu1 %v5537_v7 }
 0x202   : > { %1553 = vmatmul.mubr.bf16.gmra.mrb[52].mxu0 %v6526_v35 }
 0x203   : > { %1646 = vmatmul.mubr.bf16.gmra.mrb[28].mxu1 %v6501_v13  ;;  %1562 = vmatprep.mubr.bf16.mxu0 %v6143_v34 }
 0x204   : > { %1655 = vmatprep.mubr.bf16.mxu1 %v6143_v34  ;;  %1822 = vmatpush1.bf16.msra.mxu1 %v5535_v14 }
 0x205   : > { %1823 = vmatprep.subr.bf16.mxu1 %v5540_v41 }
 0x208   : > { %1824 = vmatpush1.bf16.msra.mxu1 %v5538_v42 }
 0x20a   : > { %1563 = vmatmul.mubr.bf16.gmra.mrb[56].mxu0 %v6570_v27 }
 0x20b   : > { %1656 = vmatmul.mubr.bf16.gmra.mrb[32].mxu1 %v6534_v11  ;;  %1572 = vmatprep.mubr.bf16.mxu0 %v6143_v34 }
 0x20c   : > { %1665 = vmatprep.mubr.bf16.mxu1 %v6143_v34 }
 0x212   : > { %1573 = vmatmul.mubr.bf16.gmra.mrb[60].mxu0 %v6562_v59 }
 0x213   : > { %1666 = vmatmul.mubr.bf16.gmra.mrb[36].mxu1 %v6526_v35  ;;  %1728 = vmatprep.mubr.bf16.mxu0 %v6143_v34 }
 0x214   : > { %1675 = vmatprep.mubr.bf16.mxu1 %v6143_v34 }
 0x21a   : > { %1729 = vmatmul.mubr.bf16.vlgmr.msra.gmra.mrb[64].mxu0 %v6484_v38 }
 0x21b   : > { %1676 = vmatmul.mubr.bf16.gmra.mrb[40].mxu1 %v6570_v27  ;;  %1738 = vmatprep.mubr.bf16.mxu0 %v6143_v34 }
 0x21c   : > { %1685 = vmatprep.mubr.bf16.mxu1 %v6143_v34 }
 0x222   : > { %1739 = vmatmul.mubr.bf16.gmra.mrb[68].mxu0 %v6479_v54 }
 0x223   : > { %1686 = vmatmul.mubr.bf16.gmra.mrb[44].mxu1 %v6562_v59  ;;  %1748 = vmatprep.mubr.bf16.mxu0 %v6143_v34 }
 0x224   : > { %1841 = vmatprep.mubr.bf16.mxu1 %v6143_v34 }
 0x22a   : > { %1749 = vmatmul.mubr.bf16.gmra.mrb[72].mxu0 %v6506_v18 }
 0x22b   : > { %1842 = vmatmul.mubr.bf16.vlgmr.msra.gmra.mrb[48].mxu1 %v6484_v38  ;;  %1758 = vmatprep.mubr.bf16.mxu0 %v6143_v34 }
 0x22c   : > { %1851 = vmatprep.mubr.bf16.mxu1 %v6143_v34 }
 0x232   : > { %1759 = vmatmul.mubr.bf16.gmra.mrb[76].mxu0 %v6501_v13 }
 0x233   : > { %1852 = vmatmul.mubr.bf16.gmra.mrb[52].mxu1 %v6479_v54  ;;  %1768 = vmatprep.mubr.bf16.mxu0 %v6143_v34  ;;  %v907_v54 = vlaneseq }
 0x234   : > { %1861 = vmatprep.mubr.bf16.mxu1 %v6143_v34 }
 0x235   : > { %v6771_v38 = vshrl.u32 %v907_v54, 7 }
 0x237   : > { %8708 = vst [vmem:[#allocation16_spill] sm:$0xff] %v6771_v38  ;;  %v6815_v16 = vsub.s32 2, %v6771_v38  ;;  %v6840_v54 = vsub.s32 3, %v6771_v38 }
 0x239   : > { %8711 = vst [vmem:[#allocation19_spill] sm:$0xff] %v6815_v16  ;;  %8712 = vst [vmem:[#allocation20_spill] sm:$0xff] %v6840_v54 }
 0x23a   : > { %1769 = vmatmul.mubr.bf16.gmra.mrb[80].mxu0 %v6534_v11 }
 0x23b   : > { %1862 = vmatmul.mubr.bf16.gmra.mrb[56].mxu1 %v6506_v18  ;;  %1778 = vmatprep.mubr.bf16.mxu0 %v6143_v34  ;;  %v6779_v18 = vld [vmem:[%s8595_s5] sm:$0xff] }
 0x23c   : > { %1871 = vmatprep.mubr.bf16.mxu1 %v6143_v34  ;;  %v6837_v42 = vrot.slane %v6779_v18, %v6815_v16 }
 0x242   : > { %1779 = vmatmul.mubr.bf16.gmra.mrb[84].mxu0 %v6526_v35 }
 0x243   : > { %1872 = vmatmul.mubr.bf16.gmra.mrb[60].mxu1 %v6501_v13  ;;  %1788 = vmatprep.mubr.bf16.mxu0 %v6143_v34  ;;  %v6774_v13 = vsub.s32 0, %v6771_v38 }
 0x244   : > { %1881 = vmatprep.mubr.bf16.mxu1 %v6143_v34 }
 0x245   : > { %8709 = vst [vmem:[#allocation17_spill] sm:$0xff] %v6774_v13 }
 0x24a   : > { %1789 = vmatmul.mubr.bf16.gmra.mrb[88].mxu0 %v6570_v27 }
 0x24b   : > { %1882 = vmatmul.mubr.bf16.gmra.mrb[64].mxu1 %v6534_v11  ;;  %1798 = vmatprep.mubr.bf16.mxu0 %v6143_v34  ;;  %v6786_v11 = vrot.slane %v6779_v18, %v6774_v13 }
 0x24c   : > { %1891 = vmatprep.mubr.bf16.mxu1 %v6143_v34 }
 0x252   : > { %1799 = vmatmul.mubr.bf16.gmra.mrb[92].mxu0 %v6562_v59 }
 0x253   : > { %1892 = vmatmul.mubr.bf16.gmra.mrb[68].mxu1 %v6526_v35  ;;  %v6782_v35 = vsub.s32 1, %v6771_v38 }
 0x254   : > { %1901 = vmatprep.mubr.bf16.mxu1 %v6143_v34 }
 0x255   : > { %8710 = vst [vmem:[#allocation18_spill] sm:$0xff] %v6782_v35  ;;  %v6790_v44 = vrot.slane %v6779_v18, %v6782_v35 }
 0x25b   : > { %1902 = vmatmul.mubr.bf16.gmra.mrb[72].mxu1 %v6570_v27 }
 0x25c   : > { %1911 = vmatprep.mubr.bf16.mxu1 %v6143_v34 }
 0x263   : > { %1912 = vmatmul.mubr.bf16.gmra.mrb[76].mxu1 %v6562_v59 }
 0x28d   : > { %v1391_v34 = vpop.f32.mrb[16].mxu0 }
 0x28e   : > { %v1393_v45 = vpop.f32.mrb[17].mxu0  ;;  %v1392_v48 = vadd.f32 %v1391_v34, %v6786_v11 }
 0x28f   : > { %v1395_v47 = vpop.f32.mrb[18].mxu0  ;;  %v1394_v36 = vadd.f32 %v1393_v45, %v6790_v44 }
 0x290   : > { %v1396_v49 = vadd.f32 %v1395_v47, %v6786_v11  ;;  %v1397_v51 = vpop.f32.mrb[19].mxu0  ;;  %v6843_v47 = vsub.s32 4, %v6771_v38 }
 0x291   : > { %v1398_v53 = vadd.f32 %v1397_v51, %v6790_v44 }
 0x292   : > { %v6796_v56 = vpack.c.bf16 %v1396_v49, %v1392_v48  ;;  %8713 = vst [vmem:[#allocation21_spill] sm:$0xff] %v6843_v47  ;;  %v6846_v48 = vsub.s32 5, %v6771_v38  ;;  %v6849_v49 = vsub.s32 6, %v6771_v38 }
 0x293   : > { %v6798_v57 = vpack.c.bf16 %v1398_v53, %v1394_v36 }
 0x294   : > { %v4955_v59 = vmul.bf16 3216621497, %v6796_v56  ;;  %8714 = vst [vmem:[#allocation22_spill] sm:$0xff] %v6846_v48  ;;  %8715 = vst [vmem:[#allocation23_spill] sm:$0xff] %v6849_v49 }
 0x295   : > { %v4956_v23 = vmul.bf16 3216621497, %v6798_v57  ;;  %v1401_v31 = vpop.f32.mrb[20].mxu0 }
 0x296   : > { %5605 = vpow.bf16 %v4955_v59  ;;  %v1403_v27 = vpop.f32.mrb[21].mxu0  ;;  %v1402_v43 = vadd.f32 %v1401_v31, %v6786_v11 }
 0x297   : > { %5607 = vpow.bf16 %v4956_v23  ;;  %v1405_v37 = vpop.f32.mrb[22].mxu0  ;;  %v1404_v46 = vadd.f32 %v1403_v27, %v6790_v44 }
 0x298   : > { %v1406_v40 = vadd.f32 %v1405_v37, %v6786_v11  ;;  %v1407_v60 = vpop.f32.mrb[23].mxu0 }
 0x299   : > { %v1408_v61 = vadd.f32 %v1407_v60, %v6790_v44 }
 0x29a   : > { %v6806_v62 = vpack.c.bf16 %v1406_v40, %v1402_v43 }
 0x29b   : > { %v6808_v63 = vpack.c.bf16 %v1408_v61, %v1404_v46 }
 0x29c   : > { %v4965_v0 = vmul.bf16 3216621497, %v6806_v62 }
 0x29d   : > { %v4966_v1 = vmul.bf16 3216621497, %v6808_v63  ;;  %v1411_v2 = vpop.f32.mrb[24].mxu0 }
 0x29e   : > { %5609 = vpow.bf16 %v4965_v0  ;;  %v1431_v4 = vpop.f32.mrb[0].mxu1  ;;  %v1413_v5 = vpop.f32.mrb[25].mxu0  ;;  %v1412_v9 = vadd.f32 %v1411_v2, %v6786_v11 }
 0x29f   : > { %5611 = vpow.bf16 %v4966_v1  ;;  %v1433_v6 = vpop.f32.mrb[1].mxu1  ;;  %v1415_v8 = vpop.f32.mrb[26].mxu0  ;;  %v1432_v50 = vadd.f32 %v1431_v4, %v6786_v11  ;;  %v1414_v52 = vadd.f32 %v1413_v5, %v6790_v44 }
 0x2a0   : > { %v1416_v10 = vadd.f32 %v1415_v8, %v6786_v11  ;;  %v1435_v12 = vpop.f32.mrb[2].mxu1  ;;  %v1417_v15 = vpop.f32.mrb[27].mxu0  ;;  %v1434_v22 = vadd.f32 %v1433_v6, %v6790_v44  ;;  %v6867_v6 = vrot.slane %v6779_v18, %v6840_v54 }
 0x2a1   : > { %v5606_v17 = vpop.eup %5605  ;;  %v1436_v55 = vadd.f32 %v1435_v12, %v6786_v11  ;;  %v1418_v58 = vadd.f32 %v1417_v15, %v6790_v44  ;;  %v1437_v19 = vpop.f32.mrb[3].mxu1 }
 0x2a2   : > { %v5608_v20 = vpop.eup %5607  ;;  %v2322_v21 = vadd.bf16 1065369472, %v5606_v17  ;;  %v6822_v24 = vpack.c.bf16 %v1416_v10, %v1412_v9  ;;  %v1438_v25 = vadd.f32 %v1437_v19, %v6790_v44  ;;  %v6874_v10 = vrot.slane %v6779_v18, %v6843_v47 }
 0x2a3   : > { %v2323_v26 = vadd.bf16 1065369472, %v5608_v20  ;;  %v6825_v28 = vpack.c.bf16 %v1436_v55, %v1432_v50  ;;  %v6827_v29 = vpack.c.bf16 %v1418_v58, %v1414_v52  ;;  %v6880_v50 = vrot.slane %v6779_v18, %v6846_v48 }
 0x2a4   : > { %5613 = vrcp.bf16 %v2322_v21  ;;  %v4975_v30 = vmul.bf16 3216621497, %v6822_v24  ;;  %v6830_v32 = vpack.c.bf16 %v1438_v25, %v1434_v22  ;;  %v6885_v19 = vrot.slane %v6779_v18, %v6849_v49 }
 0x2a5   : > { %5615 = vrcp.bf16 %v2323_v26  ;;  %v4995_v33 = vmul.bf16 3216621497, %v6825_v28  ;;  %v4976_v39 = vmul.bf16 3216621497, %v6827_v29  ;;  %v1421_v3 = vpop.f32.mrb[28].mxu0  ;;  %v6888_v20 = vsub.s32 7, %v6771_v38 }
 0x2a6   : > { %5617 = vpow.bf16 %v4975_v30  ;;  %v4996_v7 = vmul.bf16 3216621497, %v6830_v32  ;;  %v1441_v14 = vpop.f32.mrb[4].mxu1  ;;  %v1423_v41 = vpop.f32.mrb[29].mxu0  ;;  %v1422_v51 = vadd.f32 %v1421_v3, %v6786_v11 }
 0x2a7   : > { %5619 = vpow.bf16 %v4995_v33  ;;  %v1443_v34 = vpop.f32.mrb[5].mxu1  ;;  %v1425_v45 = vpop.f32.mrb[30].mxu0  ;;  %v1442_v36 = vadd.f32 %v1441_v14, %v6786_v11  ;;  %v1424_v27 = vadd.f32 %v1423_v41, %v6790_v44  ;;  %8716 = vst [vmem:[#allocation24_spill] sm:$0xff] %v6888_v20 }
 0x2a8   : > { %5621 = vpow.bf16 %v4976_v39  ;;  %v1426_v53 = vadd.f32 %v1425_v45, %v6786_v11  ;;  %v1445_v59 = vpop.f32.mrb[6].mxu1  ;;  %v1427_v23 = vpop.f32.mrb[31].mxu0  ;;  %v1444_v61 = vadd.f32 %v1443_v34, %v6790_v44 }
 0x2a9   : > { %v5610_v31 = vpop.eup %5609  ;;  %5623 = vpow.bf16 %v4996_v7  ;;  %v1446_v37 = vadd.f32 %v1445_v59, %v6786_v11  ;;  %v1428_v43 = vadd.f32 %v1427_v23, %v6790_v44  ;;  %v1447_v40 = vpop.f32.mrb[7].mxu1 }
 0x2aa   : > { %v5612_v60 = vpop.eup %5611  ;;  %v2332_v46 = vadd.bf16 1065369472, %v5610_v31  ;;  %v6858_v0 = vpack.c.bf16 %v1426_v53, %v1422_v51  ;;  %v1448_v1 = vadd.f32 %v1447_v40, %v6790_v44 }
 0x2ab   : > { %v2333_v2 = vadd.bf16 1065369472, %v5612_v60  ;;  %v6861_v4 = vpack.c.bf16 %v1446_v37, %v1442_v36  ;;  %v6863_v5 = vpack.c.bf16 %v1428_v43, %v1424_v27 }
 0x2ac   : > { %5625 = vrcp.bf16 %v2332_v46  ;;  %v4985_v8 = vmul.bf16 3216621497, %v6858_v0  ;;  %v6870_v9 = vpack.c.bf16 %v1448_v1, %v1444_v61 }
 0x2ad   : > { %5627 = vrcp.bf16 %v2333_v2  ;;  %v5005_v12 = vmul.bf16 3216621497, %v6861_v4  ;;  %v4986_v15 = vmul.bf16 3216621497, %v6863_v5  ;;  %v1504_v17 = vpop.f32.mrb[32].mxu0 }
 0x2ae   : > { %5629 = vpow.bf16 %v4985_v8  ;;  %v5006_v52 = vmul.bf16 3216621497, %v6870_v9  ;;  %v1451_v55 = vpop.f32.mrb[8].mxu1  ;;  %v1506_v58 = vpop.f32.mrb[33].mxu0  ;;  %v1505_v25 = vadd.f32 %v1504_v17, %v6837_v42  ;;  %v904_v2 = vld [vmem:[%s8595_s5 + $0x8] sm:$0x3] }
 0x2af   : > { %v5614_v21 = vpop.eup %5613  ;;  %5631 = vpow.bf16 %v5005_v12  ;;  %v1452_v22 = vadd.f32 %v1451_v55, %v6786_v11  ;;  %v1453_v26 = vpop.f32.mrb[9].mxu1  ;;  %v1507_v30 = vadd.f32 %v1506_v58, %v6867_v6 }
 0x2b0   : > { %v1508_v33 = vpop.f32.mrb[34].mxu0  ;;  %v5616_v39 = vpop.eup %5615  ;;  %v2403_v3 = vmul.bf16 1065369472, %v5614_v21  ;;  %5633 = vpow.bf16 %v4986_v15  ;;  %v1454_v7 = vadd.f32 %v1453_v26, %v6790_v44  ;;  %v6917_v15 = vrot.slane %v6779_v18, %v6888_v20 }
 0x2b1   : > { %v1455_v14 = vpop.f32.mrb[10].mxu1  ;;  %v1509_v41 = vadd.f32 %v1508_v33, %v6837_v42  ;;  %v1510_v34 = vpop.f32.mrb[35].mxu0  ;;  %v2405_v51 = vmul.bf16 1065369472, %v5616_v39  ;;  %5635 = vpow.bf16 %v5006_v52 }
 0x2b2   : > { %v5618_v45 = vpop.eup %5617  ;;  %v1456_v36 = vadd.f32 %v1455_v14, %v6786_v11  ;;  %v1457_v53 = vpop.f32.mrb[11].mxu1  ;;  %v1511_v59 = vadd.f32 %v1510_v34, %v6867_v6  ;;  %v6898_v31 = vmul.bf16 %v2403_v3, %v6796_v56 }
 0x2b3   : > { %v5620_v23 = vpop.eup %5619  ;;  %v2342_v27 = vadd.bf16 1065369472, %v5618_v45  ;;  %v6900_v37 = vpack.c.bf16 %v1509_v41, %v1505_v25  ;;  %v1458_v43 = vadd.f32 %v1457_v53, %v6790_v44  ;;  %v6904_v60 = vmul.bf16 %v2405_v51, %v6798_v57 }
 0x2b4   : > { %8717 = vst [vmem:[#allocation25_spill] sm:$0xff] %v6898_v31  ;;  %v5622_v40 = vpop.eup %5621  ;;  %v2362_v46 = vadd.bf16 1065369472, %v5620_v23  ;;  %v6906_v61 = vpack.c.bf16 %v1456_v36, %v1452_v22  ;;  %v6908_v1 = vpack.c.bf16 %v1511_v59, %v1507_v30  ;;  %v6923_v22 = vrot.slane %v904_v2, %v6774_v13 }
 0x2b5   : > { %8718 = vst [vmem:[#allocation26_spill] sm:$0xff] %v6904_v60  ;;  %v5624_v56 = vpop.eup %5623  ;;  %5637 = vrcp.bf16 %v2342_v27  ;;  %v2343_v8 = vadd.bf16 1065369472, %v5622_v40  ;;  %v6913_v12 = vpack.c.bf16 %v1458_v43, %v1454_v7  ;;  %v4957_v52 = vmul.bf16 3216621497, %v6900_v37  ;;  %v1514_v21 = vpop.f32.mrb[36].mxu0 }
 0x2b6   : > { %5639 = vrcp.bf16 %v2362_v46  ;;  %v2363_v57 = vadd.bf16 1065369472, %v5624_v56  ;;  %v5015_v17 = vmul.bf16 3216621497, %v6906_v61  ;;  %v1461_v58 = vpop.f32.mrb[12].mxu1  ;;  %v6926_v25 = vrot.slane %v904_v2, %v6782_v35  ;;  %v1516_v3 = vpop.f32.mrb[37].mxu0 }
 0x2b7   : > { %5641 = vrcp.bf16 %v2343_v8  ;;  %v5016_v55 = vmul.bf16 3216621497, %v6913_v12  ;;  %v5626_v26 = vpop.eup %5625  ;;  %v4958_v18 = vmul.bf16 3216621497, %v6908_v1  ;;  %v1462_v30 = vadd.f32 %v1461_v58, %v6786_v11  ;;  %v1463_v39 = vpop.f32.mrb[13].mxu1 }
 0x2b8   : > { %5643 = vrcp.bf16 %v2363_v57  ;;  %v1515_v33 = vadd.f32 %v1514_v21, %v6837_v42  ;;  %v5628_v7 = vpop.eup %5627  ;;  %v2423_v14 = vmul.bf16 1065369472, %v5626_v26  ;;  %v1464_v41 = vadd.f32 %v1463_v39, %v6790_v44  ;;  %v1465_v45 = vpop.f32.mrb[14].mxu1 }
 0x2b9   : > { %5645 = vpow.bf16 %v5015_v17  ;;  %v1517_v34 = vadd.f32 %v1516_v3, %v6867_v6  ;;  %v1518_v51 = vpop.f32.mrb[38].mxu0  ;;  %v5630_v36 = vpop.eup %5629  ;;  %v2425_v53 = vmul.bf16 1065369472, %v5628_v7  ;;  %v1466_v59 = vadd.f32 %v1465_v45, %v6786_v11 }
 0x2ba   : > { %5647 = vpow.bf16 %v4957_v52  ;;  %v1519_v23 = vadd.f32 %v1518_v51, %v6837_v42  ;;  %v1467_v27 = vpop.f32.mrb[15].mxu1  ;;  %v1520_v43 = vpop.f32.mrb[39].mxu0  ;;  %v6936_v46 = vmul.bf16 %v2423_v14, %v6806_v62  ;;  %v2352_v2 = vadd.bf16 1065369472, %v5630_v36 }
 0x2bb   : > { %v5632_v40 = vpop.eup %5631  ;;  %5649 = vpow.bf16 %v5016_v55  ;;  %v1468_v56 = vadd.f32 %v1467_v27, %v6790_v44  ;;  %v6940_v57 = vmul.bf16 %v2425_v53, %v6808_v63  ;;  %v6942_v52 = vpack.c.bf16 %v1466_v59, %v1462_v30 }
 0x2bc   : > { %8719 = vst [vmem:[#allocation27_spill] sm:$0xff] %v6936_v46  ;;  %v5634_v8 = vpop.eup %5633  ;;  %v2372_v17 = vadd.bf16 1065369472, %v5632_v40  ;;  %5651 = vpow.bf16 %v4958_v18  ;;  %v6944_v21 = vpack.c.bf16 %v1519_v23, %v1515_v33  ;;  %v1521_v44 = vadd.f32 %v1520_v43, %v6867_v6 }
 0x2bd   : > { %8720 = vst [vmem:[#allocation28_spill] sm:$0xff] %v6940_v57  ;;  %v5636_v11 = vpop.eup %5635  ;;  %5653 = vrcp.bf16 %v2352_v2  ;;  %v2353_v58 = vadd.bf16 1065369472, %v5634_v8  ;;  %v6946_v26 = vpack.c.bf16 %v1468_v56, %v1464_v41  ;;  %v5025_v55 = vmul.bf16 3216621497, %v6942_v52  ;;  %v1524_v39 = vpop.f32.mrb[40].mxu0 }
 0x2be   : > { %5655 = vrcp.bf16 %v2372_v17  ;;  %v2373_v62 = vadd.bf16 1065369472, %v5636_v11  ;;  %v4967_v63 = vmul.bf16 3216621497, %v6944_v21  ;;  %v1525_v30 = vadd.f32 %v1524_v39, %v6837_v42  ;;  %v1617_v3 = vpop.f32.mrb[16].mxu1  ;;  %v1526_v7 = vpop.f32.mrb[41].mxu0 }
 0x2bf   : > { %5657 = vrcp.bf16 %v2353_v58  ;;  %v5026_v18 = vmul.bf16 3216621497, %v6946_v26  ;;  %v6953_v14 = vpack.c.bf16 %v1521_v44, %v1517_v34  ;;  %v1618_v41 = vadd.f32 %v1617_v3, %v6874_v10  ;;  %v1619_v51 = vpop.f32.mrb[17].mxu1  ;;  %v1528_v36 = vpop.f32.mrb[42].mxu0 }
 0x2c0   : > { %v5638_v33 = vpop.eup %5637  ;;  %5659 = vrcp.bf16 %v2373_v62  ;;  %v1527_v45 = vadd.f32 %v1526_v7, %v6867_v6  ;;  %v1620_v23 = vadd.f32 %v1619_v51, %v6880_v50  ;;  %v1529_v27 = vadd.f32 %v1528_v36, %v6837_v42  ;;  %v1621_v43 = vpop.f32.mrb[18].mxu1 }
 0x2c1   : > { %v5640_v53 = vpop.eup %5639  ;;  %v2443_v59 = vmul.bf16 1065369472, %v5638_v33  ;;  %5661 = vpow.bf16 %v5025_v55  ;;  %v1530_v40 = vpop.f32.mrb[43].mxu0  ;;  %v4968_v34 = vmul.bf16 3216621497, %v6953_v14  ;;  %v1622_v8 = vadd.f32 %v1621_v43, %v6874_v10 }
 0x2c2   : > { %v5642_v2 = vpop.eup %5641  ;;  %v2483_v56 = vmul.bf16 1065369472, %v5640_v53  ;;  %5663 = vpow.bf16 %v4967_v63  ;;  %v1623_v17 = vpop.f32.mrb[19].mxu1  ;;  %v6964_v55 = vpack.c.bf16 %v1529_v27, %v1525_v30  ;;  %v1531_v36 = vadd.f32 %v1530_v40, %v6867_v6 }
 0x2c3   : > { %v5644_v11 = vpop.eup %5643  ;;  %v6962_v58 = vmul.bf16 %v2443_v59, %v6822_v24  ;;  %v2445_v62 = vmul.bf16 1065369472, %v5642_v2  ;;  %5665 = vpow.bf16 %v5026_v18  ;;  %v6969_v63 = vpack.c.bf16 %v1622_v8, %v1618_v41 }
 0x2c4   : > { %v5646_v44 = vpop.eup %5645  ;;  %v6967_v39 = vmul.bf16 %v2483_v56, %v6825_v28  ;;  %v2485_v3 = vmul.bf16 1065369472, %v5644_v11  ;;  %5667 = vpow.bf16 %v4968_v34  ;;  %v4977_v24 = vmul.bf16 3216621497, %v6964_v55 }
 0x2c5   : > { %8721 = vst [vmem:[#allocation29_spill] sm:$0xff] %v6962_v58  ;;  %v5648_v7 = vpop.eup %5647  ;;  %v6972_v33 = vmul.bf16 %v2445_v62, %v6827_v29  ;;  %v2382_v51 = vadd.bf16 1065369472, %v5646_v44  ;;  %v4959_v28 = vmul.bf16 3216621497, %v6969_v63  ;;  %v1624_v59 = vadd.f32 %v1623_v17, %v6880_v50  ;;  %v1534_v41 = vpop.f32.mrb[44].mxu0 }
 0x2c6   : > { %8722 = vst [vmem:[#allocation30_spill] sm:$0xff] %v6967_v39  ;;  %v5650_v18 = vpop.eup %5649  ;;  %v6977_v30 = vmul.bf16 %v2485_v3, %v6830_v32  ;;  %v2324_v53 = vadd.bf16 1065369472, %v5648_v7  ;;  %v6981_v29 = vpack.c.bf16 %v1531_v36, %v1527_v45  ;;  %v1535_v2 = vadd.f32 %v1534_v41, %v6837_v42  ;;  %v1627_v56 = vpop.f32.mrb[20].mxu1 }
 0x2c7   : > { %8723 = vst [vmem:[#allocation31_spill] sm:$0xff] %v6972_v33  ;;  %v5652_v27 = vpop.eup %5651  ;;  %5669 = vrcp.bf16 %v2382_v51  ;;  %v2383_v43 = vadd.bf16 1065369472, %v5650_v18  ;;  %v1536_v34 = vpop.f32.mrb[45].mxu0  ;;  %v6984_v32 = vpack.c.bf16 %v1624_v59, %v1620_v23  ;;  %v1628_v11 = vadd.f32 %v1627_v56, %v6874_v10 }
 0x2c8   : > { %8724 = vst [vmem:[#allocation32_spill] sm:$0xff] %v6977_v30  ;;  %v5654_v40 = vpop.eup %5653  ;;  %5671 = vrcp.bf16 %v2324_v53  ;;  %v2325_v8 = vadd.bf16 1065369472, %v5652_v27  ;;  %v1629_v62 = vpop.f32.mrb[21].mxu1  ;;  %v4978_v7 = vmul.bf16 3216621497, %v6981_v29  ;;  %v1537_v45 = vadd.f32 %v1536_v34, %v6867_v6 }
 0x2c9   : > { %v1538_v44 = vpop.f32.mrb[46].mxu0  ;;  %v5656_v17 = vpop.eup %5655  ;;  %v2463_v3 = vmul.bf16 1065369472, %v5654_v40  ;;  %5673 = vrcp.bf16 %v2383_v43  ;;  %v4960_v53 = vmul.bf16 3216621497, %v6984_v32  ;;  %v1630_v23 = vadd.f32 %v1629_v62, %v6880_v50 }
 0x2ca   : > { %v1631_v51 = vpop.f32.mrb[22].mxu1  ;;  %v1540_v36 = vpop.f32.mrb[47].mxu0  ;;  %v2503_v41 = vmul.bf16 1065369472, %v5656_v17  ;;  %5675 = vrcp.bf16 %v2325_v8  ;;  %v1539_v43 = vadd.f32 %v1538_v44, %v6837_v42 }
 0x2cb   : > { %v5658_v18 = vpop.eup %5657  ;;  %v1633_v59 = vpop.f32.mrb[23].mxu1  ;;  %v6992_v56 = vmul.bf16 %v2463_v3, %v6858_v0  ;;  %5677 = vpow.bf16 %v4977_v24  ;;  %v1632_v8 = vadd.f32 %v1631_v51, %v6874_v10 }
 0x2cc   : > { %v5660_v27 = vpop.eup %5659  ;;  %v2465_v40 = vmul.bf16 1065369472, %v5658_v18  ;;  %v6996_v34 = vmul.bf16 %v2503_v41, %v6861_v4  ;;  %5679 = vpow.bf16 %v4959_v28  ;;  %v7002_v0 = vpack.c.bf16 %v1539_v43, %v1535_v2 }
 0x2cd   : > { %8725 = vst [vmem:[#allocation33_spill] sm:$0xff] %v6992_v56  ;;  %v5662_v49 = vpop.eup %5661  ;;  %v2505_v20 = vmul.bf16 1065369472, %v5660_v27  ;;  %5681 = vpow.bf16 %v4978_v7  ;;  %v7007_v4 = vpack.c.bf16 %v1632_v8, %v1628_v11  ;;  %v1544_v18 = vpop.f32.mrb[48].mxu0 }
 0x2ce   : > { %8726 = vst [vmem:[#allocation34_spill] sm:$0xff] %v6996_v34  ;;  %v5664_v17 = vpop.eup %5663  ;;  %v7000_v62 = vmul.bf16 %v2465_v40, %v6863_v5  ;;  %v2392_v47 = vadd.bf16 1065369472, %v5662_v49  ;;  %5683 = vpow.bf16 %v4960_v53  ;;  %v4987_v41 = vmul.bf16 3216621497, %v7002_v0  ;;  %v1637_v49 = vpop.f32.mrb[24].mxu1 }
 0x2cf   : > { %v5666_v3 = vpop.eup %5665  ;;  %v7005_v24 = vmul.bf16 %v2505_v20, %v6870_v9  ;;  %v2334_v44 = vadd.bf16 1065369472, %v5664_v17  ;;  %v1541_v5 = vadd.f32 %v1540_v36, %v6867_v6  ;;  %v1546_v7 = vpop.f32.mrb[49].mxu0  ;;  %v4969_v27 = vmul.bf16 3216621497, %v7007_v4 }
 0x2d0   : > { %8727 = vst [vmem:[#allocation35_spill] sm:$0xff] %v7000_v62  ;;  %v5668_v28 = vpop.eup %5667  ;;  %5685 = vrcp.bf16 %v2392_v47  ;;  %v2393_v51 = vadd.bf16 1065369472, %v5666_v3  ;;  %v1634_v9 = vadd.f32 %v1633_v59, %v6880_v50  ;;  %v1639_v20 = vpop.f32.mrb[25].mxu1  ;;  %v1545_v47 = vadd.f32 %v1544_v18, %v6837_v42 }
 0x2d1   : > { %8728 = vst [vmem:[#allocation36_spill] sm:$0xff] %v7005_v24  ;;  %5687 = vrcp.bf16 %v2334_v44  ;;  %v2335_v2 = vadd.bf16 1065369472, %v5668_v28  ;;  %v1548_v53 = vpop.f32.mrb[50].mxu0  ;;  %v7013_v11 = vpack.c.bf16 %v1541_v5, %v1537_v45  ;;  %v1638_v40 = vadd.f32 %v1637_v49, %v6874_v10  ;;  %v1641_v43 = vpop.f32.mrb[26].mxu1 }
 0x2d2   : > { %5689 = vrcp.bf16 %v2393_v51  ;;  %v1550_v8 = vpop.f32.mrb[51].mxu0  ;;  %v5670_v36 = vpop.eup %5669  ;;  %v7017_v17 = vpack.c.bf16 %v1634_v9, %v1630_v23  ;;  %v1547_v3 = vadd.f32 %v1546_v7, %v6867_v6  ;;  %v1640_v44 = vadd.f32 %v1639_v20, %v6880_v50 }
 0x2d3   : > { %5691 = vrcp.bf16 %v2335_v2  ;;  %v1643_v59 = vpop.f32.mrb[27].mxu1  ;;  %v5672_v28 = vpop.eup %5671  ;;  %v2523_v48 = vmul.bf16 1065369472, %v5670_v36  ;;  %v4988_v45 = vmul.bf16 3216621497, %v7013_v11  ;;  %v1549_v18 = vadd.f32 %v1548_v53, %v6837_v42 }
 0x2d4   : > { %5693 = vpow.bf16 %v4987_v41  ;;  %v5674_v51 = vpop.eup %5673  ;;  %v2407_v5 = vmul.bf16 1065369472, %v5672_v28  ;;  %v4970_v49 = vmul.bf16 3216621497, %v7017_v17  ;;  %v1642_v23 = vadd.f32 %v1641_v43, %v6874_v10 }
 0x2d5   : > { %5695 = vpow.bf16 %v4969_v27  ;;  %v5676_v2 = vpop.eup %5675  ;;  %v7026_v7 = vmul.bf16 %v2523_v48, %v6906_v61  ;;  %v2525_v9 = vmul.bf16 1065369472, %v5674_v51  ;;  %v7028_v20 = vpack.c.bf16 %v1549_v18, %v1545_v47  ;;  %v1554_v27 = vpop.f32.mrb[52].mxu0 }
 0x2d6   : > { %5697 = vpow.bf16 %v4988_v45  ;;  %v5678_v41 = vpop.eup %5677  ;;  %v7031_v36 = vmul.bf16 %v2407_v5, %v6900_v37  ;;  %v2409_v53 = vmul.bf16 1065369472, %v5676_v2  ;;  %v7033_v28 = vpack.c.bf16 %v1642_v23, %v1638_v40  ;;  %v1647_v47 = vpop.f32.mrb[28].mxu1 }
 0x2d7   : > { %8729 = vst [vmem:[#allocation37_spill] sm:$0xff] %v7026_v7  ;;  %5699 = vpow.bf16 %v4970_v49  ;;  %v5680_v16 = vpop.eup %5679  ;;  %v7036_v43 = vmul.bf16 %v2525_v9, %v6913_v12  ;;  %v2344_v54 = vadd.bf16 1065369472, %v5678_v41  ;;  %v4997_v48 = vmul.bf16 3216621497, %v7028_v20  ;;  %v1556_v45 = vpop.f32.mrb[53].mxu0 }
 0x2d8   : > { %8730 = vst [vmem:[#allocation38_spill] sm:$0xff] %v7031_v36  ;;  %v1551_v61 = vadd.f32 %v1550_v8, %v6867_v6  ;;  %v5682_v18 = vpop.eup %5681  ;;  %v7041_v37 = vmul.bf16 %v2409_v53, %v6908_v1  ;;  %v2326_v51 = vadd.bf16 1065369472, %v5680_v16  ;;  %v4979_v40 = vmul.bf16 3216621497, %v7033_v28  ;;  %v1649_v49 = vpop.f32.mrb[29].mxu1 }
 0x2d9   : > { %8731 = vst [vmem:[#allocation39_spill] sm:$0xff] %v7036_v43  ;;  %v1644_v5 = vadd.f32 %v1643_v59, %v6880_v50  ;;  %v1558_v23 = vpop.f32.mrb[54].mxu0  ;;  %v5684_v12 = vpop.eup %5683  ;;  %5701 = vrcp.bf16 %v2344_v54  ;;  %v2345_v2 = vadd.bf16 1065369472, %v5682_v18  ;;  %v1555_v8 = vadd.f32 %v1554_v27, %v6837_v42 }
 0x2da   : > { %8732 = vst [vmem:[#allocation40_spill] sm:$0xff] %v7041_v37  ;;  %v7045_v9 = vpack.c.bf16 %v1551_v61, %v1547_v3  ;;  %v1651_v41 = vpop.f32.mrb[30].mxu1  ;;  %v1560_v13 = vpop.f32.mrb[55].mxu0  ;;  %5703 = vrcp.bf16 %v2326_v51  ;;  %v2327_v1 = vadd.bf16 1065369472, %v5684_v12  ;;  %v1648_v16 = vadd.f32 %v1647_v47, %v6874_v10 }
 0x2db   : > { %v5686_v35 = vpop.eup %5685  ;;  %v7048_v53 = vpack.c.bf16 %v1644_v5, %v1640_v44  ;;  %v1653_v38 = vpop.f32.mrb[31].mxu1  ;;  %5705 = vrcp.bf16 %v2345_v2  ;;  %v1557_v3 = vadd.f32 %v1556_v45, %v6867_v6  ;;  %v1650_v51 = vadd.f32 %v1649_v49, %v6880_v50 }
 0x2dc   : > { %v5688_v59 = vpop.eup %5687  ;;  %v2543_v43 = vmul.bf16 1065369472, %v5686_v35  ;;  %v4998_v54 = vmul.bf16 3216621497, %v7045_v9  ;;  %5707 = vrcp.bf16 %v2327_v1  ;;  %v1559_v35 = vadd.f32 %v1558_v23, %v6837_v42 }
 0x2dd   : > { %v5690_v61 = vpop.eup %5689  ;;  %v2427_v18 = vmul.bf16 1065369472, %v5688_v59  ;;  %v4980_v27 = vmul.bf16 3216621497, %v7048_v53  ;;  %5709 = vpow.bf16 %v4997_v48  ;;  %v1652_v1 = vadd.f32 %v1651_v41, %v6874_v10  ;;  %v1564_v59 = vpop.f32.mrb[56].mxu0 }
 0x2de   : > { %v5692_v12 = vpop.eup %5691  ;;  %v7056_v44 = vmul.bf16 %v2543_v43, %v6942_v52  ;;  %v2545_v47 = vmul.bf16 1065369472, %v5690_v61  ;;  %5711 = vpow.bf16 %v4979_v40  ;;  %v7066_v52 = vpack.c.bf16 %v1559_v35, %v1555_v8  ;;  %v1657_v43 = vpop.f32.mrb[32].mxu1 }
 0x2df   : > { %v5694_v5 = vpop.eup %5693  ;;  %v7060_v2 = vmul.bf16 %v2427_v18, %v6944_v21  ;;  %v2429_v45 = vmul.bf16 1065369472, %v5692_v12  ;;  %5713 = vpow.bf16 %v4998_v54  ;;  %v1566_v48 = vpop.f32.mrb[57].mxu0  ;;  %v7071_v40 = vpack.c.bf16 %v1652_v1, %v1648_v16 }
 0x2e0   : > { %8733 = vst [vmem:[#allocation41_spill] sm:$0xff] %v7056_v44  ;;  %v5696_v37 = vpop.eup %5695  ;;  %v7064_v49 = vmul.bf16 %v2545_v47, %v6946_v26  ;;  %v2354_v24 = vadd.bf16 1065369472, %v5694_v5  ;;  %5715 = vpow.bf16 %v4980_v27  ;;  %v1659_v41 = vpop.f32.mrb[33].mxu1  ;;  %v5007_v47 = vmul.bf16 3216621497, %v7066_v52 }
 0x2e1   : > { %8734 = vst [vmem:[#allocation42_spill] sm:$0xff] %v7060_v2  ;;  %v5698_v23 = vpop.eup %5697  ;;  %v7069_v61 = vmul.bf16 %v2429_v45, %v6953_v14  ;;  %v2336_v21 = vadd.bf16 1065369472, %v5696_v37  ;;  %v1568_v18 = vpop.f32.mrb[58].mxu0  ;;  %v1561_v8 = vadd.f32 %v1560_v13, %v6867_v6  ;;  %v4989_v14 = vmul.bf16 3216621497, %v7071_v40 }
 0x2e2   : > { %8735 = vst [vmem:[#allocation43_spill] sm:$0xff] %v7064_v49  ;;  %v5700_v12 = vpop.eup %5699  ;;  %5717 = vrcp.bf16 %v2354_v24  ;;  %v2355_v26 = vadd.bf16 1065369472, %v5698_v23  ;;  %v1661_v54 = vpop.f32.mrb[34].mxu1  ;;  %v1654_v37 = vadd.f32 %v1653_v38, %v6880_v50  ;;  %v1565_v45 = vadd.f32 %v1564_v59, %v6837_v42 }
 0x2e3   : > { %8736 = vst [vmem:[#allocation44_spill] sm:$0xff] %v7069_v61  ;;  %v1570_v35 = vpop.f32.mrb[59].mxu0  ;;  %5719 = vrcp.bf16 %v2336_v21  ;;  %v2337_v5 = vadd.bf16 1065369472, %v5700_v12  ;;  %v1663_v27 = vpop.f32.mrb[35].mxu1  ;;  %v7077_v16 = vpack.c.bf16 %v1561_v8, %v1557_v3  ;;  %v1658_v24 = vadd.f32 %v1657_v43, %v6874_v10 }
 0x2e4   : > { %5721 = vrcp.bf16 %v2355_v26  ;;  %v5702_v1 = vpop.eup %5701  ;;  %v7081_v23 = vpack.c.bf16 %v1654_v37, %v1650_v51  ;;  %v1567_v13 = vadd.f32 %v1566_v48, %v6867_v6  ;;  %v1660_v21 = vadd.f32 %v1659_v41, %v6880_v50 }
 0x2e5   : > { %5723 = vrcp.bf16 %v2337_v5  ;;  %v5704_v12 = vpop.eup %5703  ;;  %v2447_v49 = vmul.bf16 1065369472, %v5702_v1  ;;  %v5008_v38 = vmul.bf16 3216621497, %v7077_v16  ;;  %v1569_v3 = vadd.f32 %v1568_v18, %v6837_v42  ;;  %v1574_v51 = vpop.f32.mrb[60].mxu0 }
 0x2e6   : > { %5725 = vpow.bf16 %v5007_v47  ;;  %v5706_v26 = vpop.eup %5705  ;;  %v2411_v8 = vmul.bf16 1065369472, %v5704_v12  ;;  %v4990_v59 = vmul.bf16 3216621497, %v7081_v23  ;;  %v1662_v43 = vadd.f32 %v1661_v54, %v6874_v10  ;;  %v1667_v47 = vpop.f32.mrb[36].mxu1 }
 0x2e7   : > { %5727 = vpow.bf16 %v4989_v14  ;;  %v5708_v5 = vpop.eup %5707  ;;  %v7090_v48 = vmul.bf16 %v2447_v49, %v6964_v55  ;;  %v2449_v41 = vmul.bf16 1065369472, %v5706_v26  ;;  %v7092_v37 = vpack.c.bf16 %v1569_v3, %v1565_v45  ;;  %v1576_v1 = vpop.f32.mrb[61].mxu0 }
 0x2e8   : > { %5729 = vpow.bf16 %v5008_v38  ;;  %v5710_v61 = vpop.eup %5709  ;;  %v7095_v18 = vmul.bf16 %v2411_v8, %v6969_v63  ;;  %v2413_v14 = vmul.bf16 1065369472, %v5708_v5  ;;  %v7097_v12 = vpack.c.bf16 %v1662_v43, %v1658_v24  ;;  %v1669_v54 = vpop.f32.mrb[37].mxu1 }
 0x2e9   : > { %8737 = vst [vmem:[#allocation45_spill] sm:$0xff] %v7090_v48  ;;  %5731 = vpow.bf16 %v4990_v59  ;;  %v1578_v30 = vpop.f32.mrb[62].mxu0  ;;  %v5712_v44 = vpop.eup %5711  ;;  %v7100_v55 = vmul.bf16 %v2449_v41, %v6981_v29  ;;  %v2364_v49 = vadd.bf16 1065369472, %v5710_v61  ;;  %v5017_v45 = vmul.bf16 3216621497, %v7092_v37 }
 0x2ea   : > { %8738 = vst [vmem:[#allocation46_spill] sm:$0xff] %v7095_v18  ;;  %v1571_v38 = vadd.f32 %v1570_v35, %v6867_v6  ;;  %v1671_v3 = vpop.f32.mrb[38].mxu1  ;;  %v1580_v26 = vpop.f32.mrb[63].mxu0  ;;  %v7105_v63 = vmul.bf16 %v2413_v14, %v6984_v32  ;;  %v2346_v8 = vadd.bf16 1065369472, %v5712_v44  ;;  %v1664_v59 = vadd.f32 %v1663_v27, %v6880_v50 }
 0x2eb   : > { %8739 = vst [vmem:[#allocation47_spill] sm:$0xff] %v7100_v55  ;;  %v5714_v48 = vpop.eup %5713  ;;  %v4999_v24 = vmul.bf16 3216621497, %v7097_v12  ;;  %v1673_v43 = vpop.f32.mrb[39].mxu1  ;;  %5733 = vrcp.bf16 %v2364_v49  ;;  %v1575_v41 = vadd.f32 %v1574_v51, %v6837_v42  ;;  %v1668_v32 = vadd.f32 %v1667_v47, %v6874_v10 }
 0x2ec   : > { %8740 = vst [vmem:[#allocation48_spill] sm:$0xff] %v7105_v63  ;;  %v5716_v5 = vpop.eup %5715  ;;  %v2365_v29 = vadd.bf16 1065369472, %v5714_v48  ;;  %v7109_v61 = vpack.c.bf16 %v1571_v38, %v1567_v13  ;;  %5735 = vrcp.bf16 %v2346_v8  ;;  %v7112_v55 = vpack.c.bf16 %v1664_v59, %v1660_v21 }
 0x2ed   : > { %v5718_v35 = vpop.eup %5717  ;;  %v2347_v18 = vadd.bf16 1065369472, %v5716_v5  ;;  %v1577_v63 = vadd.f32 %v1576_v1, %v6867_v6  ;;  %v1670_v51 = vadd.f32 %v1669_v54, %v6880_v50  ;;  %v1730_v38 = vpop.f32.mrb[64].mxu0  ;;  %v1579_v59 = vadd.f32 %v1578_v30, %v6837_v42 }
 0x2ee   : > { %v5720_v44 = vpop.eup %5719  ;;  %v2467_v14 = vmul.bf16 1065369472, %v5718_v35  ;;  %5737 = vrcp.bf16 %v2365_v29  ;;  %v5018_v27 = vmul.bf16 3216621497, %v7109_v61  ;;  %v5000_v13 = vmul.bf16 3216621497, %v7112_v55 }
 0x2ef   : > { %v5722_v49 = vpop.eup %5721  ;;  %v2431_v48 = vmul.bf16 1065369472, %v5720_v44  ;;  %5739 = vrcp.bf16 %v2347_v18  ;;  %v1677_v5 = vpop.f32.mrb[40].mxu1  ;;  %v1672_v44 = vadd.f32 %v1671_v3, %v6874_v10 }
 0x2f0   : > { %v5724_v8 = vpop.eup %5723  ;;  %v7120_v21 = vmul.bf16 %v2467_v14, %v7002_v0  ;;  %v2469_v47 = vmul.bf16 1065369472, %v5722_v49  ;;  %5741 = vpow.bf16 %v5017_v45  ;;  %v1732_v29 = vpop.f32.mrb[65].mxu0  ;;  %v7130_v45 = vpack.c.bf16 %v1579_v59, %v1575_v41 }
 0x2f1   : > { %v5726_v35 = vpop.eup %5725  ;;  %v7124_v1 = vmul.bf16 %v2431_v48, %v7007_v4  ;;  %v2433_v18 = vmul.bf16 1065369472, %v5724_v8  ;;  %5743 = vpow.bf16 %v4999_v24  ;;  %v1679_v54 = vpop.f32.mrb[41].mxu1  ;;  %v7135_v24 = vpack.c.bf16 %v1672_v44, %v1668_v32 }
 0x2f2   : > { %8741 = vst [vmem:[#allocation49_spill] sm:$0xff] %v7120_v21  ;;  %v1734_v62 = vpop.f32.mrb[66].mxu0  ;;  %v5728_v7 = vpop.eup %5727  ;;  %v7128_v0 = vmul.bf16 %v2469_v47, %v7013_v11  ;;  %v2374_v14 = vadd.bf16 1065369472, %v5726_v35  ;;  %5745 = vpow.bf16 %v5018_v27  ;;  %v5027_v11 = vmul.bf16 3216621497, %v7130_v45 }
 0x2f3   : > { %8742 = vst [vmem:[#allocation50_spill] sm:$0xff] %v7124_v1  ;;  %v1681_v42 = vpop.f32.mrb[42].mxu1  ;;  %v1736_v30 = vpop.f32.mrb[67].mxu0  ;;  %v7133_v4 = vmul.bf16 %v2433_v18, %v7017_v17  ;;  %v2356_v48 = vadd.bf16 1065369472, %v5728_v7  ;;  %5747 = vpow.bf16 %v5000_v13  ;;  %v1581_v27 = vadd.f32 %v1580_v26, %v6867_v6 }
 0x2f4   : > { %8743 = vst [vmem:[#allocation51_spill] sm:$0xff] %v7128_v0  ;;  %v5730_v49 = vpop.eup %5729  ;;  %v1683_v3 = vpop.f32.mrb[43].mxu1  ;;  %5749 = vrcp.bf16 %v2374_v14  ;;  %v5009_v47 = vmul.bf16 3216621497, %v7135_v24  ;;  %v1674_v59 = vadd.f32 %v1673_v43, %v6880_v50  ;;  %v1678_v7 = vadd.f32 %v1677_v5, %v6874_v10 }
 0x2f5   : > { %8744 = vst [vmem:[#allocation52_spill] sm:$0xff] %v7133_v4  ;;  %v5732_v8 = vpop.eup %5731  ;;  %v2375_v1 = vadd.bf16 1065369472, %v5730_v49  ;;  %5751 = vrcp.bf16 %v2356_v48  ;;  %v7141_v17 = vpack.c.bf16 %v1581_v27, %v1577_v63  ;;  %v1731_v32 = vadd.f32 %v1730_v38, %v6885_v19  ;;  %v1740_v26 = vpop.f32.mrb[68].mxu0 }
 0x2f6   : > { %v2357_v41 = vadd.bf16 1065369472, %v5732_v8  ;;  %v5734_v13 = vpop.eup %5733  ;;  %v7145_v35 = vpack.c.bf16 %v1674_v59, %v1670_v51  ;;  %v1680_v18 = vadd.f32 %v1679_v54, %v6880_v50  ;;  %v1733_v6 = vadd.f32 %v1732_v29, %v6917_v15  ;;  %v1742_v5 = vpop.f32.mrb[69].mxu0 }
 0x2f7   : > { %5753 = vrcp.bf16 %v2375_v1  ;;  %v5736_v44 = vpop.eup %5735  ;;  %v2487_v14 = vmul.bf16 1065369472, %v5734_v13  ;;  %v5028_v43 = vmul.bf16 3216621497, %v7141_v17  ;;  %v1682_v63 = vadd.f32 %v1681_v42, %v6874_v10  ;;  %v1687_v1 = vpop.f32.mrb[44].mxu1 }
 0x2f8   : > { %5755 = vrcp.bf16 %v2357_v41  ;;  %v2451_v38 = vmul.bf16 1065369472, %v5736_v44  ;;  %v5010_v51 = vmul.bf16 3216621497, %v7145_v35  ;;  %v1735_v48 = vadd.f32 %v1734_v62, %v6885_v19  ;;  %v1689_v54 = vpop.f32.mrb[45].mxu1  ;;  %v1744_v8 = vpop.f32.mrb[70].mxu0 }
 0x2f9   : > { %5757 = vpow.bf16 %v5027_v11  ;;  %v5738_v49 = vpop.eup %5737  ;;  %v7154_v27 = vmul.bf16 %v2487_v14, %v7028_v20  ;;  %v7156_v41 = vpack.c.bf16 %v1682_v63, %v1678_v7  ;;  %v1691_v42 = vpop.f32.mrb[46].mxu1 }
 0x2fa   : > { %5759 = vpow.bf16 %v5009_v47  ;;  %v5740_v29 = vpop.eup %5739  ;;  %v2489_v11 = vmul.bf16 1065369472, %v5738_v49  ;;  %v7158_v59 = vpop.f32.mrb[71].mxu0  ;;  %v7161_v47 = vmul.bf16 %v2451_v38, %v7033_v28  ;;  %v7163_v62 = vpack.c.bf16 %v1735_v48, %v1731_v32 }
 0x2fb   : > { %8745 = vst [vmem:[#allocation53_spill] sm:$0xff] %v7154_v27  ;;  %5761 = vpow.bf16 %v5028_v43  ;;  %v5742_v13 = vpop.eup %5741  ;;  %v2453_v44 = vmul.bf16 1065369472, %v5740_v29  ;;  %v7165_v4 = vpop.f32.mrb[47].mxu1  ;;  %v5019_v7 = vmul.bf16 3216621497, %v7156_v41  ;;  %v1684_v43 = vadd.f32 %v1683_v3, %v6880_v50 }
 0x2fc   : > { %8746 = vst [vmem:[#allocation54_spill] sm:$0xff] %v7161_v47  ;;  %5763 = vpow.bf16 %v5010_v51  ;;  %v5744_v0 = vpop.eup %5743  ;;  %v7168_v20 = vmul.bf16 %v2489_v11, %v7045_v9  ;;  %v2384_v14 = vadd.bf16 1065369472, %v5742_v13  ;;  %v4961_v38 = vmul.bf16 3216621497, %v7163_v62 }
 0x2fd   : > { %v5746_v63 = vpop.eup %5745  ;;  %v7173_v49 = vmul.bf16 %v2453_v44, %v7048_v53  ;;  %v2366_v28 = vadd.bf16 1065369472, %v5744_v0  ;;  %v1737_v32 = vadd.f32 %v1736_v30, %v6917_v15  ;;  %v7177_v29 = vpack.c.bf16 %v1684_v43, %v1680_v18  ;;  %v1750_v44 = vpop.f32.mrb[72].mxu0 }
 0x2fe   : > { %8747 = vst [vmem:[#allocation55_spill] sm:$0xff] %v7168_v20  ;;  %v5748_v51 = vpop.eup %5747  ;;  %5765 = vrcp.bf16 %v2384_v14  ;;  %v2385_v48 = vadd.bf16 1065369472, %v5746_v63  ;;  %v1688_v9 = vadd.f32 %v1687_v1, %v6874_v10  ;;  %v1741_v53 = vadd.f32 %v1740_v26, %v6885_v19  ;;  %v1843_v63 = vpop.f32.mrb[48].mxu1 }
 0x2ff   : > { %8748 = vst [vmem:[#allocation56_spill] sm:$0xff] %v7173_v49  ;;  %v5750_v11 = vpop.eup %5749  ;;  %5767 = vrcp.bf16 %v2366_v28  ;;  %v2367_v13 = vadd.bf16 1065369472, %v5748_v51  ;;  %v7180_v3 = vpack.c.bf16 %v1737_v32, %v1733_v6  ;;  %v5020_v30 = vmul.bf16 3216621497, %v7177_v29  ;;  %v1752_v18 = vpop.f32.mrb[73].mxu0 }
 0x300   : > { %v5752_v0 = vpop.eup %5751  ;;  %v2507_v49 = vmul.bf16 1065369472, %v5750_v11  ;;  %5769 = vrcp.bf16 %v2385_v48  ;;  %v1690_v14 = vadd.f32 %v1689_v54, %v6880_v50  ;;  %v1743_v6 = vadd.f32 %v1742_v5, %v6917_v15  ;;  %v1845_v28 = vpop.f32.mrb[49].mxu1 }
 0x301   : > { %v2471_v47 = vmul.bf16 1065369472, %v5752_v0  ;;  %5771 = vrcp.bf16 %v2367_v13  ;;  %v4962_v1 = vmul.bf16 3216621497, %v7180_v3  ;;  %v1754_v32 = vpop.f32.mrb[74].mxu0  ;;  %v1692_v11 = vadd.f32 %v1691_v42, %v6874_v10  ;;  %v1847_v54 = vpop.f32.mrb[50].mxu1 }
 0x302   : > { %v5754_v43 = vpop.eup %5753  ;;  %v7188_v51 = vmul.bf16 %v2507_v49, %v7066_v52  ;;  %5773 = vpow.bf16 %v5019_v7  ;;  %v7191_v20 = vpop.f32.mrb[75].mxu0  ;;  %v1745_v5 = vadd.f32 %v1744_v8, %v6885_v19 }
 0x303   : > { %v5756_v26 = vpop.eup %5755  ;;  %v2509_v48 = vmul.bf16 1065369472, %v5754_v43  ;;  %v7194_v13 = vmul.bf16 %v2471_v47, %v7071_v40  ;;  %5775 = vpow.bf16 %v4961_v38  ;;  %v7197_v21 = vpop.f32.mrb[51].mxu1  ;;  %v7202_v10 = vpack.c.bf16 %v1692_v11, %v1688_v9 }
 0x304   : > { %8749 = vst [vmem:[#allocation57_spill] sm:$0xff] %v7188_v51  ;;  %v5758_v27 = vpop.eup %5757  ;;  %v2473_v0 = vmul.bf16 1065369472, %v5756_v26  ;;  %5777 = vpow.bf16 %v5020_v30  ;;  %v7207_v47 = vpack.c.bf16 %v1745_v5, %v1741_v53  ;;  %v1751_v53 = vadd.f32 %v1750_v44, %v6885_v19 }
 0x305   : > { %8750 = vst [vmem:[#allocation58_spill] sm:$0xff] %v7194_v13  ;;  %v5760_v2 = vpop.eup %5759  ;;  %v7200_v52 = vmul.bf16 %v2509_v48, %v7077_v16  ;;  %v2394_v7 = vadd.bf16 1065369472, %v5758_v27  ;;  %5779 = vpow.bf16 %v4962_v1  ;;  %v5029_v43 = vmul.bf16 3216621497, %v7202_v10  ;;  %v1760_v30 = vpop.f32.mrb[76].mxu0 }
 0x306   : > { %v5762_v42 = vpop.eup %5761  ;;  %v7205_v49 = vmul.bf16 %v2473_v0, %v7081_v23  ;;  %v2376_v40 = vadd.bf16 1065369472, %v5760_v2  ;;  %v1694_v16 = vadd.f32 %v7165_v4, %v6880_v50  ;;  %v4971_v9 = vmul.bf16 3216621497, %v7207_v47  ;;  %v1853_v26 = vpop.f32.mrb[52].mxu1 }
 0x307   : > { %8751 = vst [vmem:[#allocation59_spill] sm:$0xff] %v7200_v52  ;;  %v5764_v38 = vpop.eup %5763  ;;  %5781 = vrcp.bf16 %v2394_v7  ;;  %v2395_v8 = vadd.bf16 1065369472, %v5762_v42  ;;  %v1747_v23 = vadd.f32 %v7158_v59, %v6917_v15  ;;  %v1844_v1 = vadd.f32 %v1843_v63, %v6923_v22  ;;  %v1762_v48 = vpop.f32.mrb[77].mxu0 }
 0x308   : > { %8752 = vst [vmem:[#allocation60_spill] sm:$0xff] %v7205_v49  ;;  %5783 = vrcp.bf16 %v2376_v40  ;;  %v2377_v27 = vadd.bf16 1065369472, %v5764_v38  ;;  %v7215_v2 = vpack.c.bf16 %v1694_v16, %v1690_v14  ;;  %v1753_v4 = vadd.f32 %v1752_v18, %v6917_v15  ;;  %v1855_v5 = vpop.f32.mrb[53].mxu1  ;;  %v7223_v59 = vpop.f32.mrb[78].mxu0 }
 0x309   : > { %5785 = vrcp.bf16 %v2395_v8  ;;  %v5766_v11 = vpop.eup %5765  ;;  %v7219_v50 = vpack.c.bf16 %v1747_v23, %v1743_v6  ;;  %v1846_v0 = vadd.f32 %v1845_v28, %v6926_v25  ;;  %v1755_v63 = vadd.f32 %v1754_v32, %v6885_v19  ;;  %v7227_v42 = vpop.f32.mrb[54].mxu1 }
 0x30a   : > { %5787 = vrcp.bf16 %v2377_v27  ;;  %v5768_v7 = vpop.eup %5767  ;;  %v2527_v14 = vmul.bf16 1065369472, %v5766_v11  ;;  %v5030_v44 = vmul.bf16 3216621497, %v7215_v2  ;;  %v7229_v40 = vpop.f32.mrb[79].mxu0  ;;  %v1848_v28 = vadd.f32 %v1847_v54, %v6923_v22 }
 0x30b   : > { %5789 = vpow.bf16 %v5029_v43  ;;  %v5770_v6 = vpop.eup %5769  ;;  %v2491_v38 = vmul.bf16 1065369472, %v5768_v7  ;;  %v4972_v18 = vmul.bf16 3216621497, %v7219_v50  ;;  %v7233_v8 = vpop.f32.mrb[55].mxu1  ;;  %v7238_v32 = vpack.c.bf16 %v1755_v63, %v1751_v53 }
 0x30c   : > { %5791 = vpow.bf16 %v4971_v9  ;;  %v5772_v16 = vpop.eup %5771  ;;  %v7236_v43 = vmul.bf16 %v2527_v14, %v7092_v37  ;;  %v2529_v27 = vmul.bf16 1065369472, %v5770_v6  ;;  %v7243_v9 = vpack.c.bf16 %v1848_v28, %v1844_v1 }
 0x30d   : > { %5793 = vpow.bf16 %v5030_v44  ;;  %v5774_v23 = vpop.eup %5773  ;;  %v7241_v11 = vmul.bf16 %v2491_v38, %v7097_v12  ;;  %v2493_v7 = vmul.bf16 1065369472, %v5772_v16  ;;  %v4981_v37 = vmul.bf16 3216621497, %v7238_v32  ;;  %v7257_v6 = vpop.f32.mrb[80].mxu0 }
 0x30e   : > { %8753 = vst [vmem:[#allocation61_spill] sm:$0xff] %v7236_v43  ;;  %5795 = vpow.bf16 %v4972_v18  ;;  %v5776_v49 = vpop.eup %5775  ;;  %v7246_v54 = vmul.bf16 %v2529_v27, %v7109_v61  ;;  %v2386_v13 = vadd.bf16 1065369472, %v5774_v23  ;;  %v1757_v14 = vadd.f32 %v7191_v20, %v6917_v15  ;;  %v1863_v20 = vpop.f32.mrb[56].mxu1 }
 0x30f   : > { %8754 = vst [vmem:[#allocation62_spill] sm:$0xff] %v7241_v11  ;;  %v5778_v53 = vpop.eup %5777  ;;  %v7252_v44 = vmul.bf16 %v2493_v7, %v7112_v55  ;;  %v2328_v12 = vadd.bf16 1065369472, %v5776_v49  ;;  %v4963_v63 = vmul.bf16 3216621497, %v7243_v9  ;;  %v1850_v1 = vadd.f32 %v7197_v21, %v6926_v25  ;;  %v7262_v16 = vpop.f32.mrb[81].mxu0 }
 0x310   : > { %8755 = vst [vmem:[#allocation63_spill] sm:$0xff] %v7246_v54  ;;  %v5780_v61 = vpop.eup %5779  ;;  %5797 = vrcp.bf16 %v2386_v13  ;;  %v2387_v38 = vadd.bf16 1065369472, %v5778_v53  ;;  %v7259_v18 = vpack.c.bf16 %v1757_v14, %v1753_v4  ;;  %v1761_v28 = vadd.f32 %v1760_v30, %v6885_v19  ;;  %v1865_v21 = vpop.f32.mrb[57].mxu1 }
 0x311   : > { %8756 = vst [vmem:[#allocation64_spill] sm:$0xff] %v7252_v44  ;;  %5799 = vrcp.bf16 %v2328_v12  ;;  %v2329_v49 = vadd.bf16 1065369472, %v5780_v61  ;;  %v7264_v27 = vpack.c.bf16 %v1850_v1, %v1846_v0  ;;  %v1854_v23 = vadd.f32 %v1853_v26, %v6923_v22  ;;  %v7267_v7 = vpop.f32.mrb[82].mxu0  ;;  %v7271_v14 = vpop.f32.mrb[58].mxu1 }
 0x312   : > { %v5782_v55 = vpop.eup %5781  ;;  %5801 = vrcp.bf16 %v2387_v38  ;;  %v4982_v4 = vmul.bf16 3216621497, %v7259_v18  ;;  %v1763_v30 = vadd.f32 %v1762_v48, %v6917_v15  ;;  %v7273_v53 = vpop.f32.mrb[83].mxu0  ;;  %v1856_v26 = vadd.f32 %v1855_v5, %v6926_v25 }
 0x313   : > { %v5784_v44 = vpop.eup %5783  ;;  %v2547_v13 = vmul.bf16 1065369472, %v5782_v55  ;;  %5803 = vrcp.bf16 %v2329_v49  ;;  %v4964_v0 = vmul.bf16 3216621497, %v7264_v27  ;;  %v7277_v1 = vpop.f32.mrb[59].mxu1  ;;  %v1765_v48 = vadd.f32 %v7223_v59, %v6885_v19 }
 0x314   : > { %v5786_v12 = vpop.eup %5785  ;;  %v2511_v61 = vmul.bf16 1065369472, %v5784_v44  ;;  %5805 = vpow.bf16 %v4981_v37  ;;  %v1858_v5 = vadd.f32 %v7227_v42, %v6923_v22 }
 0x315   : > { %v5788_v11 = vpop.eup %5787  ;;  %v7280_v38 = vmul.bf16 %v2547_v13, %v7130_v45  ;;  %v2549_v55 = vmul.bf16 1065369472, %v5786_v12  ;;  %5807 = vpow.bf16 %v4963_v63  ;;  %v7292_v13 = vpack.c.bf16 %v1765_v48, %v1761_v28 }
 0x316   : > { %v5790_v54 = vpop.eup %5789  ;;  %v7285_v52 = vmul.bf16 %v2511_v61, %v7135_v24  ;;  %v2513_v44 = vmul.bf16 1065369472, %v5788_v11  ;;  %5809 = vpow.bf16 %v4982_v4  ;;  %v7297_v24 = vpack.c.bf16 %v1858_v5, %v1854_v23  ;;  %v7299_v11 = vpop.f32.mrb[84].mxu0 }
 0x317   : > { %8757 = vst [vmem:[#allocation65_spill] sm:$0xff] %v7280_v38  ;;  %v5792_v49 = vpop.eup %5791  ;;  %v7290_v43 = vmul.bf16 %v2549_v55, %v7141_v17  ;;  %v2396_v45 = vadd.bf16 1065369472, %v5790_v54  ;;  %5811 = vpow.bf16 %v4964_v0  ;;  %v4991_v17 = vmul.bf16 3216621497, %v7292_v13  ;;  %v7304_v28 = vpop.f32.mrb[60].mxu1 }
 0x318   : > { %8758 = vst [vmem:[#allocation66_spill] sm:$0xff] %v7285_v52  ;;  %v5794_v37 = vpop.eup %5793  ;;  %v7295_v59 = vmul.bf16 %v2513_v44, %v7145_v35  ;;  %v2338_v12 = vadd.bf16 1065369472, %v5792_v49  ;;  %v1767_v54 = vadd.f32 %v7229_v40, %v6917_v15  ;;  %v7306_v4 = vpop.f32.mrb[85].mxu0  ;;  %v4973_v61 = vmul.bf16 3216621497, %v7297_v24 }
 0x319   : > { %8759 = vst [vmem:[#allocation67_spill] sm:$0xff] %v7290_v43  ;;  %v5796_v63 = vpop.eup %5795  ;;  %5813 = vrcp.bf16 %v2396_v45  ;;  %v2397_v42 = vadd.bf16 1065369472, %v5794_v37  ;;  %v1860_v23 = vadd.f32 %v7233_v8, %v6926_v25  ;;  %v7311_v0 = vpop.f32.mrb[61].mxu1  ;;  %v1771_v40 = vadd.f32 %v7257_v6, %v6885_v19 }
 0x31a   : > { %8760 = vst [vmem:[#allocation68_spill] sm:$0xff] %v7295_v59  ;;  %5815 = vrcp.bf16 %v2338_v12  ;;  %v2339_v35 = vadd.bf16 1065369472, %v5796_v63  ;;  %v7313_v55 = vpop.f32.mrb[86].mxu0  ;;  %v7315_v48 = vpack.c.bf16 %v1767_v54, %v1763_v30  ;;  %v1864_v44 = vadd.f32 %v1863_v20, %v6923_v22  ;;  %v7320_v5 = vpop.f32.mrb[62].mxu1 }
 0x31b   : > { %5817 = vrcp.bf16 %v2397_v42  ;;  %v7322_v49 = vpop.f32.mrb[87].mxu0  ;;  %v5798_v45 = vpop.eup %5797  ;;  %v7324_v37 = vpack.c.bf16 %v1860_v23, %v1856_v26  ;;  %v1773_v8 = vadd.f32 %v7262_v16, %v6917_v15  ;;  %v1866_v12 = vadd.f32 %v1865_v21, %v6926_v25 }
 0x31c   : > { %5819 = vrcp.bf16 %v2339_v35  ;;  %v7329_v30 = vpop.f32.mrb[63].mxu1  ;;  %v5800_v63 = vpop.eup %5799  ;;  %v2531_v42 = vmul.bf16 1065369472, %v5798_v45  ;;  %v4992_v6 = vmul.bf16 3216621497, %v7315_v48  ;;  %v1775_v20 = vadd.f32 %v7267_v7, %v6885_v19 }
 0x31d   : > { %5821 = vpow.bf16 %v4991_v17  ;;  %v5802_v54 = vpop.eup %5801  ;;  %v2415_v59 = vmul.bf16 1065369472, %v5800_v63  ;;  %v4974_v26 = vmul.bf16 3216621497, %v7324_v37  ;;  %v1868_v16 = vadd.f32 %v7271_v14, %v6923_v22  ;;  %v7347_v63 = vpop.f32.mrb[88].mxu0 }
 0x31e   : > { %5823 = vpow.bf16 %v4973_v61  ;;  %v5804_v35 = vpop.eup %5803  ;;  %v7338_v21 = vmul.bf16 %v2531_v42, %v7156_v41  ;;  %v2533_v23 = vmul.bf16 1065369472, %v5802_v54  ;;  %v7340_v17 = vpack.c.bf16 %v1775_v20, %v1771_v40 }
 0x31f   : > { %5825 = vpow.bf16 %v4992_v6  ;;  %v5806_v45 = vpop.eup %5805  ;;  %v7343_v52 = vmul.bf16 %v2415_v59, %v7163_v62  ;;  %v2417_v7 = vmul.bf16 1065369472, %v5804_v35  ;;  %v7345_v61 = vpack.c.bf16 %v1868_v16, %v1864_v44  ;;  %v7355_v6 = vpop.f32.mrb[64].mxu1 }
 0x320   : > { %8761 = vst [vmem:[#allocation69_spill] sm:$0xff] %v7338_v21  ;;  %5827 = vpow.bf16 %v4974_v26  ;;  %v5808_v43 = vpop.eup %5807  ;;  %v7350_v14 = vmul.bf16 %v2533_v23, %v7177_v29  ;;  %v2348_v41 = vadd.bf16 1065369472, %v5806_v45  ;;  %v5001_v42 = vmul.bf16 3216621497, %v7340_v17  ;;  %v7357_v62 = vpop.f32.mrb[89].mxu0 }
 0x321   : > { %8762 = vst [vmem:[#allocation70_spill] sm:$0xff] %v7343_v52  ;;  %v1777_v40 = vadd.f32 %v7273_v53, %v6917_v15  ;;  %v5810_v59 = vpop.eup %5809  ;;  %v7360_v44 = vmul.bf16 %v2417_v7, %v7180_v3  ;;  %v2330_v20 = vadd.bf16 1065369472, %v5808_v43  ;;  %v4983_v54 = vmul.bf16 3216621497, %v7345_v61  ;;  %v7365_v26 = vpop.f32.mrb[65].mxu1 }
 0x322   : > { %8763 = vst [vmem:[#allocation71_spill] sm:$0xff] %v7350_v14  ;;  %v1870_v29 = vadd.f32 %v7277_v1, %v6926_v25  ;;  %v7367_v16 = vpop.f32.mrb[90].mxu0  ;;  %v5812_v35 = vpop.eup %5811  ;;  %5829 = vrcp.bf16 %v2348_v41  ;;  %v2349_v53 = vadd.bf16 1065369472, %v5810_v59  ;;  %v1781_v45 = vadd.f32 %v7299_v11, %v6885_v19 }
 0x323   : > { %8764 = vst [vmem:[#allocation72_spill] sm:$0xff] %v7360_v44  ;;  %v7369_v23 = vpack.c.bf16 %v1777_v40, %v1773_v8  ;;  %v7373_v3 = vpop.f32.mrb[66].mxu1  ;;  %v7375_v43 = vpop.f32.mrb[91].mxu0  ;;  %5831 = vrcp.bf16 %v2330_v20  ;;  %v2331_v14 = vadd.bf16 1065369472, %v5812_v35  ;;  %v1874_v44 = vadd.f32 %v7304_v28, %v6923_v22 }
 0x324   : > { %v5814_v7 = vpop.eup %5813  ;;  %v7377_v1 = vpack.c.bf16 %v1870_v29, %v1866_v12  ;;  %v7381_v21 = vpop.f32.mrb[67].mxu1  ;;  %5833 = vrcp.bf16 %v2349_v53  ;;  %v1783_v11 = vadd.f32 %v7306_v4, %v6917_v15  ;;  %v1876_v12 = vadd.f32 %v7311_v0, %v6926_v25 }
 0x325   : > { %v5816_v41 = vpop.eup %5815  ;;  %v2551_v8 = vmul.bf16 1065369472, %v5814_v7  ;;  %v5002_v40 = vmul.bf16 3216621497, %v7369_v23  ;;  %5835 = vrcp.bf16 %v2331_v14  ;;  %v1785_v53 = vadd.f32 %v7313_v55, %v6885_v19  ;;  %v7399_v38 = vpop.f32.mrb[92].mxu0 }
 0x326   : > { %v5818_v59 = vpop.eup %5817  ;;  %v2435_v52 = vmul.bf16 1065369472, %v5816_v41  ;;  %v4984_v20 = vmul.bf16 3216621497, %v7377_v1  ;;  %5837 = vpow.bf16 %v5001_v42  ;;  %v1878_v14 = vadd.f32 %v7320_v5, %v6923_v22  ;;  %v7406_v55 = vpop.f32.mrb[68].mxu1 }
 0x327   : > { %v5820_v29 = vpop.eup %5819  ;;  %v7390_v28 = vmul.bf16 %v2551_v8, %v7202_v10  ;;  %v2553_v35 = vmul.bf16 1065369472, %v5818_v59  ;;  %5839 = vpow.bf16 %v4983_v54  ;;  %v7404_v42 = vpack.c.bf16 %v1785_v53, %v1781_v45  ;;  %v7408_v59 = vpop.f32.mrb[93].mxu0 }
 0x328   : > { %v5822_v7 = vpop.eup %5821  ;;  %v7395_v4 = vmul.bf16 %v2435_v52, %v7207_v47  ;;  %v2437_v41 = vmul.bf16 1065369472, %v5820_v29  ;;  %5841 = vpow.bf16 %v5002_v40  ;;  %v7413_v5 = vpack.c.bf16 %v1878_v14, %v1874_v44  ;;  %v7415_v29 = vpop.f32.mrb[69].mxu1 }
 0x329   : > { %8765 = vst [vmem:[#allocation73_spill] sm:$0xff] %v7390_v28  ;;  %v5824_v0 = vpop.eup %5823  ;;  %v7402_v10 = vmul.bf16 %v2553_v35, %v7215_v2  ;;  %v2358_v8 = vadd.bf16 1065369472, %v5822_v7  ;;  %5843 = vpow.bf16 %v4984_v20  ;;  %v7417_v2 = vpop.f32.mrb[94].mxu0  ;;  %v5011_v40 = vmul.bf16 3216621497, %v7404_v42 }
 0x32a   : > { %v5826_v52 = vpop.eup %5825  ;;  %v7411_v47 = vmul.bf16 %v2437_v41, %v7219_v50  ;;  %v2340_v54 = vadd.bf16 1065369472, %v5824_v0  ;;  %v1787_v53 = vadd.f32 %v7322_v49, %v6917_v15  ;;  %v7422_v7 = vpop.f32.mrb[70].mxu1  ;;  %v4993_v44 = vmul.bf16 3216621497, %v7413_v5 }
 0x32b   : > { %8766 = vst [vmem:[#allocation74_spill] sm:$0xff] %v7402_v10  ;;  %v5828_v35 = vpop.eup %5827  ;;  %5845 = vrcp.bf16 %v2358_v8  ;;  %v2359_v45 = vadd.bf16 1065369472, %v5826_v52  ;;  %v7424_v50 = vpop.f32.mrb[95].mxu0  ;;  %v1880_v41 = vadd.f32 %v7329_v30, %v6926_v25  ;;  %v1791_v8 = vadd.f32 %v7347_v63, %v6885_v19 }
 0x32c   : > { %8767 = vst [vmem:[#allocation75_spill] sm:$0xff] %v7411_v47  ;;  %5847 = vrcp.bf16 %v2340_v54  ;;  %v2341_v20 = vadd.bf16 1065369472, %v5828_v35  ;;  %v7429_v14 = vpop.f32.mrb[71].mxu1  ;;  %v7431_v0 = vpack.c.bf16 %v1787_v53, %v1783_v11  ;;  %v1884_v49 = vadd.f32 %v7355_v6, %v6923_v22 }
 0x32d   : > { %5849 = vrcp.bf16 %v2359_v45  ;;  %v5830_v52 = vpop.eup %5829  ;;  %v7437_v54 = vpack.c.bf16 %v1880_v41, %v1876_v12  ;;  %v1793_v35 = vadd.f32 %v7357_v62, %v6917_v15  ;;  %v1886_v30 = vadd.f32 %v7365_v26, %v6926_v25 }
 0x32e   : > { %5851 = vrcp.bf16 %v2341_v20  ;;  %v5832_v10 = vpop.eup %5831  ;;  %v2455_v45 = vmul.bf16 1065369472, %v5830_v52  ;;  %v5012_v11 = vmul.bf16 3216621497, %v7431_v0  ;;  %v1795_v63 = vadd.f32 %v7367_v16, %v6885_v19  ;;  %v7454_v52 = vpop.f32.mrb[72].mxu1 }
 0x32f   : > { %5853 = vpow.bf16 %v5011_v40  ;;  %v5834_v53 = vpop.eup %5833  ;;  %v2419_v6 = vmul.bf16 1065369472, %v5832_v10  ;;  %v4994_v12 = vmul.bf16 3216621497, %v7437_v54  ;;  %v1888_v20 = vadd.f32 %v7373_v3, %v6923_v22  ;;  %v7461_v28 = vpop.f32.mrb[73].mxu1 }
 0x330   : > { %5855 = vpow.bf16 %v4993_v44  ;;  %v5836_v62 = vpop.eup %5835  ;;  %v7450_v41 = vmul.bf16 %v2455_v45, %v7238_v32  ;;  %v2457_v26 = vmul.bf16 1065369472, %v5834_v53  ;;  %v7452_v40 = vpack.c.bf16 %v1795_v63, %v1791_v8  ;;  %v7469_v63 = vpop.f32.mrb[74].mxu1 }
 0x331   : > { %5857 = vpow.bf16 %v5012_v11  ;;  %v5838_v47 = vpop.eup %5837  ;;  %v7457_v16 = vmul.bf16 %v2419_v6, %v7243_v9  ;;  %v2421_v10 = vmul.bf16 1065369472, %v5836_v62  ;;  %v7459_v44 = vpack.c.bf16 %v1888_v20, %v1884_v49 }
 0x332   : > { %5859 = vpow.bf16 %v4994_v12  ;;  %v5840_v3 = vpop.eup %5839  ;;  %v7464_v32 = vmul.bf16 %v2457_v26, %v7259_v18  ;;  %v2368_v45 = vadd.bf16 1065369472, %v5838_v47  ;;  %v5021_v8 = vmul.bf16 3216621497, %v7452_v40  ;;  %v1909_v18 = vpop.f32.mrb[75].mxu1 }
 0x333   : > { %8768 = vst [vmem:[#allocation76_spill] sm:$0xff] %v7457_v16  ;;  %v1797_v11 = vadd.f32 %v7375_v43, %v6917_v15  ;;  %v5842_v9 = vpop.eup %5841  ;;  %v7472_v53 = vmul.bf16 %v2421_v10, %v7264_v27  ;;  %v2350_v49 = vadd.bf16 1065369472, %v5840_v3  ;;  %v5003_v6 = vmul.bf16 3216621497, %v7459_v44 }
 0x334   : > { %v1890_v12 = vadd.f32 %v7381_v21, %v6926_v25  ;;  %v5844_v20 = vpop.eup %5843  ;;  %5861 = vrcp.bf16 %v2368_v45  ;;  %v2369_v47 = vadd.bf16 1065369472, %v5842_v9  ;;  %v1801_v43 = vadd.f32 %v7399_v38, %v6885_v19 }
 0x335   : > { %8769 = vst [vmem:[#allocation77_spill] sm:$0xff] %v7472_v53  ;;  %v7477_v62 = vpack.c.bf16 %v1797_v11, %v1793_v35  ;;  %5863 = vrcp.bf16 %v2350_v49  ;;  %v2351_v16 = vadd.bf16 1065369472, %v5844_v20  ;;  %v1894_v10 = vadd.f32 %v7406_v55, %v6923_v22 }
 0x336   : > { %v5846_v26 = vpop.eup %5845  ;;  %v7481_v27 = vpack.c.bf16 %v1890_v12, %v1886_v30  ;;  %5865 = vrcp.bf16 %v2369_v47  ;;  %v1803_v35 = vadd.f32 %v7408_v59, %v6917_v15  ;;  %v1896_v30 = vadd.f32 %v7415_v29, %v6926_v25  ;;  %v1913_v20 = vpop.f32.mrb[76].mxu1 }
 0x337   : > { %v5848_v3 = vpop.eup %5847  ;;  %v2475_v53 = vmul.bf16 1065369472, %v5846_v26  ;;  %v5022_v21 = vmul.bf16 3216621497, %v7477_v62  ;;  %5867 = vrcp.bf16 %v2351_v16  ;;  %v1805_v12 = vadd.f32 %v7417_v2, %v6885_v19  ;;  %v7501_v29 = vpop.f32.mrb[77].mxu1 }
 0x338   : > { %v5850_v45 = vpop.eup %5849  ;;  %v2439_v11 = vmul.bf16 1065369472, %v5848_v3  ;;  %v5004_v38 = vmul.bf16 3216621497, %v7481_v27  ;;  %5869 = vpow.bf16 %v5021_v8  ;;  %v1898_v26 = vadd.f32 %v7422_v7, %v6923_v22  ;;  %v1917_v19 = vpop.f32.mrb[78].mxu1 }
 0x339   : > { %v5852_v9 = vpop.eup %5851  ;;  %v7492_v49 = vmul.bf16 %v2475_v53, %v7292_v13  ;;  %v2477_v55 = vmul.bf16 1065369472, %v5850_v45  ;;  %5871 = vpow.bf16 %v5003_v6  ;;  %v7506_v53 = vpack.c.bf16 %v1805_v12, %v1801_v43  ;;  %v1919_v7 = vpop.f32.mrb[79].mxu1 }
 0x33a   : > { %v5854_v47 = vpop.eup %5853  ;;  %v7497_v59 = vmul.bf16 %v2439_v11, %v7297_v24  ;;  %v2441_v16 = vmul.bf16 1065369472, %v5852_v9  ;;  %5873 = vpow.bf16 %v5022_v21  ;;  %v7511_v6 = vpack.c.bf16 %v1898_v26, %v1894_v10 }
 0x33b   : > { %v5856_v3 = vpop.eup %5855  ;;  %v7504_v13 = vmul.bf16 %v2477_v55, %v7315_v48  ;;  %v2378_v8 = vadd.bf16 1065369472, %v5854_v47  ;;  %5875 = vpow.bf16 %v5004_v38  ;;  %v5031_v48 = vmul.bf16 3216621497, %v7506_v53 }
 0x33c   : > { %8770 = vst [vmem:[#allocation78_spill] sm:$0xff] %v7497_v59  ;;  %v5858_v2 = vpop.eup %5857  ;;  %v7509_v24 = vmul.bf16 %v2441_v16, %v7324_v37  ;;  %v2360_v45 = vadd.bf16 1065369472, %v5856_v3  ;;  %v1807_v21 = vadd.f32 %v7424_v50, %v6917_v15  ;;  %v5013_v55 = vmul.bf16 3216621497, %v7511_v6 }
 0x33d   : > { %v5860_v11 = vpop.eup %5859  ;;  %5877 = vrcp.bf16 %v2378_v8  ;;  %v2379_v9 = vadd.bf16 1065369472, %v5858_v2  ;;  %v1900_v37 = vadd.f32 %v7429_v14, %v6926_v25  ;;  %v1904_v10 = vadd.f32 %v7454_v52, %v6923_v22 }
 0x33e   : > { %5879 = vrcp.bf16 %v2360_v45  ;;  %v2361_v43 = vadd.bf16 1065369472, %v5860_v11  ;;  %v7519_v38 = vpack.c.bf16 %v1807_v21, %v1803_v35  ;;  %v1908_v15 = vadd.f32 %v7469_v63, %v6923_v22 }
 0x33f   : > { %5881 = vrcp.bf16 %v2379_v9  ;;  %v5862_v12 = vpop.eup %5861  ;;  %v7523_v47 = vpack.c.bf16 %v1900_v37, %v1896_v30  ;;  %v1910_v50 = vadd.f32 %v1909_v18, %v6926_v25  ;;  %v1906_v35 = vadd.f32 %v7461_v28, %v6926_v25 }
 0x340   : > { %5883 = vrcp.bf16 %v2361_v43  ;;  %v5864_v16 = vpop.eup %5863  ;;  %v2495_v26 = vmul.bf16 1065369472, %v5862_v12  ;;  %v5032_v14 = vmul.bf16 3216621497, %v7519_v38  ;;  %v7532_v30 = vpack.c.bf16 %v1908_v15, %v1904_v10 }
 0x341   : > { %5885 = vpow.bf16 %v5031_v48  ;;  %v5866_v3 = vpop.eup %5865  ;;  %v2459_v8 = vmul.bf16 1065369472, %v5864_v16  ;;  %v5014_v52 = vmul.bf16 3216621497, %v7523_v47  ;;  %v7537_v45 = vpack.c.bf16 %v1910_v50, %v1906_v35 }
 0x342   : > { %5887 = vpow.bf16 %v5013_v55  ;;  %v5868_v2 = vpop.eup %5867  ;;  %v7535_v63 = vmul.bf16 %v2495_v26, %v7340_v17  ;;  %v2497_v18 = vmul.bf16 1065369472, %v5866_v3  ;;  %v5023_v48 = vmul.bf16 3216621497, %v7532_v30 }
 0x343   : > { %5889 = vpow.bf16 %v5032_v14  ;;  %v5870_v11 = vpop.eup %5869  ;;  %v7540_v9 = vmul.bf16 %v2459_v8, %v7345_v61  ;;  %v2461_v28 = vmul.bf16 1065369472, %v5868_v2  ;;  %v5024_v17 = vmul.bf16 3216621497, %v7537_v45 }
 0x344   : > { %5891 = vpow.bf16 %v5014_v52  ;;  %v5872_v21 = vpop.eup %5871  ;;  %v7544_v43 = vmul.bf16 %v2497_v18, %v7369_v23  ;;  %v2388_v55 = vadd.bf16 1065369472, %v5870_v11  ;;  %v1914_v37 = vadd.f32 %v1913_v20, %v6923_v22 }
 0x345   : > { %8771 = vst [vmem:[#allocation79_spill] sm:$0xff] %v7540_v9  ;;  %v5874_v10 = vpop.eup %5873  ;;  %v7549_v12 = vmul.bf16 %v2461_v28, %v7377_v1  ;;  %v2370_v15 = vadd.bf16 1065369472, %v5872_v21  ;;  %5893 = vpow.bf16 %v5023_v48  ;;  %v1918_v61 = vadd.f32 %v1917_v19, %v6923_v22 }
 0x346   : > { %v5876_v50 = vpop.eup %5875  ;;  %5895 = vrcp.bf16 %v2388_v55  ;;  %v2389_v16 = vadd.bf16 1065369472, %v5874_v10  ;;  %v1916_v23 = vadd.f32 %v7501_v29, %v6926_v25  ;;  %v1920_v26 = vadd.f32 %v1919_v7, %v6926_v25 }
 0x347   : > { %5897 = vrcp.bf16 %v2370_v15  ;;  %v2371_v35 = vadd.bf16 1065369472, %v5876_v50  ;;  %v7555_v20 = vpack.c.bf16 %v1918_v61, %v1914_v37 }
 0x348   : > { %v5878_v14 = vpop.eup %5877  ;;  %5899 = vrcp.bf16 %v2389_v16  ;;  %v7557_v8 = vpack.c.bf16 %v1920_v26, %v1916_v23 }
 0x349   : > { %v5880_v3 = vpop.eup %5879  ;;  %v2515_v1 = vmul.bf16 1065369472, %v5878_v14  ;;  %5901 = vrcp.bf16 %v2371_v35  ;;  %v5033_v19 = vmul.bf16 3216621497, %v7555_v20 }
 0x34a   : > { %v5882_v52 = vpop.eup %5881  ;;  %v2479_v22 = vmul.bf16 1065369472, %v5880_v3  ;;  %5903 = vpow.bf16 %v5024_v17  ;;  %v5034_v7 = vmul.bf16 3216621497, %v7557_v8 }
 0x34b   : > { %v5884_v2 = vpop.eup %5883  ;;  %v7561_v29 = vmul.bf16 %v2515_v1, %v7404_v42  ;;  %v2517_v25 = vmul.bf16 1065369472, %v5882_v52  ;;  %5905 = vpow.bf16 %v5033_v19 }
 0x34c   : > { %v5886_v18 = vpop.eup %5885  ;;  %v7565_v11 = vmul.bf16 %v2479_v22, %v7413_v5  ;;  %v2481_v28 = vmul.bf16 1065369472, %v5884_v2  ;;  %5907 = vpow.bf16 %v5034_v7 }
 0x34d   : > { %v5888_v48 = vpop.eup %5887  ;;  %v7568_v21 = vmul.bf16 %v2517_v25, %v7431_v0  ;;  %v2398_v55 = vadd.bf16 1065369472, %v5886_v18 }
 0x34e   : > { %8772 = vst [vmem:[#allocation80_spill] sm:$0xff] %v7565_v11  ;;  %v5890_v37 = vpop.eup %5889  ;;  %v7571_v42 = vmul.bf16 %v2481_v28, %v7437_v54  ;;  %v2380_v10 = vadd.bf16 1065369472, %v5888_v48 }
 0x34f   : > { %v5892_v17 = vpop.eup %5891  ;;  %5909 = vrcp.bf16 %v2398_v55  ;;  %v2399_v15 = vadd.bf16 1065369472, %v5890_v37 }
 0x350   : > { %8773 = vst [vmem:[#allocation81_spill] sm:$0xff] %v7571_v42  ;;  %5911 = vrcp.bf16 %v2380_v10  ;;  %v2381_v61 = vadd.bf16 1065369472, %v5892_v17  ;;  %v5894_v5 = vpop.eup %5893 }
 0x351   : > { %5913 = vrcp.bf16 %v2399_v15  ;;  %v5896_v50 = vpop.eup %5895  ;;  %v2390_v16 = vadd.bf16 1065369472, %v5894_v5 }
 0x352   : > { %5915 = vrcp.bf16 %v2381_v61  ;;  %v5898_v23 = vpop.eup %5897  ;;  %v2535_v0 = vmul.bf16 1065369472, %v5896_v50 }
 0x353   : > { %v5900_v26 = vpop.eup %5899  ;;  %v2499_v14 = vmul.bf16 1065369472, %v5898_v23  ;;  %5917 = vrcp.bf16 %v2390_v16 }
 0x354   : > { %v5902_v35 = vpop.eup %5901  ;;  %v7574_v54 = vmul.bf16 %v2535_v0, %v7452_v40  ;;  %v2537_v3 = vmul.bf16 1065369472, %v5900_v26 }
 0x355   : > { %v5904_v1 = vpop.eup %5903  ;;  %v7577_v52 = vmul.bf16 %v2499_v14, %v7459_v44  ;;  %v2501_v22 = vmul.bf16 1065369472, %v5902_v35 }
 0x356   : > { %v5906_v19 = vpop.eup %5905  ;;  %v7580_v2 = vmul.bf16 %v2537_v3, %v7477_v62  ;;  %v2391_v25 = vadd.bf16 1065369472, %v5904_v1 }
 0x357   : > { %8774 = vst [vmem:[#allocation82_spill] sm:$0xff] %v7577_v52  ;;  %v5908_v7 = vpop.eup %5907  ;;  %v7583_v18 = vmul.bf16 %v2501_v22, %v7481_v27  ;;  %v2400_v28 = vadd.bf16 1065369472, %v5906_v19  ;;  %v2666_v19 = vunpack.c.l.bf16 (!%p5035_p11), %v6936_v46 }
 0x358   : > { %5919 = vrcp.bf16 %v2391_v25  ;;  %v2401_v48 = vadd.bf16 1065369472, %v5908_v7  ;;  %v2676_v25 = vunpack.c.h.bf16 (!%p5035_p11), %v6936_v46  ;;  %v2647_v7 = vunpack.c.l.bf16 (!%p5035_p11), %v6904_v60  ;;  %v8788_v46 = vld [vmem:[#allocation45_spill] sm:$0xff] (!%p5035_p11) }
 0x359   : > { %8775 = vst [vmem:[#allocation83_spill] sm:$0xff] %v7583_v18  ;;  %5921 = vrcp.bf16 %v2400_v28  ;;  %v2686_v28 = vunpack.c.l.bf16 (!%p5035_p11), %v6962_v58 }
 0x35a   : > { %v5910_v40 = vpop.eup %5909  ;;  %5923 = vrcp.bf16 %v2401_v48  ;;  %v2667_v48 = vunpack.c.l.bf16 (!%p5035_p11), %v6940_v57 }
 0x35b   : > { %v5912_v55 = vpop.eup %5911  ;;  %v2555_v37 = vmul.bf16 1065369472, %v5910_v40  ;;  %v2696_v40 = vunpack.c.h.bf16 (!%p5035_p11), %v6962_v58 }
 0x35c   : > { %v5914_v44 = vpop.eup %5913  ;;  %v2519_v10 = vmul.bf16 1065369472, %v5912_v55 }
 0x35d   : > { %v5916_v17 = vpop.eup %5915  ;;  %v7586_v15 = vmul.bf16 %v2555_v37, %v7506_v53  ;;  %v2557_v62 = vmul.bf16 1065369472, %v5914_v44  ;;  %v2677_v37 = vunpack.c.h.bf16 (!%p5035_p11), %v6940_v57 }
 0x35e   : > { %v7589_v61 = vmul.bf16 %v2519_v10, %v7511_v6  ;;  %v2521_v27 = vmul.bf16 1065369472, %v5916_v17  ;;  %v5918_v5 = vpop.eup %5917  ;;  %v2706_v10 = vunpack.c.l.bf16 (!%p5035_p11), %v6992_v56  ;;  %v2687_v17 = vunpack.c.l.bf16 (!%p5035_p11), %v6972_v33 }
 0x35f   : > { %8776 = vst [vmem:[#allocation84_spill] sm:$0xff] %v7586_v15  ;;  %v7592_v50 = vmul.bf16 %v2557_v62, %v7519_v38  ;;  %v2539_v23 = vmul.bf16 1065369472, %v5918_v5  ;;  %v2648_v5 = vunpack.c.l.bf16 (!%p5035_p11), %v7031_v36 }
 0x360   : > { %8777 = vst [vmem:[#allocation85_spill] sm:$0xff] %v7589_v61  ;;  %v7595_v16 = vmul.bf16 %v2521_v27, %v7523_v47  ;;  %v2646_v47 = vunpack.c.l.bf16 (!%p5035_p11), %v6898_v31 }
 0x361   : > { %v7598_v0 = vmul.bf16 %v2539_v23, %v7532_v30  ;;  %v2656_v30 = vunpack.c.h.bf16 (!%p5035_p11), %v6898_v31  ;;  %v2658_v23 = vunpack.c.h.bf16 (!%p5035_p11), %v7031_v36  ;;  %v2688_v31 = vunpack.c.l.bf16 (!%p5035_p11), %v8788_v46 }
 0x362   : > { %8778 = vst [vmem:[#allocation86_spill] sm:$0xff] %v7595_v16  ;;  %v8794_v16 = vld [vmem:[#allocation43_spill] sm:$0xff] (!%p5035_p11) }
 0x363   : > { %8779 = vst [vmem:[#allocation87_spill] sm:$0xff] %v7598_v0  ;;  %v5920_v26 = vpop.eup %5919  ;;  %v2836_v36 = vadd.f32 (!%p5035_p11), %v2658_v23, %v2648_v5 }
 0x364   : > { %v5922_v14 = vpop.eup %5921  ;;  %v2541_v53 = vmul.bf16 1065369472, %v5920_v26  ;;  %2645 = sbr.rel (%p5035_p11) target bundleno = 967 (0x3c7), region = 113  ;;  %v2716_v26 = vunpack.c.h.bf16 (!%p5035_p11), %v6992_v56 }
 0x365   : > { %v5924_v35 = vpop.eup %5923  ;;  %v2559_v3 = vmul.bf16 1065369472, %v5922_v14  ;;  %v2726_v14 = vunpack.c.l.bf16 (!%p5035_p11), %v6967_v39 }
 0x366   : > { %v7601_v6 = vmul.bf16 %v2541_v53, %v7537_v45  ;;  %v2561_v1 = vmul.bf16 1065369472, %v5924_v35  ;;  %v2806_v45 = vadd.f32 (!%p5035_p11), %v2656_v30, %v2646_v47  ;;  %v2736_v53 = vunpack.c.h.bf16 (!%p5035_p11), %v6967_v39  ;;  %v8783_v30 = vld [vmem:[#allocation42_spill] sm:$0xff] (!%p5035_p11)  ;;  %v8786_v39 = vld [vmem:[#allocation41_spill] sm:$0xff] (!%p5035_p11) }
 0x367   : > { %v7604_v22 = vmul.bf16 %v2559_v3, %v7555_v20  ;;  %v2657_v20 = vunpack.c.h.bf16 (!%p5035_p11), %v6904_v60  ;;  %v2746_v35 = vunpack.c.l.bf16 (!%p5035_p11), %v6996_v34  ;;  %v8793_v60 = vld [vmem:[#allocation49_spill] sm:$0xff] (!%p5035_p11) }
 0x368   : > { %8780 = vst [vmem:[#allocation88_spill] sm:$0xff] %v7601_v6  ;;  %v7607_v38 = vmul.bf16 %v2561_v1, %v7557_v8  ;;  %v2807_v8 = vadd.f32 (!%p5035_p11), %v2806_v45, %v2666_v19  ;;  %v2697_v1 = vunpack.c.h.bf16 (!%p5035_p11), %v6972_v33  ;;  %v2668_v19 = vunpack.c.l.bf16 (!%p5035_p11), %v8783_v30  ;;  %v8784_v45 = vld [vmem:[#allocation37_spill] sm:$0xff] (!%p5035_p11) }
 0x369   : > { %8781 = vst [vmem:[#allocation89_spill] sm:$0xff] %v7604_v22  ;;  %v2821_v44 = vadd.f32 (!%p5035_p11), %v2657_v20, %v2647_v7  ;;  %v2766_v7 = vunpack.c.l.bf16 (!%p5035_p11), %v8784_v45  ;;  %v2776_v20 = vunpack.c.h.bf16 (!%p5035_p11), %v8784_v45  ;;  %v2748_v22 = vunpack.c.l.bf16 (!%p5035_p11), %v7188_v51 }
 0x36a   : > { %8782 = vst [vmem:[#allocation90_spill] sm:$0xff] %v7607_v38  ;;  %v2808_v55 = vadd.f32 (!%p5035_p11), %v2807_v8, %v2676_v25  ;;  %v2756_v25 = vunpack.c.h.bf16 (!%p5035_p11), %v6996_v34  ;;  %v2837_v45 = vadd.f32 (!%p5035_p11), %v2836_v36, %v2668_v19  ;;  %v8792_v36 = vld [vmem:[#allocation44_spill] sm:$0xff] (!%p5035_p11)  ;;  %v2708_v38 = vunpack.c.l.bf16 (!%p5035_p11), %v8793_v60 }
 0x36b   : > { %v2822_v27 = vadd.f32 %v2821_v44, %v2667_v48  ;;  %v2678_v44 = vunpack.c.h.bf16 %v8783_v30  ;;  %v2669_v19 = vunpack.c.l.bf16 %v8792_v36 }
 0x36c   : > { %v2809_v62 = vadd.f32 %v2808_v55, %v2686_v28  ;;  %v8785_v28 = vld [vmem:[#allocation35_spill] sm:$0xff] }
 0x36d   : > { %v2823_v47 = vadd.f32 %v2822_v27, %v2677_v37  ;;  %v2707_v8 = vunpack.c.l.bf16 %v8785_v28  ;;  %v2717_v37 = vunpack.c.h.bf16 %v8785_v28  ;;  %v8787_v27 = vld [vmem:[#allocation32_spill] sm:$0xff]  ;;  %v2838_v28 = vadd.f32 %v2837_v45, %v2678_v44 }
 0x36e   : > { %v2810_v3 = vadd.f32 %v2809_v62, %v2696_v40  ;;  %v2786_v40 = vunpack.c.l.bf16 %v8786_v39  ;;  %v2727_v56 = vunpack.c.l.bf16 %v8787_v27  ;;  %v2737_v33 = vunpack.c.h.bf16 %v8787_v27 }
 0x36f   : > { %v2824_v55 = vadd.f32 %v2823_v47, %v2687_v17  ;;  %v2698_v62 = vunpack.c.h.bf16 %v8788_v46  ;;  %v2839_v6 = vadd.f32 %v2838_v28, %v2688_v31  ;;  %v2679_v46 = vunpack.c.h.bf16 %v8792_v36 }
 0x370   : > { %v2811_v48 = vadd.f32 %v2810_v3, %v2706_v10  ;;  %v8789_v10 = vld [vmem:[#allocation36_spill] sm:$0xff]  ;;  %v2718_v44 = vunpack.c.h.bf16 %v8793_v60 }
 0x371   : > { %v2825_v58 = vadd.f32 %v2824_v55, %v2697_v1  ;;  %v2747_v17 = vunpack.c.l.bf16 %v8789_v10  ;;  %v8790_v3 = vld [vmem:[#allocation40_spill] sm:$0xff]  ;;  %v2757_v57 = vunpack.c.h.bf16 %v8789_v10  ;;  %v2840_v45 = vadd.f32 %v2839_v6, %v2698_v62  ;;  %v8795_v10 = vld [vmem:[#allocation53_spill] sm:$0xff] }
 0x372   : > { %v2812_v34 = vadd.f32 %v2811_v48, %v2716_v26  ;;  %v2649_v47 = vunpack.c.l.bf16 %v8790_v3  ;;  %v2659_v5 = vunpack.c.h.bf16 %v8790_v3  ;;  %v8791_v26 = vld [vmem:[#allocation39_spill] sm:$0xff]  ;;  %v2787_v3 = vunpack.c.l.bf16 %v8794_v16 }
 0x373   : > { %v2826_v30 = vadd.f32 %v2825_v58, %v2707_v8  ;;  %v2767_v1 = vunpack.c.l.bf16 %v8791_v26  ;;  %v2777_v48 = vunpack.c.h.bf16 %v8791_v26  ;;  %v2797_v58 = vunpack.c.h.bf16 %v8794_v16 }
 0x374   : > { %v2813_v23 = vadd.f32 %v2812_v34, %v2726_v14  ;;  %v2851_v34 = vadd.f32 %v2659_v5, %v2649_v47  ;;  %v2728_v26 = vunpack.c.l.bf16 %v8795_v10  ;;  %v2841_v16 = vadd.f32 %v2840_v45, %v2708_v38 }
 0x375   : > { %v2827_v27 = vadd.f32 %v2826_v30, %v2717_v37  ;;  %v8796_v37 = vld [vmem:[#allocation47_spill] sm:$0xff]  ;;  %v2758_v5 = vunpack.c.h.bf16 %v7188_v51  ;;  %v2956_v51 = vld [vmem:[#allocation2] sm:$0xff] }
 0x376   : > { %v2814_v55 = vadd.f32 %v2813_v23, %v2736_v53  ;;  %v2738_v53 = vunpack.c.h.bf16 %v8795_v10  ;;  %v2689_v23 = vunpack.c.l.bf16 %v8796_v37  ;;  %v2852_v30 = vadd.f32 %v2851_v34, %v2669_v19  ;;  %v8799_v19 = vld [vmem:[#allocation51_spill] sm:$0xff]  ;;  %v8800_v34 = vld [vmem:[#allocation50_spill] sm:$0xff] }
 0x377   : > { %v2828_v8 = vadd.f32 %v2827_v27, %v2727_v56  ;;  %v2699_v36 = vunpack.c.h.bf16 %v8796_v37  ;;  %v8798_v27 = vld [vmem:[#allocation61_spill] sm:$0xff]  ;;  %v2719_v37 = vunpack.c.h.bf16 %v8799_v19 }
 0x378   : > { %v2815_v14 = vadd.f32 %v2814_v55, %v2746_v35  ;;  %v2853_v47 = vadd.f32 %v2852_v30, %v2679_v46  ;;  %v8797_v35 = vld [vmem:[#allocation46_spill] sm:$0xff]  ;;  %v2842_v55 = vadd.f32 %v2841_v16, %v2718_v44  ;;  %v2768_v10 = vunpack.c.l.bf16 %v8798_v27 }
 0x379   : > { %v2829_v28 = vadd.f32 %v2828_v8, %v2737_v33  ;;  %v2650_v56 = vunpack.c.l.bf16 %v8797_v35  ;;  %v2660_v60 = vunpack.c.h.bf16 %v8797_v35  ;;  %v2778_v46 = vunpack.c.h.bf16 %v8798_v27 }
 0x37a   : > { %v2816_v31 = vadd.f32 %v2815_v14, %v2756_v25  ;;  %v2709_v25 = vunpack.c.l.bf16 %v8799_v19  ;;  %v2854_v33 = vadd.f32 %v2853_v47, %v2689_v23  ;;  %v2670_v14 = vunpack.c.l.bf16 %v8800_v34  ;;  %v8802_v23 = vld [vmem:[#allocation55_spill] sm:$0xff] }
 0x37b   : > { %v2830_v62 = vadd.f32 %v2829_v28, %v2747_v17  ;;  %v2843_v45 = vadd.f32 %v2842_v55, %v2728_v26  ;;  %v2866_v17 = vadd.f32 %v2660_v60, %v2650_v56  ;;  %v8801_v28 = vld [vmem:[#allocation65_spill] sm:$0xff]  ;;  %v2729_v47 = vunpack.c.l.bf16 %v8802_v23  ;;  %v8805_v60 = vld [vmem:[#allocation48_spill] sm:$0xff] }
 0x37c   : > { %v2817_v6 = vadd.f32 %v2816_v31, %v2766_v7  ;;  %v2855_v30 = vadd.f32 %v2854_v33, %v2699_v36  ;;  %v2680_v7 = vunpack.c.h.bf16 %v8800_v34  ;;  %v2788_v16 = vunpack.c.l.bf16 %v8801_v28 }
 0x37d   : > { %v2831_v8 = vadd.f32 %v2830_v62, %v2757_v57  ;;  %v2844_v35 = vadd.f32 %v2843_v45, %v2738_v53  ;;  %v8804_v26 = vunpack.c.h.bf16 %v8786_v39  ;;  %v2739_v27 = vunpack.c.h.bf16 %v8802_v23  ;;  %v8807_v45 = vld [vmem:[#allocation58_spill] sm:$0xff] }
 0x37e   : > { %v2818_v38 = vadd.f32 %v2817_v6, %v2776_v20  ;;  %v2856_v18 = vadd.f32 %v2855_v30, %v2709_v25  ;;  %v8803_v20 = vld [vmem:[#allocation54_spill] sm:$0xff]  ;;  %v2867_v6 = vadd.f32 %v2866_v17, %v2670_v14  ;;  %v2651_v53 = vunpack.c.l.bf16 %v8805_v60  ;;  %v8806_v14 = vld [vmem:[#allocation59_spill] sm:$0xff] }
 0x37f   : > { %v2832_v44 = vadd.f32 %v2831_v8, %v2767_v1  ;;  %v2690_v57 = vunpack.c.l.bf16 %v8803_v20  ;;  %v2845_v36 = vadd.f32 %v2844_v35, %v2748_v22  ;;  %v2661_v25 = vunpack.c.h.bf16 %v8805_v60 }
 0x380   : > { %v2819_v31 = vadd.f32 %v2818_v38, %v2786_v40  ;;  %v2857_v56 = vadd.f32 %v2856_v18, %v2719_v37  ;;  %v2700_v40 = vunpack.c.h.bf16 %v8803_v20  ;;  %v2868_v1 = vadd.f32 %v2867_v6, %v2680_v7  ;;  %v2957_v38 = vld [vmem:[#allocation2 + $0x8] sm:$0xff]  ;;  %v8808_v7 = vld [vmem:[#allocation52_spill] sm:$0xff] }
 0x381   : > { %v2833_v55 = vadd.f32 %v2832_v44, %v2777_v48  ;;  %v2846_v34 = vadd.f32 %v2845_v36, %v2758_v5  ;;  %v2749_v8 = vunpack.c.l.bf16 %v8806_v14  ;;  %v2710_v48 = vunpack.c.l.bf16 %v8807_v45  ;;  %v8809_v20 = vld [vmem:[#allocation63_spill] sm:$0xff] }
 0x382   : > { %v2820_v62 = vadd.f32 %v2819_v31, %v8804_v26  ;;  %v2858_v39 = vadd.f32 %v2857_v56, %v2729_v47  ;;  %v2869_v22 = vadd.f32 %v2868_v1, %v2690_v57  ;;  %v2798_v18 = vunpack.c.h.bf16 %v8801_v28  ;;  %v2958_v56 = vld [vmem:[#allocation2 + $0x10] sm:$0xff] }
 0x383   : > { %v2834_v33 = vadd.f32 %v2833_v55, %v2787_v3  ;;  %v2847_v37 = vadd.f32 %v2846_v34, %v2768_v10  ;;  %v2671_v17 = vunpack.c.l.bf16 %v8808_v7  ;;  %v2720_v5 = vunpack.c.h.bf16 %v8807_v45  ;;  %v8811_v55 = vld [vmem:[#allocation56_spill] sm:$0xff] }
 0x384   : > { %v2966_v19 = vadd.f32 %v2956_v51, %v2820_v62  ;;  %v2759_v51 = vunpack.c.h.bf16 %v8806_v14  ;;  %v2859_v3 = vadd.f32 %v2858_v39, %v2739_v27  ;;  %v2870_v31 = vadd.f32 %v2869_v22, %v2700_v40  ;;  %v8815_v22 = vld [vmem:[#allocation60_spill] sm:$0xff] }
 0x385   : > { %v2835_v30 = vadd.f32 %v2834_v33, %v2797_v58  ;;  %v2848_v35 = vadd.f32 %v2847_v37, %v2778_v46  ;;  %v2681_v23 = vunpack.c.h.bf16 %v8808_v7  ;;  %v2881_v47 = vadd.f32 %v2661_v25, %v2651_v53  ;;  %v8810_v58 = vld [vmem:[#allocation62_spill] sm:$0xff] }
 0x386   : > { %2976 = vst [vmem:[#allocation2] sm:$0xff] %v2966_v19  ;;  %v2769_v57 = vunpack.c.l.bf16 %v8809_v20  ;;  %v2860_v6 = vadd.f32 %v2859_v3, %v2749_v8  ;;  %v2730_v26 = vunpack.c.l.bf16 %v8810_v58  ;;  %v2871_v28 = vadd.f32 %v2870_v31, %v2710_v48  ;;  %v8812_v33 = vld [vmem:[#allocation70_spill] sm:$0xff] }
 0x387   : > { %v2967_v44 = vadd.f32 %v2957_v38, %v2835_v30  ;;  %v2849_v10 = vadd.f32 %v2848_v35, %v2788_v16  ;;  %v2779_v62 = vunpack.c.h.bf16 %v8809_v20  ;;  %v2691_v36 = vunpack.c.l.bf16 %v8811_v55  ;;  %v8813_v38 = vld [vmem:[#allocation67_spill] sm:$0xff]  ;;  %v8814_v8 = vld [vmem:[#allocation66_spill] sm:$0xff] }
 0x388   : > { %v2882_v27 = vadd.f32 %v2881_v47, %v2671_v17  ;;  %v2861_v40 = vadd.f32 %v2860_v6, %v2759_v51  ;;  %v2740_v46 = vunpack.c.h.bf16 %v8810_v58  ;;  %v2872_v1 = vadd.f32 %v2871_v28, %v2720_v5  ;;  %v8816_v47 = vld [vmem:[#allocation69_spill] sm:$0xff] }
 0x389   : > { %2977 = vst [vmem:[#allocation2 + $0x8] sm:$0xff] %v2967_v44  ;;  %v2701_v60 = vunpack.c.h.bf16 %v8811_v55  ;;  %v2850_v53 = vadd.f32 %v2849_v10, %v2798_v18  ;;  %v2652_v34 = vunpack.c.l.bf16 %v8812_v33  ;;  %v2662_v25 = vunpack.c.h.bf16 %v8812_v33  ;;  %v2959_v58 = vld [vmem:[#allocation2 + $0x18] sm:$0xff] }
 0x38a   : > { %v2883_v19 = vadd.f32 %v2882_v27, %v2681_v23  ;;  %v2789_v16 = vunpack.c.l.bf16 %v8813_v38  ;;  %v2862_v14 = vadd.f32 %v2861_v40, %v2769_v57  ;;  %v2750_v39 = vunpack.c.l.bf16 %v8814_v8 }
 0x38b   : > { %v2873_v45 = vadd.f32 %v2872_v1, %v2730_v26  ;;  %v2968_v48 = vadd.f32 %v2958_v56, %v2850_v53  ;;  %v2711_v30 = vunpack.c.l.bf16 %v8815_v22  ;;  %v2672_v7 = vunpack.c.l.bf16 %v7395_v4  ;;  %v8817_v26 = vld [vmem:[#allocation64_spill] sm:$0xff] }
 0x38c   : > { %v2884_v37 = vadd.f32 %v2883_v19, %v2691_v36  ;;  %v2799_v17 = vunpack.c.h.bf16 %v8813_v38  ;;  %v2863_v18 = vadd.f32 %v2862_v14, %v2779_v62  ;;  %v2760_v51 = vunpack.c.h.bf16 %v8814_v8 }
 0x38d   : > { %v2874_v3 = vadd.f32 %v2873_v45, %v2740_v46  ;;  %2978 = vst [vmem:[#allocation2 + $0x10] sm:$0xff] %v2968_v48  ;;  %v2721_v5 = vunpack.c.h.bf16 %v8815_v22  ;;  %v2682_v44 = vunpack.c.h.bf16 %v7395_v4  ;;  %v2896_v35 = vadd.f32 %v2662_v25, %v2652_v34  ;;  %v8819_v34 = vld [vmem:[#allocation73_spill] sm:$0xff]  ;;  %v8821_v48 = vld [vmem:[#allocation75_spill] sm:$0xff] }
 0x38e   : > { %v2885_v31 = vadd.f32 %v2884_v37, %v2701_v60  ;;  %v2864_v23 = vadd.f32 %v2863_v18, %v2789_v16  ;;  %v2770_v20 = vunpack.c.l.bf16 %v8816_v47  ;;  %v2780_v57 = vunpack.c.h.bf16 %v8816_v47  ;;  %v8818_v60 = vld [vmem:[#allocation72_spill] sm:$0xff] }
 0x38f   : > { %v2875_v6 = vadd.f32 %v2874_v3, %v2750_v39  ;;  %v2731_v28 = vunpack.c.l.bf16 %v8817_v26  ;;  %v2692_v62 = vunpack.c.l.bf16 %v7450_v41  ;;  %v2897_v55 = vadd.f32 %v2896_v35, %v2672_v7  ;;  %v8820_v16 = vld [vmem:[#allocation68_spill] sm:$0xff] }
 0x390   : > { %v2886_v10 = vadd.f32 %v2885_v31, %v2711_v30  ;;  %v2865_v36 = vadd.f32 %v2864_v23, %v2799_v17  ;;  %v2741_v56 = vunpack.c.h.bf16 %v8817_v26  ;;  %v2702_v40 = vunpack.c.h.bf16 %v7450_v41 }
 0x391   : > { %v2876_v27 = vadd.f32 %v2875_v6, %v2760_v51  ;;  %v2898_v1 = vadd.f32 %v2897_v55, %v2682_v44  ;;  %v2653_v53 = vunpack.c.l.bf16 %v8818_v60  ;;  %v2663_v19 = vunpack.c.h.bf16 %v8818_v60  ;;  %v8822_v44 = vld [vmem:[#allocation71_spill] sm:$0xff]  ;;  %v8823_v55 = vld [vmem:[#allocation76_spill] sm:$0xff]  ;;  %v8824_v60 = vld [vmem:[#allocation74_spill] sm:$0xff] }
 0x392   : > { %v2887_v46 = vadd.f32 %v2886_v10, %v2721_v5  ;;  %v2969_v33 = vadd.f32 %v2959_v58, %v2865_v36  ;;  %v2790_v25 = vunpack.c.l.bf16 %v8819_v34  ;;  %v2751_v14 = vunpack.c.l.bf16 %v8820_v16 }
 0x393   : > { %v2877_v38 = vadd.f32 %v2876_v27, %v2770_v20  ;;  %v2712_v39 = vunpack.c.l.bf16 %v7492_v49  ;;  %v2899_v45 = vadd.f32 %v2898_v1, %v2692_v62  ;;  %v2673_v22 = vunpack.c.l.bf16 %v8821_v48  ;;  %v2960_v20 = vld [vmem:[#allocation2 + $0x20] sm:$0xff] }
 0x394   : > { %v2888_v8 = vadd.f32 %v2887_v46, %v2731_v28  ;;  %2979 = vst [vmem:[#allocation2 + $0x18] sm:$0xff] %v2969_v33  ;;  %v2800_v30 = vunpack.c.h.bf16 %v8819_v34  ;;  %v2761_v7 = vunpack.c.h.bf16 %v8820_v16  ;;  %v2722_v17 = vunpack.c.h.bf16 %v7492_v49 }
 0x395   : > { %v2878_v37 = vadd.f32 %v2877_v38, %v2780_v57  ;;  %v2900_v51 = vadd.f32 %v2899_v45, %v2702_v40  ;;  %v2683_v3 = vunpack.c.h.bf16 %v8821_v48  ;;  %v2911_v5 = vadd.f32 %v2663_v19, %v2653_v53 }
 0x396   : > { %v2889_v18 = vadd.f32 %v2888_v8, %v2741_v56  ;;  %v2771_v35 = vunpack.c.l.bf16 %v8822_v44  ;;  %v2781_v23 = vunpack.c.h.bf16 %v8822_v44  ;;  %v2732_v47 = vunpack.c.l.bf16 %v7535_v63 }
 0x397   : > { %v2879_v31 = vadd.f32 %v2878_v37, %v2790_v25  ;;  %v2901_v58 = vadd.f32 %v2900_v51, %v2712_v39  ;;  %v2693_v57 = vunpack.c.l.bf16 %v7464_v32  ;;  %v2912_v26 = vadd.f32 %v2911_v5, %v2673_v22 }
 0x398   : > { %v2890_v6 = vadd.f32 %v2889_v18, %v2751_v14  ;;  %v2742_v10 = vunpack.c.h.bf16 %v7535_v63  ;;  %v2703_v62 = vunpack.c.h.bf16 %v7464_v32  ;;  %v2654_v36 = vunpack.c.l.bf16 %v8823_v55 }
 0x399   : > { %v2880_v28 = vadd.f32 %v2879_v31, %v2800_v30  ;;  %v2902_v56 = vadd.f32 %v2901_v58, %v2722_v17  ;;  %v2913_v40 = vadd.f32 %v2912_v26, %v2683_v3  ;;  %v2664_v46 = vunpack.c.h.bf16 %v8823_v55 }
 0x39a   : > { %v2891_v27 = vadd.f32 %v2890_v6, %v2761_v7  ;;  %v2791_v53 = vunpack.c.l.bf16 %v8824_v60  ;;  %v2752_v19 = vunpack.c.l.bf16 %v7561_v29  ;;  %v2713_v33 = vunpack.c.l.bf16 %v7504_v13 }
 0x39b   : > { %v2970_v1 = vadd.f32 %v2960_v20, %v2880_v28  ;;  %v2903_v25 = vadd.f32 %v2902_v56, %v2732_v47  ;;  %v2914_v38 = vadd.f32 %v2913_v40, %v2693_v57  ;;  %v2674_v16 = vunpack.c.l.bf16 %v7497_v59  ;;  %v8825_v20 = vld [vmem:[#allocation77_spill] sm:$0xff] }
 0x39c   : > { %v2892_v34 = vadd.f32 %v2891_v27, %v2771_v35  ;;  %v2801_v14 = vunpack.c.h.bf16 %v8824_v60  ;;  %v2762_v8 = vunpack.c.h.bf16 %v7561_v29  ;;  %v2723_v39 = vunpack.c.h.bf16 %v7504_v13  ;;  %v2961_v35 = vld [vmem:[#allocation2 + $0x28] sm:$0xff] }
 0x39d   : > { %2980 = vst [vmem:[#allocation2 + $0x20] sm:$0xff] %v2970_v1  ;;  %v2684_v45 = vunpack.c.h.bf16 %v7497_v59  ;;  %v2904_v22 = vadd.f32 %v2903_v25, %v2742_v10  ;;  %v2915_v30 = vadd.f32 %v2914_v38, %v2703_v62  ;;  %v2926_v37 = vadd.f32 %v2664_v46, %v2654_v36 }
 0x39e   : > { %v2893_v48 = vadd.f32 %v2892_v34, %v2781_v23  ;;  %v2772_v7 = vunpack.c.l.bf16 %v7574_v54  ;;  %v2782_v17 = vunpack.c.h.bf16 %v7574_v54  ;;  %v2733_v18 = vunpack.c.l.bf16 %v7544_v43 }
 0x39f   : > { %v2694_v51 = vunpack.c.l.bf16 %v7540_v9  ;;  %v2905_v5 = vadd.f32 %v2904_v22, %v2752_v19  ;;  %v2916_v31 = vadd.f32 %v2915_v30, %v2713_v33  ;;  %v2927_v44 = vadd.f32 %v2926_v37, %v2674_v16  ;;  %v2962_v37 = vld [vmem:[#allocation2 + $0x30] sm:$0xff] }
 0x3a0   : > { %v2894_v3 = vadd.f32 %v2893_v48, %v2791_v53  ;;  %v2743_v47 = vunpack.c.h.bf16 %v7544_v43  ;;  %v2704_v23 = vunpack.c.h.bf16 %v7540_v9  ;;  %v2655_v6 = vunpack.c.l.bf16 %v8825_v20 }
 0x3a1   : > { %v2665_v58 = vunpack.c.h.bf16 %v8825_v20  ;;  %v2906_v26 = vadd.f32 %v2905_v5, %v2762_v8  ;;  %v2917_v28 = vadd.f32 %v2916_v31, %v2723_v39  ;;  %v2928_v10 = vadd.f32 %v2927_v44, %v2684_v45 }
 0x3a2   : > { %v2895_v57 = vadd.f32 %v2894_v3, %v2801_v14  ;;  %v2792_v62 = vunpack.c.l.bf16 %v7586_v15  ;;  %v2753_v55 = vunpack.c.l.bf16 %v7568_v21  ;;  %v2714_v36 = vunpack.c.l.bf16 %v7565_v11 }
 0x3a3   : > { %v2675_v27 = vunpack.c.l.bf16 %v7509_v24  ;;  %v2907_v40 = vadd.f32 %v2906_v26, %v2772_v7  ;;  %v2918_v46 = vadd.f32 %v2917_v28, %v2733_v18  ;;  %v2929_v1 = vadd.f32 %v2928_v10, %v2694_v51 }
 0x3a4   : > { %v2971_v56 = vadd.f32 %v2961_v35, %v2895_v57  ;;  %v2802_v60 = vunpack.c.h.bf16 %v7586_v15  ;;  %v2763_v53 = vunpack.c.h.bf16 %v7568_v21  ;;  %v2724_v19 = vunpack.c.h.bf16 %v7565_v11 }
 0x3a5   : > { %v2685_v33 = vunpack.c.h.bf16 %v7509_v24  ;;  %v2908_v34 = vadd.f32 %v2907_v40, %v2782_v17  ;;  %v2919_v25 = vadd.f32 %v2918_v46, %v2743_v47  ;;  %v2930_v38 = vadd.f32 %v2929_v1, %v2704_v23  ;;  %v8826_v40 = vld [vmem:[#allocation83_spill] sm:$0xff] }
 0x3a6   : > { %2981 = vst [vmem:[#allocation2 + $0x28] sm:$0xff] %v2971_v56  ;;  %v2941_v16 = vadd.f32 %v2665_v58, %v2655_v6  ;;  %v2773_v14 = vunpack.c.l.bf16 %v7580_v2  ;;  %v2734_v8 = vunpack.c.l.bf16 %v7577_v52  ;;  %v2695_v39 = vunpack.c.l.bf16 %v7549_v12 }
 0x3a7   : > { %v2909_v45 = vadd.f32 %v2908_v34, %v2792_v62  ;;  %v2920_v48 = vadd.f32 %v2919_v25, %v2753_v55  ;;  %v2931_v22 = vadd.f32 %v2930_v38, %v2714_v36  ;;  %v2783_v7 = vunpack.c.h.bf16 %v7580_v2  ;;  %v8827_v38 = vld [vmem:[#allocation89_spill] sm:$0xff] }
 0x3a8   : > { %v2942_v30 = vadd.f32 %v2941_v16, %v2675_v27  ;;  %v2744_v18 = vunpack.c.h.bf16 %v7577_v52  ;;  %v2705_v17 = vunpack.c.h.bf16 %v7549_v12  ;;  %v2793_v44 = vunpack.c.l.bf16 %v7592_v50 }
 0x3a9   : > { %v2910_v51 = vadd.f32 %v2909_v45, %v2802_v60  ;;  %v2921_v3 = vadd.f32 %v2920_v48, %v2763_v53  ;;  %v2932_v5 = vadd.f32 %v2931_v22, %v2724_v19  ;;  %v2754_v35 = vunpack.c.l.bf16 %v7589_v61  ;;  %v2963_v60 = vld [vmem:[#allocation2 + $0x38] sm:$0xff] }
 0x3aa   : > { %v2943_v31 = vadd.f32 %v2942_v30, %v2685_v33  ;;  %v2715_v47 = vunpack.c.l.bf16 %v7571_v42  ;;  %v2803_v57 = vunpack.c.h.bf16 %v7592_v50  ;;  %v2764_v26 = vunpack.c.h.bf16 %v7589_v61 }
 0x3ab   : > { %v2972_v23 = vadd.f32 %v2962_v37, %v2910_v51  ;;  %v2922_v20 = vadd.f32 %v2921_v3, %v2773_v14  ;;  %v2933_v6 = vadd.f32 %v2932_v5, %v2734_v8  ;;  %v2725_v62 = vunpack.c.h.bf16 %v7571_v42  ;;  %v2964_v5 = vld [vmem:[#allocation2 + $0x40] sm:$0xff] }
 0x3ac   : > { %v2944_v58 = vadd.f32 %v2943_v31, %v2695_v39  ;;  %v2774_v36 = vunpack.c.l.bf16 %v7598_v0  ;;  %v2735_v46 = vunpack.c.l.bf16 %v8826_v40  ;;  %v2784_v53 = vunpack.c.h.bf16 %v7598_v0  ;;  %v8828_v39 = vld [vmem:[#allocation86_spill] sm:$0xff] }
 0x3ad   : > { %2982 = vst [vmem:[#allocation2 + $0x30] sm:$0xff] %v2972_v23  ;;  %v2923_v28 = vadd.f32 %v2922_v20, %v2783_v7  ;;  %v2934_v10 = vadd.f32 %v2933_v6, %v2744_v18  ;;  %v2745_v34 = vunpack.c.h.bf16 %v8826_v40  ;;  %v2794_v16 = vunpack.c.l.bf16 %v8827_v38  ;;  %v8830_v23 = vld [vmem:[#allocation90_spill] sm:$0xff] }
 0x3ae   : > { %v2945_v55 = vadd.f32 %v2944_v58, %v2705_v17  ;;  %v2755_v45 = vunpack.c.l.bf16 %v8828_v39  ;;  %v2804_v22 = vunpack.c.h.bf16 %v8827_v38  ;;  %v2765_v37 = vunpack.c.h.bf16 %v8828_v39  ;;  %v8829_v17 = vld [vmem:[#allocation88_spill] sm:$0xff] }
 0x3af   : > { %v2924_v27 = vadd.f32 %v2923_v28, %v2793_v44  ;;  %v2935_v56 = vadd.f32 %v2934_v10, %v2754_v35  ;;  %v2775_v51 = vunpack.c.l.bf16 %v8829_v17  ;;  %v2785_v44 = vunpack.c.h.bf16 %v8829_v17  ;;  %v2965_v28 = vld [vmem:[#allocation2 + $0x48] sm:$0xff] }
 0x3b0   : > { %v2946_v1 = vadd.f32 %v2945_v55, %v2715_v47  ;;  %v2795_v20 = vunpack.c.l.bf16 %v8830_v23  ;;  %v2805_v58 = vunpack.c.h.bf16 %v8830_v23 }
 0x3b1   : > { %v2925_v19 = vadd.f32 %v2924_v27, %v2803_v57  ;;  %v2936_v33 = vadd.f32 %v2935_v56, %v2764_v26 }
 0x3b2   : > { %v2947_v25 = vadd.f32 %v2946_v1, %v2725_v62 }
 0x3b3   : > { %v2973_v14 = vadd.f32 %v2963_v60, %v2925_v19  ;;  %v2937_v8 = vadd.f32 %v2936_v33, %v2774_v36 }
 0x3b4   : > { %v2948_v48 = vadd.f32 %v2947_v25, %v2735_v46 }
 0x3b5   : > { %2983 = vst [vmem:[#allocation2 + $0x38] sm:$0xff] %v2973_v14  ;;  %v2938_v30 = vadd.f32 %v2937_v8, %v2784_v53 }
 0x3b6   : > { %v2949_v7 = vadd.f32 %v2948_v48, %v2745_v34 }
 0x3b7   : > { %v2939_v18 = vadd.f32 %v2938_v30, %v2794_v16 }
 0x3b8   : > { %v2950_v3 = vadd.f32 %v2949_v7, %v2755_v45 }
 0x3b9   : > { %v2940_v31 = vadd.f32 %v2939_v18, %v2804_v22 }
 0x3ba   : > { %v2951_v35 = vadd.f32 %v2950_v3, %v2765_v37 }
 0x3bb   : > { %v2974_v47 = vadd.f32 %v2964_v5, %v2940_v31 }
 0x3bc   : > { %v2952_v6 = vadd.f32 %v2951_v35, %v2775_v51 }
 0x3bd   : > { %2984 = vst [vmem:[#allocation2 + $0x40] sm:$0xff] %v2974_v47 }
 0x3be   : > { %v2953_v57 = vadd.f32 %v2952_v6, %v2785_v44 }
 0x3c0   : > { %v2954_v26 = vadd.f32 %v2953_v57, %v2795_v20 }
 0x3c2   : > { %v2955_v10 = vadd.f32 %v2954_v26, %v2805_v58 }
 0x3c4   : > { %v2975_v62 = vadd.f32 %v2965_v28, %v2955_v10 }
 0x3c6   : > { %2985 = vst [vmem:[#allocation2 + $0x48] sm:$0xff] %v2975_v62 }
 0x3c7 PF: > { %p5036_p13 = scmp.ne.s32.totalorder %s6123_s30, 1 }
 0x3c8   : > { %v5925_v55 = vld [vmem:[%s8598_s8 + $0x40] sm:$0xff] (!%p5036_p13)   ;;  %v5929_v40 = vld [vmem:[%s8598_s8 + $0x48] sm:$0xff] (!%p5036_p13)   ;;  %v5933_v53 = vld [vmem:[%s8598_s8 + $0x50] sm:$0xff] (!%p5036_p13)   ;;  %s5037_s24 = sshll.u32 (!%p5036_p13), %s6123_s30, 7  ;;  %s8930_s23 = sld [smem:[#allocation92_spill]] (!%p5036_p13) }
 0x3c9   : > { %2989 = sbr.rel (%p5036_p13) target bundleno = 1596 (0x63c), region = 117  ;;  %v5926_v36 = vld [vmem:[%s8598_s8] sm:$0xff] (!%p5036_p13)   ;;  %5147 = vmatprep.subr.bf16.mxu0 (!%p5036_p13), %v5925_v55  ;;  %v5930_v46 = vld [vmem:[%s8598_s8 + $0x8] sm:$0xff] (!%p5036_p13)   ;;  %v5934_v19 = vld [vmem:[%s8598_s8 + $0x10] sm:$0xff] (!%p5036_p13)   ;;  %v3008_v23 = vstv (!%p5036_p13), %s5037_s24  ;;  %s8931_s12 = sld [smem:[#allocation93_spill]] (!%p5036_p13) }
 0x3ca   : > { %v5927_v27 = vld [vmem:[%s8598_s8 + $0xc0] sm:$0xff] (!%p5036_p13)   ;;  %5148 = vmatpush3.bf16.msra.mxu0 (!%p5036_p13), %v5926_v36  ;;  %v5931_v1 = vld [vmem:[%s8598_s8 + $0xc8] sm:$0xff] (!%p5036_p13)   ;;  %v5935_v33 = vld [vmem:[%s8598_s8 + $0xd0] sm:$0xff] (!%p5036_p13)  }
 0x3cb   : > { %v5928_v56 = vld [vmem:[%s8598_s8 + $0x80] sm:$0xff] (!%p5036_p13)   ;;  %5169 = vmatprep.subr.bf16.mxu1 (!%p5036_p13), %v5927_v27  ;;  %5149 = vmatprep.subr.bf16.mxu0 (!%p5036_p13), %v5929_v40  ;;  %v5932_v60 = vld [vmem:[%s8598_s8 + $0x88] sm:$0xff] (!%p5036_p13)   ;;  %v5936_v34 = vld [vmem:[%s8598_s8 + $0x90] sm:$0xff] (!%p5036_p13)  }
 0x3cc   : > { %5170 = vmatpush3.bf16.msra.mxu1 (!%p5036_p13), %v5928_v56  ;;  %v5937_v25 = vld [vmem:[%s8598_s8 + $0x58] sm:$0xff] (!%p5036_p13)   ;;  %v5941_v48 = vld [vmem:[%s8598_s8 + $0x60] sm:$0xff] (!%p5036_p13)   ;;  %v5945_v3 = vld [vmem:[%s8598_s8 + $0x68] sm:$0xff] (!%p5036_p13)  }
 0x3cd   : > { %5171 = vmatprep.subr.bf16.mxu1 (!%p5036_p13), %v5931_v1  ;;  %v5938_v38 = vld [vmem:[%s8598_s8 + $0x18] sm:$0xff] (!%p5036_p13)   ;;  %v5942_v30 = vld [vmem:[%s8598_s8 + $0x20] sm:$0xff] (!%p5036_p13)   ;;  %v5946_v31 = vld [vmem:[%s8598_s8 + $0x28] sm:$0xff] (!%p5036_p13)  }
 0x3ce   : > { %5150 = vmatpush3.bf16.msra.mxu0 (!%p5036_p13), %v5930_v46  ;;  %v5939_v16 = vld [vmem:[%s8598_s8 + $0xd8] sm:$0xff] (!%p5036_p13)   ;;  %v5943_v7 = vld [vmem:[%s8598_s8 + $0xe0] sm:$0xff] (!%p5036_p13)   ;;  %v5947_v35 = vld [vmem:[%s8598_s8 + $0xe8] sm:$0xff] (!%p5036_p13)  }
 0x3cf   : > { %5151 = vmatprep.subr.bf16.mxu0 (!%p5036_p13), %v5933_v53  ;;  %v8831_v14 = vld [vmem:[#allocation16_spill] sm:$0xff] (!%p5036_p13)  ;;  %v5944_v17 = vld [vmem:[%s8598_s8 + $0xa0] sm:$0xff] (!%p5036_p13)   ;;  %v5948_v20 = vld [vmem:[%s8598_s8 + $0xa8] sm:$0xff] (!%p5036_p13)  }
 0x3d0   : > { %5172 = vmatpush3.bf16.msra.mxu1 %v5932_v60  ;;  %v2993_v8 = vadd.s32 8, %v8831_v14  ;;  %v5940_v39 = vld [vmem:[%s8598_s8 + $0x98] sm:$0xff]   ;;  %v2994_v45 = vadd.s32 16, %v8831_v14  ;;  %v2995_v22 = vadd.s32 24, %v8831_v14  ;;  %v2996_v37 = vadd.s32 32, %v8831_v14  ;;  %v5949_v58 = vld [vmem:[%s8598_s8 + $0x70] sm:$0xff]  }
 0x3d1   : > { %5173 = vmatprep.subr.bf16.mxu1 %v5935_v33  ;;  %v2997_v18 = vadd.s32 40, %v8831_v14  ;;  %v2998_v51 = vadd.s32 48, %v8831_v14  ;;  %v2999_v5 = vadd.s32 56, %v8831_v14  ;;  %v3000_v44 = vadd.s32 64, %v8831_v14  ;;  %v5950_v26 = vld [vmem:[%s8598_s8 + $0x30] sm:$0xff]   ;;  %v5953_v46 = vld [vmem:[%s8598_s8 + $0x78] sm:$0xff]  }
 0x3d2   : > { %5152 = vmatpush3.bf16.msra.mxu0 %v5934_v19  ;;  %v3001_v47 = vadd.s32 72, %v8831_v14  ;;  %v3002_v6 = vadd.s32 80, %v8831_v14  ;;  %v3003_v57 = vadd.s32 88, %v8831_v14  ;;  %v3004_v28 = vadd.s32 96, %v8831_v14  ;;  %v5951_v62 = vld [vmem:[%s8598_s8 + $0xf0] sm:$0xff]   ;;  %v5954_v53 = vld [vmem:[%s8598_s8 + $0x38] sm:$0xff]  }
 0x3d3   : > { %5153 = vmatprep.subr.bf16.mxu0 %v5937_v25  ;;  %v3009_v10 = vadd.s32 %v3008_v23, %v8831_v14  ;;  %v3005_v55 = vadd.s32 104, %v8831_v14  ;;  %v3010_v36 = vadd.s32 %v3008_v23, %v2993_v8  ;;  %v5952_v27 = vld [vmem:[%s8598_s8 + $0xb0] sm:$0xff]   ;;  %v3006_v56 = vadd.s32 112, %v8831_v14  ;;  %v5955_v33 = vld [vmem:[%s8598_s8 + $0xf8] sm:$0xff]   ;;  %v3528_v52 = vld [vmem:[#allocation2 + $0x8] sm:$0xff] }
 0x3d4   : > { %5174 = vmatpush3.bf16.msra.mxu1 %v5936_v34  ;;  %v3011_v40 = vadd.s32 %v3008_v23, %v2994_v45  ;;  %v3007_v1 = vadd.s32 120, %v8831_v14  ;;  %v3012_v60 = vadd.s32 %v3008_v23, %v2995_v22  ;;  %v3013_v19 = vadd.s32 %v3008_v23, %v2996_v37  ;;  %v8868_v0 = vld [vmem:[#allocation41_spill] sm:$0xff] }
 0x3d5   : > { %5175 = vmatprep.subr.bf16.mxu1 %v5939_v16  ;;  %vm3025_vm1 = vcmp.lt.s32.totalorder %v3009_v10, 225  ;;  %v3014_v34 = vadd.s32 %v3008_v23, %v2997_v18  ;;  %v3015_v25 = vadd.s32 %v3008_v23, %v2998_v51  ;;  %vm3026_vm2 = vcmp.lt.s32.totalorder %v3010_v36, 225  ;;  %v5957_v51 = vld [vmem:[%s8598_s8 + $0x140] sm:$0xff]  }
 0x3d6   : > { %5154 = vmatpush3.bf16.msra.mxu0 %v5938_v38  ;;  %v5956_v38 = vld [vmem:[%s8598_s8 + $0xb8] sm:$0xff]   ;;  %v3016_v16 = vadd.s32 %v3008_v23, %v2999_v5  ;;  %v3017_v14 = vadd.s32 %v3008_v23, %v3000_v44  ;;  %v3018_v8 = vadd.s32 %v3008_v23, %v3001_v47  ;;  %vm3027_vm3 = vcmp.lt.s32.totalorder %v3011_v40, 225  ;;  %vm3073_vm5 = vmpackc.low %vm3025_vm1, %vm3025_vm1  ;;  %v5959_v10 = vld [vmem:[%s8598_s8 + $0x1c0] sm:$0xff]  }
 0x3d7   : > { %5155 = vmatprep.subr.bf16.mxu0 %v5941_v48  ;;  %v3020_v45 = vadd.s32 %v3008_v23, %v3003_v57  ;;  %vm3028_vm4 = vcmp.lt.s32.totalorder %v3012_v60, 225  ;;  %v3021_v48 = vadd.s32 %v3008_v23, %v3004_v28  ;;  %v7888_v22 = vadd.s32 %v3008_v23, %v3005_v55  ;;  %vm3074_vm7 = vmpackc.low %vm3026_vm2, %vm3026_vm2  ;;  %v8837_v55 = vld [vmem:[#allocation28_spill] sm:$0xff]  ;;  %v8877_v59 = vld [vmem:[#allocation45_spill] sm:$0xff] }
 0x3d8   : > { %5176 = vmatpush3.bf16.msra.mxu1 %v5940_v39  ;;  %v3019_v39 = vadd.s32 %v3008_v23, %v3002_v6  ;;  %vm3029_vm6 = vcmp.lt.s32.totalorder %v3013_v19, 225  ;;  %v7893_v18 = vadd.s32 %v3008_v23, %v3007_v1  ;;  %vm3030_vm8 = vcmp.lt.s32.totalorder %v3014_v34, 225  ;;  %vm3075_vm9 = vmpackc.low %vm3027_vm3, %vm3027_vm3  ;;  %v8878_v42 = vld [vmem:[#allocation49_spill] sm:$0xff] }
 0x3d9   : > { %5177 = vmatprep.subr.bf16.mxu1 %v5943_v7  ;;  %v3023_v7 = vadd.s32 %v3008_v23, %v3006_v56  ;;  %vm3031_vm10 = vcmp.lt.s32.totalorder %v3015_v25, 225  ;;  %vm3032_vm11 = vcmp.lt.s32.totalorder %v3016_v16, 225  ;;  %vm3076_vm12 = vmpackc.low %vm3028_vm4, %vm3028_vm4  ;;  %vm3033_vm13 = vcmp.lt.s32.totalorder %v3017_v14, 225  ;;  %v5987_v47 = vld [vmem:[%s8598_s8 + $0x1f8] sm:$0xff]  }
 0x3da   : > { %5156 = vmatpush3.bf16.msra.mxu0 %v5942_v30  ;;  %v6144_v30 = vmov 0   ;;  %vm3034_vm14 = vcmp.lt.s32.totalorder %v3018_v8, 225  ;;  %vm3035_vm15 = vcmp.lt.s32.totalorder %v3019_v39, 225  ;;  %vm3077_vm0 = vmpackc.low %vm3029_vm6, %vm3029_vm6  ;;  %vm3036_vm1 = vcmp.lt.s32.totalorder %v3020_v45, 225 }
 0x3db   : > { %5157 = vmatprep.subr.bf16.mxu0 %v5945_v3  ;;  %v3089_v37 = vsel %vm3073_vm5, 65537, %v6144_v30  ;;  %v3091_v3 = vsel %vm3075_vm9, 65537, %v6144_v30  ;;  %vm3078_vm2 = vmpackc.low %vm3030_vm8, %vm3030_vm8  ;;  %v3093_v44 = vsel %vm3077_vm0, 65537, %v6144_v30  ;;  %vm3037_vm4 = vcmp.lt.s32.totalorder %v3021_v48, 225 }
 0x3dc   : > { %5178 = vmatpush3.bf16.msra.mxu1 %v5944_v17  ;;  %v3090_v17 = vsel %vm3074_vm7, 65537, %v6144_v30  ;;  %vm3038_vm5 = vcmp.lt.s32.totalorder %v7888_v22, 225  ;;  %vm3079_vm6 = vmpackc.low %vm3031_vm10, %vm3031_vm10  ;;  %v3094_v23 = vsel %vm3078_vm2, 65537, %v6144_v30  ;;  %vm3039_vm9 = vcmp.lt.s32.totalorder %v3023_v7, 225 }
 0x3dd   : > { %5179 = vmatprep.subr.bf16.mxu1 %v5947_v35  ;;  %v5038_v5 = vcombine.low %v3089_v37, %v3090_v17  ;;  %vm3080_vm7 = vmpackc.low %vm3032_vm11, %vm3032_vm11  ;;  %v5040_v57 = vcombine.low %v3093_v44, %v3094_v23  ;;  %v8843_v37 = vld [vmem:[#allocation35_spill] sm:$0xff]  ;;  %v8846_v23 = vld [vmem:[#allocation32_spill] sm:$0xff] }
 0x3de   : > { %5158 = vmatpush3.bf16.msra.mxu0 %v5946_v31  ;;  %v3092_v31 = vsel %vm3076_vm12, 65537, %v6144_v30  ;;  %vm3081_vm10 = vmpackc.low %vm3033_vm13, %vm3033_vm13 }
 0x3df   : > { %5159 = vmatprep.subr.bf16.mxu0 %v5949_v58  ;;  %v5039_v35 = vcombine.low %v3091_v3, %v3092_v31  ;;  %vm7910_vm3 = vcmp.ne.s16.totalorder %v5038_v5, 0  ;;  %v3095_v58 = vsel %vm3079_vm6, 65537, %v6144_v30  ;;  %vm3082_vm11 = vmpackc.low %vm3034_vm14, %vm3034_vm14  ;;  %v3097_v56 = vsel %vm3081_vm10, 65537, %v6144_v30  ;;  %v5998_v3 = vld [vmem:[%s8598_s8 + $0x220] sm:$0xff]  }
 0x3e0   : > { %5180 = vmatpush3.bf16.msra.mxu1 %v5948_v20  ;;  %v8834_v20 = vld [vmem:[#allocation26_spill] sm:$0xff]  ;;  %vm7940_vm12 = vcmp.ne.s16.totalorder %v5040_v57, 0  ;;  %vm3083_vm13 = vmpackc.low %vm3035_vm15, %vm3035_vm15  ;;  %v3098_v60 = vsel %vm3082_vm11, 65537, %v6144_v30  ;;  %vm3040_vm15 = vcmp.lt.s32.totalorder %v7893_v18, 225 }
 0x3e1   : > { %5181 = vmatprep.subr.bf16.mxu1 %v5951_v62  ;;  %v3138_v6 = vsel %vm7910_vm3, %v8834_v20, 0  ;;  %vm7924_vm8 = vcmp.ne.s16.totalorder %v5039_v35, 0  ;;  %v3096_v62 = vsel %vm3080_vm7, 65537, %v6144_v30  ;;  %vm3084_vm14 = vmpackc.low %vm3036_vm1, %vm3036_vm1  ;;  %v3099_v25 = vsel %vm3083_vm13, 65537, %v6144_v30 }
 0x3e2   : > { %5160 = vmatpush3.bf16.msra.mxu0 %v5950_v26  ;;  %v3218_v28 = vunpack.c.l.bf16 %v3138_v6  ;;  %v3148_v36 = vsel %vm7924_vm8, %v8837_v55, 0  ;;  %v5041_v40 = vcombine.low %v3095_v58, %v3096_v62  ;;  %vm3085_vm2 = vmpackc.low %vm3037_vm4, %vm3037_vm4  ;;  %v3100_v14 = vsel %vm3084_vm14, 65537, %v6144_v30  ;;  %v8849_v62 = vld [vmem:[#allocation25_spill] sm:$0xff] }
 0x3e3   : > { %5161 = vmatprep.subr.bf16.mxu0 %v5953_v46  ;;  %v3238_v1 = vunpack.c.l.bf16 %v3148_v36  ;;  %vm3086_vm1 = vmpackc.low %vm3038_vm5, %vm3038_vm5  ;;  %v3101_v45 = vsel %vm3085_vm2, 65537, %v6144_v30  ;;  %v5043_v18 = vcombine.low %v3099_v25, %v3100_v14  ;;  %v3159_v15 = vsel %vm7940_vm12, %v8877_v59, 0 }
 0x3e4   : > { %5182 = vmatpush3.bf16.msra.mxu1 %v5952_v27  ;;  %v3228_v27 = vunpack.c.h.bf16 %v3138_v6  ;;  %vm7953_vm0 = vcmp.ne.s16.totalorder %v5041_v40, 0  ;;  %vm3087_vm6 = vmpackc.low %vm3039_vm9, %vm3039_vm9  ;;  %v3102_v48 = vsel %vm3086_vm1, 65537, %v6144_v30  ;;  %v6000_v6 = vld [vmem:[%s8598_s8 + $0x228] sm:$0xff]  }
 0x3e5   : > { %5183 = vmatprep.subr.bf16.mxu1 %v5955_v33  ;;  %v3248_v33 = vunpack.c.h.bf16 %v3148_v36  ;;  %v3168_v17 = vsel %vm7953_vm0, %v8843_v37, 0  ;;  %vm3088_vm5 = vmpackc.low %vm3040_vm15, %vm3040_vm15  ;;  %v3103_v5 = vsel %vm3087_vm6, 65537, %v6144_v30  ;;  %v5044_v7 = vcombine.low %v3101_v45, %v3102_v48  ;;  %v8858_v37 = vld [vmem:[#allocation40_spill] sm:$0xff] }
 0x3e6   : > { %5162 = vmatpush3.bf16.msra.mxu0 %v5954_v53  ;;  %v8840_v53 = vld [vmem:[#allocation31_spill] sm:$0xff]  ;;  %v3392_v34 = vadd.f32 %v3228_v27, %v3218_v28  ;;  %v3104_v31 = vsel %vm3088_vm5, 65537, %v6144_v30  ;;  %v3278_v44 = vunpack.c.l.bf16 %v3168_v17  ;;  %vm7980_vm7 = vcmp.ne.s16.totalorder %v5043_v18, 0  ;;  %v7985_v28 = vld [vmem:[%s6324_s21] sm:$0xff] }
 0x3e7   : > { %5191 = vmatprep.subr.bf16.mxu0 %v5957_v51  ;;  %v3158_v19 = vsel %vm7940_vm12, %v8840_v53, 0  ;;  %v3288_v58 = vunpack.c.h.bf16 %v3168_v17  ;;  %v3137_v30 = vsel %vm7910_vm3, %v8849_v62, 0  ;;  %v7991_v27 = vld [vmem:[%s6329_s14] sm:$0xff]  ;;  %vm7996_vm9 = vcmp.ne.s16.totalorder %v5044_v7, 0  ;;  %v8860_v18 = vld [vmem:[#allocation39_spill] sm:$0xff] }
 0x3e8   : > { %5184 = vmatpush3.bf16.msra.mxu1 %v5956_v38  ;;  %v5042_v38 = vcombine.low %v3097_v56, %v3098_v60  ;;  %v3258_v8 = vunpack.c.l.bf16 %v3158_v19  ;;  %v3393_v39 = vadd.f32 %v3392_v34, %v3238_v1  ;;  %v3268_v51 = vunpack.c.h.bf16 %v3158_v19  ;;  %v8850_v56 = vld [vmem:[#allocation27_spill] sm:$0xff]  ;;  %v8853_v60 = vld [vmem:[#allocation36_spill] sm:$0xff]  ;;  %v8854_v19 = vld [vmem:[#allocation18_spill] sm:$0xff] }
 0x3e9   : > { %5213 = vmatprep.subr.bf16.mxu1 %v5959_v10  ;;  %v5045_v10 = vcombine.low %v3103_v5, %v3104_v31  ;;  %v3147_v40 = vsel %vm7924_vm8, %v8850_v56, 0  ;;  %v3188_v53 = vsel %vm7980_vm7, %v8853_v60, 0  ;;  %v3227_v14 = vunpack.c.h.bf16 %v3137_v30  ;;  %v8864_v60 = vld [vmem:[#allocation30_spill] sm:$0xff]  ;;  %v6002_v1 = vld [vmem:[%s8598_s8 + $0x230] sm:$0xff]  }
 0x3ea   : > { %vm7971_vm4 = vcmp.ne.s16.totalorder %v5042_v38, 0  ;;  %v3394_v22 = vadd.f32 %v3393_v39, %v3248_v33  ;;  %v3217_v38 = vunpack.c.l.bf16 %v3137_v30  ;;  %v8857_v39 = vld [vmem:[#allocation17_spill] sm:$0xff]  ;;  %v3140_v17 = vsel %vm7910_vm3, %v8858_v37, 0 }
 0x3eb   : > { %v3178_v20 = vsel %vm7971_vm4, %v8846_v23, 0  ;;  %vm8005_vm10 = vcmp.ne.s16.totalorder %v5045_v10, 0  ;;  %v3318_v5 = vunpack.c.l.bf16 %v3188_v53  ;;  %v8861_v23 = vld [vmem:[#allocation29_spill] sm:$0xff]  ;;  %v8863_v10 = vld [vmem:[#allocation43_spill] sm:$0xff]  ;;  %v3230_v33 = vunpack.c.h.bf16 %v3140_v17 }
 0x3ec   : > { %v3395_v35 = vadd.f32 %v3394_v22, %v3258_v8  ;;  %v3298_v55 = vunpack.c.l.bf16 %v3178_v20  ;;  %v3308_v34 = vunpack.c.h.bf16 %v3178_v20  ;;  %v3198_v22 = vsel %vm7996_vm9, %v8860_v18, 0  ;;  %v8866_v18 = vld [vmem:[#allocation37_spill] sm:$0xff] }
 0x3ed   : > { %v3157_v20 = vsel %vm7940_vm12, %v8861_v23, 0  ;;  %v3208_v62 = vsel %vm8005_vm10, %v8863_v10, 0  ;;  %v3338_v56 = vunpack.c.l.bf16 %v3198_v22  ;;  %v8043_v23 = vsel %vm7996_vm9, %v8866_v18, 0  ;;  %v6004_v8 = vld [vmem:[%s8598_s8 + $0x238] sm:$0xff]  }
 0x3ee   : > { %v3396_v57 = vadd.f32 %v3395_v35, %v3268_v51  ;;  %v8859_v51 = vld [vmem:[#allocation20_spill] sm:$0xff]  ;;  %v3328_v35 = vunpack.c.h.bf16 %v3188_v53  ;;  %v8033_v53 = vsel %vm7971_vm4, %v8864_v60, 0  ;;  %v3358_v10 = vunpack.c.l.bf16 %v3208_v62 }
 0x3ef   : > { %v3368_v60 = vunpack.c.h.bf16 %v3208_v62  ;;  %v3267_v48 = vunpack.c.h.bf16 %v3157_v20  ;;  %v8051_v18 = vsel %vm8005_vm10, %v8868_v0, 0  ;;  %v3337_v0 = vunpack.c.l.bf16 %v8043_v23 }
 0x3f0   : > { %v3397_v36 = vadd.f32 %v3396_v57, %v3278_v44  ;;  %v3237_v44 = vunpack.c.l.bf16 %v3147_v40 }
 0x3f2   : > { %v3398_v25 = vadd.f32 %v3397_v36, %v3288_v58  ;;  %v8862_v58 = vld [vmem:[#allocation33_spill] sm:$0xff]  ;;  %v3247_v36 = vunpack.c.h.bf16 %v3147_v40 }
 0x3f3   : > { %v3167_v57 = vsel %vm7953_vm0, %v8862_v58, 0 }
 0x3f4   : > { %v3399_v31 = vadd.f32 %v3398_v25, %v3298_v55  ;;  %v3377_v55 = vadd.f32 %v3227_v14, %v3217_v38  ;;  %v8865_v25 = vld [vmem:[#allocation34_spill] sm:$0xff]  ;;  %v8867_v38 = vld [vmem:[#allocation44_spill] sm:$0xff] }
 0x3f5   : > { %v8038_v37 = vsel %vm7980_vm7, %v8865_v25, 0  ;;  %v3150_v14 = vsel %vm7924_vm8, %v8867_v38, 0  ;;  %v3220_v25 = vunpack.c.l.bf16 %v3140_v17  ;;  %v8869_v38 = vld [vmem:[#allocation47_spill] sm:$0xff] }
 0x3f6   : > { %v3400_v30 = vadd.f32 %v3399_v31, %v3308_v34  ;;  %v3257_v34 = vunpack.c.l.bf16 %v3157_v20  ;;  %v3378_v40 = vadd.f32 %v3377_v55, %v3237_v44  ;;  %v3348_v31 = vunpack.c.h.bf16 %v3198_v22 }
 0x3f7   : > { %v3297_v44 = vunpack.c.l.bf16 %v8033_v53  ;;  %v3160_v22 = vsel %vm7940_vm12, %v8869_v38, 0  ;;  %v3240_v20 = vunpack.c.l.bf16 %v3150_v14  ;;  %v3317_v17 = vunpack.c.l.bf16 %v8038_v37 }
 0x3f8   : > { %v3401_v58 = vadd.f32 %v3400_v30, %v3318_v5  ;;  %v3379_v7 = vadd.f32 %v3378_v40, %v3247_v36  ;;  %v3277_v5 = vunpack.c.l.bf16 %v3167_v57  ;;  %v3287_v30 = vunpack.c.h.bf16 %v3167_v57 }
 0x3f9   : > { %v3327_v62 = vunpack.c.h.bf16 %v8038_v37  ;;  %v3250_v57 = vunpack.c.h.bf16 %v3150_v14  ;;  %v3422_v40 = vadd.f32 %v3230_v33, %v3220_v25  ;;  %v3260_v38 = vunpack.c.l.bf16 %v3160_v22  ;;  %v8871_v37 = vld [vmem:[#allocation38_spill] sm:$0xff]  ;;  %v8872_v33 = vld [vmem:[#allocation55_spill] sm:$0xff] }
 0x3fa   : > { %v3402_v45 = vadd.f32 %v3401_v58, %v3328_v35  ;;  %v3380_v61 = vadd.f32 %v3379_v7, %v3257_v34  ;;  %v3307_v35 = vunpack.c.h.bf16 %v8033_v53  ;;  %v8873_v14 = vld [vmem:[#allocation59_spill] sm:$0xff] }
 0x3fb   : > { %v3423_v9 = vadd.f32 %v3422_v40, %v3240_v20  ;;  %v8076_v25 = vsel %vm7980_vm7, %v8873_v14, 0  ;;  %v8874_v20 = vld [vmem:[#allocation42_spill] sm:$0xff]  ;;  %v8875_v40 = vld [vmem:[#allocation63_spill] sm:$0xff] }
 0x3fc   : > { %v3403_v55 = vadd.f32 %v3402_v45, %v3338_v56  ;;  %v3381_v58 = vadd.f32 %v3380_v61, %v3267_v48  ;;  %v8870_v56 = vld [vmem:[#allocation51_spill] sm:$0xff]  ;;  %v3180_v48 = vsel %vm7971_vm4, %v8872_v33, 0 }
 0x3fd   : > { %v3170_v34 = vsel %vm7953_vm0, %v8870_v56, 0  ;;  %v8084_v56 = vsel %vm7996_vm9, %v8875_v40, 0 }
 0x3fe   : > { %v3404_v36 = vadd.f32 %v3403_v55, %v3348_v31  ;;  %v3382_v11 = vadd.f32 %v3381_v58, %v3277_v5  ;;  %v3139_v31 = vsel %vm7910_vm3, %v8871_v37, 0  ;;  %v3270_v55 = vunpack.c.h.bf16 %v3160_v22  ;;  %v8876_v37 = vld [vmem:[#allocation67_spill] sm:$0xff] }
 0x3ff   : > { %v3424_v5 = vadd.f32 %v3423_v9, %v3250_v57  ;;  %v3149_v58 = vsel %vm7924_vm8, %v8874_v20, 0  ;;  %v8089_v33 = vsel %vm8005_vm10, %v8876_v37, 0  ;;  %v3219_v14 = vunpack.c.l.bf16 %v3139_v31 }
 0x400   : > { %v3405_v53 = vadd.f32 %v3404_v36, %v3358_v10  ;;  %v3383_v36 = vadd.f32 %v3382_v11, %v3287_v30  ;;  %v3229_v61 = vunpack.c.h.bf16 %v3139_v31  ;;  %v3280_v11 = vunpack.c.l.bf16 %v3170_v34 }
 0x401   : > { %v3425_v9 = vadd.f32 %v3424_v5, %v3260_v38  ;;  %v3290_v30 = vunpack.c.h.bf16 %v3170_v34  ;;  %v3300_v57 = vunpack.c.l.bf16 %v3180_v48  ;;  %v3239_v20 = vunpack.c.l.bf16 %v3149_v58 }
 0x402   : > { %v3406_v10 = vadd.f32 %v3405_v53, %v3368_v60  ;;  %v3384_v60 = vadd.f32 %v3383_v36, %v3297_v44  ;;  %v3310_v53 = vunpack.c.h.bf16 %v3180_v48  ;;  %v3320_v37 = vunpack.c.l.bf16 %v8076_v25 }
 0x403   : > { %v3426_v40 = vadd.f32 %v3425_v9, %v3270_v55  ;;  %v3330_v31 = vunpack.c.h.bf16 %v8076_v25  ;;  %v3407_v44 = vadd.f32 %v3229_v61, %v3219_v14  ;;  %v3340_v34 = vunpack.c.l.bf16 %v8084_v56  ;;  %v8880_v61 = vld [vmem:[#allocation48_spill] sm:$0xff] }
 0x404   : > { %v3538_v22 = vadd.f32 %v3528_v52, %v3406_v10  ;;  %v3385_v45 = vadd.f32 %v3384_v60, %v3307_v35  ;;  %v3249_v52 = vunpack.c.h.bf16 %v3149_v58  ;;  %v3350_v36 = vunpack.c.h.bf16 %v8084_v56  ;;  %v8879_v58 = vld [vmem:[#allocation53_spill] sm:$0xff] }
 0x405   : > { %v3427_v48 = vadd.f32 %v3426_v40, %v3280_v11  ;;  %v3259_v55 = vunpack.c.l.bf16 %v3159_v15  ;;  %v3408_v5 = vadd.f32 %v3407_v44, %v3239_v20  ;;  %v3169_v25 = vsel %vm7953_vm0, %v8878_v42, 0  ;;  %v8882_v42 = vld [vmem:[#allocation61_spill] sm:$0xff] }
 0x406   : > { %3548 = vst [vmem:[#allocation2 + $0x8] sm:$0xff] %v3538_v22  ;;  %v3573_v7 = vrot.slane %v3538_v22, 4  ;;  %v3386_v38 = vadd.f32 %v3385_v45, %v3317_v17  ;;  %v3179_v17 = vsel %vm7971_vm4, %v8879_v58, 0  ;;  %v3269_v45 = vunpack.c.h.bf16 %v3159_v15 }
 0x407   : > { %v3428_v59 = vadd.f32 %v3427_v48, %v3290_v30  ;;  %v3142_v56 = vsel %vm7910_vm3, %v8880_v61, 0  ;;  %v3370_v11 = vunpack.c.h.bf16 %v8089_v33  ;;  %v8881_v30 = vld [vmem:[#allocation57_spill] sm:$0xff]  ;;  %v8117_v40 = vsel %vm7996_vm9, %v8882_v42, 0 }
 0x408   : > { %v3574_v10 = vadd.f32 %v3573_v7, %v3538_v22  ;;  %v3387_v9 = vadd.f32 %v3386_v38, %v3327_v62  ;;  %v3409_v7 = vadd.f32 %v3408_v5, %v3249_v52  ;;  %v8112_v20 = vsel %vm7980_vm7, %v8881_v30, 0  ;;  %v8884_v48 = vld [vmem:[#allocation65_spill] sm:$0xff] }
 0x409   : > { %v3429_v62 = vadd.f32 %v3428_v59, %v3300_v57  ;;  %v3279_v15 = vunpack.c.l.bf16 %v3169_v25  ;;  %v8883_v38 = vunpack.c.h.bf16 %v8043_v23  ;;  %v8124_v57 = vsel %vm8005_vm10, %v8884_v48, 0 }
 0x40a   : > { %v3575_v60 = vrot.slane %v3574_v10, 2  ;;  %v3388_v22 = vadd.f32 %v3387_v9, %v3337_v0  ;;  %v3410_v52 = vadd.f32 %v3409_v7, %v3259_v55  ;;  %v3289_v5 = vunpack.c.h.bf16 %v3169_v25  ;;  %v8885_v9 = vld [vmem:[#allocation52_spill] sm:$0xff] }
 0x40b   : > { %v3430_v0 = vadd.f32 %v3429_v62, %v3310_v53  ;;  %v3152_v59 = vsel %vm7924_vm8, %v8885_v9, 0  ;;  %v3222_v58 = vunpack.c.l.bf16 %v3142_v56  ;;  %v8886_v55 = vunpack.c.l.bf16 %v8051_v18 }
 0x40c   : > { %v3576_v14 = vadd.f32 %v3575_v60, %v3574_v10  ;;  %v3389_v10 = vadd.f32 %v3388_v22, %v8883_v38  ;;  %v3411_v60 = vadd.f32 %v3410_v52, %v3269_v45  ;;  %v3232_v23 = vunpack.c.h.bf16 %v3142_v56  ;;  %v3527_v22 = vld [vmem:[#allocation2] sm:$0xff]  ;;  %v8887_v38 = vld [vmem:[#allocation56_spill] sm:$0xff] }
 0x40d   : > { %v3431_v30 = vadd.f32 %v3430_v0, %v3320_v37  ;;  %v3299_v53 = vunpack.c.l.bf16 %v3179_v17  ;;  %v3309_v62 = vunpack.c.h.bf16 %v3179_v17  ;;  %v3162_v25 = vsel %vm7940_vm12, %v8887_v38, 0 }
 0x40e   : > { %v3577_v44 = vrot.slane %v3576_v14, 1  ;;  %v3390_v7 = vadd.f32 %v3389_v10, %v8886_v55  ;;  %v3412_v42 = vadd.f32 %v3411_v60, %v3279_v15  ;;  %v8888_v52 = vunpack.c.h.bf16 %v8051_v18  ;;  %v8890_v18 = vld [vmem:[#allocation60_spill] sm:$0xff] }
 0x40f   : > { %v3432_v9 = vadd.f32 %v3431_v30, %v3330_v31  ;;  %v3242_v35 = vunpack.c.l.bf16 %v3152_v59  ;;  %v3252_v56 = vunpack.c.h.bf16 %v3152_v59  ;;  %v8889_v17 = vrot.slane %v7985_v28, %v8854_v19 }
 0x410   : > { %v3578_v61 = vadd.f32 %v3577_v44, %v3576_v14  ;;  %v3391_v48 = vadd.f32 %v3390_v7, %v8888_v52  ;;  %v3319_v14 = vunpack.c.l.bf16 %v8112_v20  ;;  %v3329_v44 = vunpack.c.h.bf16 %v8112_v20 }
 0x411   : > { %v3413_v37 = vadd.f32 %v3412_v42, %v3289_v5  ;;  %v3433_v0 = vadd.f32 %v3432_v9, %v3340_v34  ;;  %v3452_v60 = vadd.f32 %v3232_v23, %v3222_v58  ;;  %v3172_v31 = vsel %vm7953_vm0, %v8890_v18, 0  ;;  %v8893_v58 = vld [vmem:[#allocation68_spill] sm:$0xff]  ;;  %v8897_v18 = vld [vmem:[#allocation50_spill] sm:$0xff] }
 0x412   : > { %v3628_v45 = vmul.f32 0.0044444446, %v3578_v61  ;;  %v3537_v10 = vadd.f32 %v3527_v22, %v3391_v48  ;;  %v3339_v61 = vunpack.c.l.bf16 %v8117_v40  ;;  %v3262_v7 = vunpack.c.l.bf16 %v3162_v25  ;;  %v8892_v22 = vld [vmem:[#allocation64_spill] sm:$0xff] }
 0x413   : > { %v3414_v55 = vadd.f32 %v3413_v37, %v3299_v53  ;;  %v8891_v20 = vrot.slane %v7991_v27, %v8854_v19  ;;  %v3434_v30 = vadd.f32 %v3433_v0, %v3350_v36  ;;  %v3453_v42 = vadd.f32 %v3452_v60, %v3242_v35  ;;  %v8895_v35 = vld [vmem:[#allocation71_spill] sm:$0xff]  ;;  %v8896_v0 = vld [vmem:[#allocation46_spill] sm:$0xff] }
 0x414   : > { %v3692_v15 = vmul.f32 %v8889_v17, %v3628_v45  ;;  %3547 = vst [vmem:[#allocation2] sm:$0xff] %v3537_v10  ;;  %v3567_v59 = vrot.slane %v3537_v10, 4  ;;  %v3182_v34 = vsel %vm7971_vm4, %v8892_v22, 0  ;;  %v8154_v23 = vsel %vm7980_vm7, %v8893_v58, 0  ;;  %v3530_v17 = vld [vmem:[#allocation2 + $0x18] sm:$0xff] }
 0x415   : > { %v3415_v38 = vadd.f32 %v3414_v55, %v3309_v62  ;;  %v3272_v53 = vunpack.c.h.bf16 %v3162_v25  ;;  %v8894_v48 = vunpack.c.l.bf16 %v8089_v33  ;;  %v3454_v37 = vadd.f32 %v3453_v42, %v3252_v56 }
 0x416   : > { %v3756_v5 = vadd.f32 %v8891_v20, %v3692_v15  ;;  %v3568_v52 = vadd.f32 %v3567_v59, %v3537_v10  ;;  %v8161_v62 = vsel %vm7996_vm9, %v8895_v35, 0  ;;  %v3282_v15 = vunpack.c.l.bf16 %v3172_v31 }
 0x417   : > { %v3435_v9 = vadd.f32 %v3434_v30, %v8894_v48  ;;  %v3416_v36 = vadd.f32 %v3415_v38, %v3319_v14  ;;  %v3141_v60 = vsel %vm7910_vm3, %v8896_v0, 0  ;;  %v3455_v10 = vadd.f32 %v3454_v37, %v3262_v7 }
 0x418   : > { %v3766_v45 = vpack.c.bf16 %v3756_v5, %v3756_v5  ;;  %v3569_v25 = vrot.slane %v3568_v52, 2  ;;  %v3151_v33 = vsel %vm7924_vm8, %v8897_v18, 0  ;;  %v3708_v14 = vrot.slane %v7991_v27, %v8857_v39 }
 0x419   : > { %v3436_v55 = vadd.f32 %v3435_v9, %v3370_v11  ;;  %v3720_v56 = vrot.slane %v7991_v27, %v8859_v51  ;;  %v3349_v20 = vunpack.c.h.bf16 %v8117_v40  ;;  %v3417_v5 = vadd.f32 %v3416_v36, %v3329_v44  ;;  %v8899_v36 = vld [vmem:[#allocation74_spill] sm:$0xff] }
 0x41a   : > { %4448 = vmatprep.mubr.bf16.mxu0 %v3766_v45  ;;  %v3570_v59 = vadd.f32 %v3569_v25, %v3568_v52  ;;  %v3292_v42 = vunpack.c.h.bf16 %v3172_v31  ;;  %v3456_v38 = vadd.f32 %v3455_v10, %v3272_v53  ;;  %v3359_v11 = vunpack.c.l.bf16 %v8124_v57  ;;  %v8898_v31 = vld [vmem:[#allocation54_spill] sm:$0xff]  ;;  %v3529_v10 = vld [vmem:[#allocation2 + $0x10] sm:$0xff] }
 0x41b   : > { %v3540_v30 = vadd.f32 %v3530_v17, %v3436_v55  ;;  %v3418_v7 = vadd.f32 %v3417_v5, %v3339_v61  ;;  %v3221_v22 = vunpack.c.l.bf16 %v3141_v60  ;;  %v3231_v58 = vunpack.c.h.bf16 %v3141_v60 }
 0x41c   : > { %v3571_v45 = vrot.slane %v3570_v59, 1  ;;  %v3302_v9 = vunpack.c.l.bf16 %v3182_v34  ;;  %v3457_v37 = vadd.f32 %v3456_v38, %v3282_v15  ;;  %v3369_v35 = vunpack.c.h.bf16 %v8124_v57 }
 0x41d   : > { %3550 = vst [vmem:[#allocation2 + $0x18] sm:$0xff] %v3540_v30  ;;  %v3585_v48 = vrot.slane %v3540_v30, 4  ;;  %v3419_v0 = vadd.f32 %v3418_v7, %v3349_v20  ;;  %v3312_v18 = vunpack.c.h.bf16 %v3182_v34  ;;  %v3241_v40 = vunpack.c.l.bf16 %v3151_v33 }
 0x41e   : > { %v3572_v44 = vadd.f32 %v3571_v45, %v3570_v59  ;;  %v3458_v17 = vadd.f32 %v3457_v37, %v3292_v42  ;;  %v3161_v53 = vsel %vm7940_vm12, %v8898_v31, 0  ;;  %v8182_v60 = vsel %vm8005_vm10, %v8899_v36, 0 }
 0x41f   : > { %v3586_v52 = vadd.f32 %v3585_v48, %v3540_v30  ;;  %v3420_v61 = vadd.f32 %v3419_v0, %v3359_v11  ;;  %v3251_v25 = vunpack.c.h.bf16 %v3151_v33  ;;  %v3437_v15 = vadd.f32 %v3231_v58, %v3221_v22  ;;  %v8901_v48 = vld [vmem:[#allocation58_spill] sm:$0xff] }
 0x420   : > { %v3627_v55 = vmul.f32 0.0044444446, %v3572_v44  ;;  %v3322_v34 = vunpack.c.l.bf16 %v8154_v23  ;;  %v3459_v20 = vadd.f32 %v3458_v17, %v3302_v9  ;;  %v3332_v59 = vunpack.c.h.bf16 %v8154_v23  ;;  %v5958_v44 = vld [vmem:[%s8598_s8 + $0x100] sm:$0xff]  }
 0x421   : > { %v3587_v57 = vrot.slane %v3586_v52, 2  ;;  %v3421_v5 = vadd.f32 %v3420_v61, %v3369_v35  ;;  %v3261_v30 = vunpack.c.l.bf16 %v3161_v53  ;;  %v3438_v42 = vadd.f32 %v3437_v15, %v3241_v40 }
 0x422   : > { %v8900_v38 = vrot.slane %v7985_v28, %v8857_v39  ;;  %v3460_v45 = vadd.f32 %v3459_v20, %v3312_v18  ;;  %v3171_v33 = vsel %vm7953_vm0, %v8901_v48, 0  ;;  %v3342_v58 = vunpack.c.l.bf16 %v8161_v62  ;;  %v8905_v48 = vld [vmem:[#allocation75_spill] sm:$0xff] }
 0x423   : > { %v3588_v7 = vadd.f32 %v3587_v57, %v3586_v52  ;;  %v3539_v22 = vadd.f32 %v3529_v10, %v3421_v5  ;;  %v3271_v37 = vunpack.c.h.bf16 %v3161_v53  ;;  %v3439_v9 = vadd.f32 %v3438_v42, %v3251_v25  ;;  %v8902_v25 = vld [vmem:[#allocation62_spill] sm:$0xff]  ;;  %v8903_v10 = vld [vmem:[#allocation72_spill] sm:$0xff] }
 0x424   : > { %v3691_v11 = vmul.f32 %v8900_v38, %v3627_v55  ;;  %v3352_v23 = vunpack.c.h.bf16 %v8161_v62  ;;  %v3461_v40 = vadd.f32 %v3460_v45, %v3322_v34  ;;  %v3362_v52 = vunpack.c.l.bf16 %v8182_v60  ;;  %v8904_v42 = vld [vmem:[#allocation66_spill] sm:$0xff] }
 0x425   : > { %v3589_v0 = vrot.slane %v3588_v7, 1  ;;  %3549 = vst [vmem:[#allocation2 + $0x10] sm:$0xff] %v3539_v22  ;;  %v3579_v18 = vrot.slane %v3539_v22, 4  ;;  %v3281_v17 = vunpack.c.l.bf16 %v3171_v33  ;;  %v3440_v31 = vadd.f32 %v3439_v9, %v3261_v30 }
 0x426   : > { %v3755_v35 = vadd.f32 %v3708_v14, %v3691_v11  ;;  %v5961_v14 = vld [vmem:[%s8598_s8 + $0x148] sm:$0xff]   ;;  %v3462_v53 = vadd.f32 %v3461_v40, %v3332_v59  ;;  %v3181_v62 = vsel %vm7971_vm4, %v8902_v25, 0  ;;  %v3291_v55 = vunpack.c.h.bf16 %v3171_v33 }
 0x427   : > { %v3590_v36 = vadd.f32 %v3589_v0, %v3588_v7  ;;  %v3580_v15 = vadd.f32 %v3579_v18, %v3539_v22  ;;  %v3441_v57 = vadd.f32 %v3440_v31, %v3271_v37  ;;  %v3144_v34 = vsel %vm7910_vm3, %v8903_v10, 0  ;;  %v5962_v11 = vld [vmem:[%s8598_s8 + $0x108] sm:$0xff]  }
 0x428   : > { %v3765_v61 = vpack.c.bf16 %v3755_v35, %v3755_v35  ;;  %v3372_v5 = vunpack.c.h.bf16 %v8182_v60  ;;  %v3463_v30 = vadd.f32 %v3462_v53, %v3342_v58  ;;  %v3191_v59 = vsel %vm7980_vm7, %v8904_v42, 0  ;;  %v5965_v58 = vld [vmem:[%s8598_s8 + $0x150] sm:$0xff]  }
 0x429   : > { %v3630_v20 = vmul.f32 0.0044444446, %v3590_v36  ;;  %v3581_v38 = vrot.slane %v3580_v15, 2  ;;  %v3301_v7 = vunpack.c.l.bf16 %v3181_v62  ;;  %v3442_v45 = vadd.f32 %v3441_v57, %v3281_v17  ;;  %v8907_v40 = vld [vmem:[#allocation19_spill] sm:$0xff]  ;;  %v8908_v36 = vld [vmem:[#allocation69_spill] sm:$0xff] }
 0x42a   : > { %4449 = vmatmul.mubr.bf16.vlgmr.msra.gmra.mrb[0].mxu0 %v3765_v61  ;;  %v3154_v33 = vsel %vm7924_vm8, %v8905_v48, 0  ;;  %v8906_v60 = vrot.slane %v7985_v28, %v8859_v51  ;;  %v3464_v37 = vadd.f32 %v3463_v30, %v3352_v23  ;;  %v3224_v9 = vunpack.c.l.bf16 %v3144_v34  ;;  %v5966_v23 = vld [vmem:[%s8598_s8 + $0x110] sm:$0xff]  }
 0x42b   : > { %5192 = vmatpush3.bf16.msra.mxu0 %v5958_v44  ;;  %v3234_v35 = vunpack.c.h.bf16 %v3144_v34  ;;  %v3582_v0 = vadd.f32 %v3581_v38, %v3580_v15  ;;  %v3652_v44 = vrot.slane %v7985_v28, %v8907_v40  ;;  %v3311_v18 = vunpack.c.h.bf16 %v3181_v62  ;;  %v3532_v15 = vld [vmem:[#allocation2 + $0x28] sm:$0xff] }
 0x42c   : > { %v3694_v22 = vmul.f32 %v8906_v60, %v3630_v20  ;;  %5193 = vmatprep.subr.bf16.mxu0 %v5961_v14  ;;  %v3443_v17 = vadd.f32 %v3442_v45, %v3291_v55  ;;  %v3465_v61 = vadd.f32 %v3464_v37, %v3362_v52  ;;  %v3201_v14 = vsel %vm7996_vm9, %v8908_v36, 0  ;;  %v5969_v52 = vld [vmem:[%s8598_s8 + $0x158] sm:$0xff]  }
 0x42d   : > { %v3244_v53 = vunpack.c.l.bf16 %v3154_v33  ;;  %v3583_v25 = vrot.slane %v3582_v0, 1  ;;  %v3321_v57 = vunpack.c.l.bf16 %v3191_v59  ;;  %v3164_v51 = vsel %vm7940_vm12, %v7464_v32, 0 }
 0x42e   : > { %v3758_v31 = vadd.f32 %v3720_v56, %v3694_v22  ;;  %v3444_v62 = vadd.f32 %v3443_v17, %v3301_v7  ;;  %v3466_v55 = vadd.f32 %v3465_v61, %v3372_v5  ;;  %v3254_v10 = vunpack.c.h.bf16 %v3154_v33  ;;  %v8909_v7 = vld [vmem:[#allocation73_spill] sm:$0xff] }
 0x42f   : > { %5194 = vmatpush3.bf16.msra.mxu0 %v5962_v11  ;;  %v3482_v34 = vadd.f32 %v3234_v35, %v3224_v9  ;;  %v3584_v20 = vadd.f32 %v3583_v25, %v3582_v0  ;;  %v3716_v30 = vrot.slane %v7991_v27, %v8907_v40  ;;  %v3331_v42 = vunpack.c.h.bf16 %v3191_v59  ;;  %v5970_v5 = vld [vmem:[%s8598_s8 + $0x118] sm:$0xff]  }
 0x430   : > { %v3768_v56 = vpack.c.bf16 %v3758_v31, %v3758_v31  ;;  %5195 = vmatprep.subr.bf16.mxu0 %v5965_v58  ;;  %v3445_v38 = vadd.f32 %v3444_v62, %v3311_v18  ;;  %v3542_v11 = vadd.f32 %v3532_v15, %v3466_v55  ;;  %v8245_v32 = vsel %vm8005_vm10, %v8909_v7, 0  ;;  %v5973_v58 = vld [vmem:[%s8598_s8 + $0x160] sm:$0xff]   ;;  %v5977_v62 = vld [vmem:[%s8598_s8 + $0x168] sm:$0xff]  }
 0x431   : > { %v3264_v45 = vunpack.c.l.bf16 %v3164_v51  ;;  %v3483_v48 = vadd.f32 %v3482_v34, %v3244_v53  ;;  %v3629_v60 = vmul.f32 0.0044444446, %v3584_v20  ;;  %v3341_v33 = vunpack.c.l.bf16 %v3201_v14  ;;  %v8910_v53 = vld [vmem:[#allocation70_spill] sm:$0xff] }
 0x432   : > { %4488 = vmatprep.mubr.bf16.mxu1 %v3768_v56  ;;  %v3446_v22 = vadd.f32 %v3445_v38, %v3321_v57  ;;  %v3174_v59 = vsel %vm7953_vm0, %v7504_v13, 0  ;;  %3552 = vst [vmem:[#allocation2 + $0x28] sm:$0xff] %v3542_v11  ;;  %v3597_v37 = vrot.slane %v3542_v11, 4  ;;  %v3274_v9 = vunpack.c.h.bf16 %v3164_v51  ;;  %v5960_v57 = vld [vmem:[%s8598_s8 + $0x180] sm:$0xff]  }
 0x433   : > { %5196 = vmatpush3.bf16.msra.mxu0 %v5966_v23  ;;  %v3484_v35 = vadd.f32 %v3483_v48, %v3254_v10  ;;  %v3693_v0 = vmul.f32 %v3652_v44, %v3629_v60  ;;  %v3351_v40 = vunpack.c.h.bf16 %v3201_v14  ;;  %v3361_v18 = vunpack.c.l.bf16 %v8245_v32  ;;  %v5974_v23 = vld [vmem:[%s8598_s8 + $0x120] sm:$0xff]  }
 0x434   : > { %5197 = vmatprep.subr.bf16.mxu0 %v5969_v52  ;;  %v3447_v17 = vadd.f32 %v3446_v22, %v3331_v42  ;;  %v3598_v31 = vadd.f32 %v3597_v37, %v3542_v11  ;;  %v3284_v61 = vunpack.c.l.bf16 %v3174_v59  ;;  %v3143_v13 = vsel %vm7910_vm3, %v8910_v53, 0  ;;  %v8911_v38 = vld [vmem:[#allocation22_spill] sm:$0xff]  ;;  %v5981_v22 = vld [vmem:[%s8598_s8 + $0x170] sm:$0xff]  }
 0x435   : > { %v3485_v36 = vadd.f32 %v3484_v35, %v3264_v45  ;;  %v3757_v25 = vadd.f32 %v3716_v30, %v3693_v0  ;;  %v3371_v15 = vunpack.c.h.bf16 %v8245_v32  ;;  %v3184_v14 = vsel %vm7971_vm4, %v7544_v43, 0  ;;  %v5963_v43 = vld [vmem:[%s8598_s8 + $0x1c8] sm:$0xff]   ;;  %v8912_v0 = vld [vmem:[#allocation21_spill] sm:$0xff] }
 0x436   : > { %v3448_v44 = vadd.f32 %v3447_v17, %v3341_v33  ;;  %v3599_v51 = vrot.slane %v3598_v31, 2  ;;  %v3294_v56 = vunpack.c.h.bf16 %v3174_v59  ;;  %v3153_v55 = vsel %vm7924_vm8, %v7395_v4, 0  ;;  %v5978_v4 = vld [vmem:[%s8598_s8 + $0x128] sm:$0xff]  }
 0x437   : > { %5198 = vmatpush3.bf16.msra.mxu0 %v5970_v5  ;;  %v3486_v52 = vadd.f32 %v3485_v36, %v3274_v9  ;;  %v3767_v10 = vpack.c.bf16 %v3757_v25, %v3757_v25  ;;  %v3223_v20 = vunpack.c.l.bf16 %v3143_v13  ;;  %v3233_v30 = vunpack.c.h.bf16 %v3143_v13  ;;  %v5964_v33 = vld [vmem:[%s8598_s8 + $0x188] sm:$0xff]  }
 0x438   : > { %5199 = vmatprep.subr.bf16.mxu0 %v5973_v58  ;;  %v3449_v34 = vadd.f32 %v3448_v44, %v3351_v40  ;;  %v3600_v42 = vadd.f32 %v3599_v51, %v3598_v31  ;;  %v3664_v11 = vrot.slane %v7985_v28, %v8911_v38  ;;  %v3304_v7 = vunpack.c.l.bf16 %v3184_v14  ;;  %v3531_v58 = vld [vmem:[#allocation2 + $0x20] sm:$0xff]  ;;  %v5985_v44 = vld [vmem:[%s8598_s8 + $0x178] sm:$0xff]  }
 0x439   : > { %v3487_v32 = vadd.f32 %v3486_v52, %v3284_v61  ;;  %4489 = vmatmul.mubr.bf16.vlgmr.msra.gmra.mrb[0].mxu1 %v3767_v10  ;;  %v3728_v45 = vrot.slane %v7991_v27, %v8911_v38  ;;  %v3194_v60 = vsel %vm7980_vm7, %v7568_v21, 0  ;;  %v3243_v5 = vunpack.c.l.bf16 %v3153_v55  ;;  %v5967_v21 = vld [vmem:[%s8598_s8 + $0x1d0] sm:$0xff]   ;;  %v5971_v51 = vld [vmem:[%s8598_s8 + $0x1d8] sm:$0xff]  }
 0x43a   : > { %v3450_v48 = vadd.f32 %v3449_v34, %v3361_v18  ;;  %5214 = vmatpush3.bf16.msra.mxu1 %v5960_v57  ;;  %v3601_v59 = vrot.slane %v3600_v42, 1  ;;  %v3314_v37 = vunpack.c.h.bf16 %v3184_v14  ;;  %v3163_v9 = vsel %vm7940_vm12, %v7450_v41, 0  ;;  %v5982_v41 = vld [vmem:[%s8598_s8 + $0x130] sm:$0xff]  }
 0x43b   : > { %5200 = vmatpush3.bf16.msra.mxu0 %v5974_v23  ;;  %v3488_v27 = vadd.f32 %v3487_v32, %v3294_v56  ;;  %5215 = vmatprep.subr.bf16.mxu1 %v5963_v43  ;;  %v3660_v40 = vrot.slane %v7985_v28, %v8912_v0  ;;  %v3253_v18 = vunpack.c.h.bf16 %v3153_v55  ;;  %v3467_v17 = vadd.f32 %v3233_v30, %v3223_v20  ;;  %v8913_v30 = vld [vmem:[#allocation77_spill] sm:$0xff] }
 0x43c   : > { %5201 = vmatprep.subr.bf16.mxu0 %v5977_v62  ;;  %v3451_v35 = vadd.f32 %v3450_v48, %v3371_v15  ;;  %v3602_v31 = vadd.f32 %v3601_v59, %v3600_v42  ;;  %v3204_v61 = vsel %vm7996_vm9, %v7580_v2, 0  ;;  %v3324_v36 = vunpack.c.l.bf16 %v3194_v60  ;;  %v5968_v2 = vld [vmem:[%s8598_s8 + $0x190] sm:$0xff]   ;;  %v5989_v59 = vld [vmem:[%s8598_s8 + $0x240] sm:$0xff]  }
 0x43d   : > { %v3489_v53 = vadd.f32 %v3488_v27, %v3304_v7  ;;  %v8312_v25 = vsel %vm8005_vm10, %v7592_v50, 0  ;;  %v3263_v23 = vunpack.c.l.bf16 %v3163_v9  ;;  %v3468_v15 = vadd.f32 %v3467_v17, %v3243_v5 }
 0x43e   : > { %v3541_v13 = vadd.f32 %v3531_v58, %v3451_v35  ;;  %5216 = vmatpush3.bf16.msra.mxu1 %v5964_v33  ;;  %v3632_v14 = vmul.f32 0.0044444446, %v3602_v31  ;;  %v3334_v57 = vunpack.c.h.bf16 %v3194_v60  ;;  %v3173_v50 = vsel %vm7953_vm0, %v7492_v49, 0  ;;  %v5986_v49 = vld [vmem:[%s8598_s8 + $0x138] sm:$0xff]  }
 0x43f   : > { %5202 = vmatpush3.bf16.msra.mxu0 %v5978_v4  ;;  %v3490_v62 = vadd.f32 %v3489_v53, %v3314_v37  ;;  %5217 = vmatprep.subr.bf16.mxu1 %v5967_v21  ;;  %v3344_v52 = vunpack.c.l.bf16 %v3204_v61  ;;  %v3273_v55 = vunpack.c.h.bf16 %v3163_v9  ;;  %v3469_v10 = vadd.f32 %v3468_v15, %v3253_v18 }
 0x440   : > { %5203 = vmatprep.subr.bf16.mxu0 %v5981_v22  ;;  %3551 = vst [vmem:[#allocation2 + $0x20] sm:$0xff] %v3541_v13  ;;  %v3591_v56 = vrot.slane %v3541_v13, 4  ;;  %v3696_v43 = vmul.f32 %v3664_v11, %v3632_v14  ;;  %v3354_v34 = vunpack.c.h.bf16 %v3204_v61  ;;  %v3146_v42 = vsel %vm7910_vm3, %v8913_v30, 0  ;;  %v5972_v11 = vld [vmem:[%s8598_s8 + $0x198] sm:$0xff]   ;;  %v5976_v61 = vld [vmem:[%s8598_s8 + $0x1a0] sm:$0xff]  }
 0x441   : > { %v3491_v20 = vadd.f32 %v3490_v62, %v3324_v36  ;;  %v3183_v7 = vsel %vm7971_vm4, %v7535_v63, 0  ;;  %v3283_v32 = vunpack.c.l.bf16 %v3173_v50  ;;  %v3470_v4 = vadd.f32 %v3469_v10, %v3263_v23  ;;  %v5975_v63 = vld [vmem:[%s8598_s8 + $0x1e0] sm:$0xff]   ;;  %v5980_v10 = vld [vmem:[%s8598_s8 + $0x1a8] sm:$0xff]  }
 0x442   : > { %v3592_v38 = vadd.f32 %v3591_v56, %v3541_v13  ;;  %5218 = vmatpush3.bf16.msra.mxu1 %v5968_v2  ;;  %v3760_v48 = vadd.f32 %v3728_v45, %v3696_v43  ;;  %v3293_v5 = vunpack.c.h.bf16 %v3173_v50  ;;  %v3156_v33 = vsel %vm7924_vm8, %v7509_v24, 0  ;;  %v8914_v62 = vld [vmem:[#allocation81_spill] sm:$0xff] }
 0x443   : > { %5204 = vmatpush3.bf16.msra.mxu0 %v5982_v41  ;;  %v3492_v60 = vadd.f32 %v3491_v20, %v3334_v57  ;;  %5219 = vmatprep.subr.bf16.mxu1 %v5971_v51  ;;  %v3471_v58 = vadd.f32 %v3470_v4, %v3273_v55  ;;  %v3226_v37 = vunpack.c.l.bf16 %v3146_v42  ;;  %v3236_v27 = vunpack.c.h.bf16 %v3146_v42  ;;  %v3534_v51 = vld [vmem:[#allocation2 + $0x38] sm:$0xff]  ;;  %v8371_v43 = vld [vmem:[%s6329_s14] sm:$0xff] }
 0x444   : > { %5205 = vmatprep.subr.bf16.mxu0 %v5985_v44  ;;  %v3593_v22 = vrot.slane %v3592_v38, 2  ;;  %v3770_v45 = vpack.c.bf16 %v3760_v48, %v3760_v48  ;;  %v3364_v9 = vunpack.c.l.bf16 %v8312_v25  ;;  %v3193_v24 = vsel %vm7980_vm7, %v7561_v29, 0  ;;  %v5979_v29 = vld [vmem:[%s8598_s8 + $0x1e8] sm:$0xff]   ;;  %v8915_v20 = vld [vmem:[#allocation84_spill] sm:$0xff] }
 0x445   : > { %v3493_v21 = vadd.f32 %v3492_v60, %v3344_v52  ;;  %v3303_v18 = vunpack.c.l.bf16 %v3183_v7  ;;  %v3472_v17 = vadd.f32 %v3471_v58, %v3283_v32  ;;  %v3246_v31 = vunpack.c.l.bf16 %v3156_v33  ;;  %v8916_v60 = vld [vmem:[#allocation83_spill] sm:$0xff]  ;;  %v8917_v58 = vld [vmem:[#allocation76_spill] sm:$0xff] }
 0x446   : > { %v3594_v35 = vadd.f32 %v3593_v22, %v3592_v38  ;;  %5220 = vmatpush3.bf16.msra.mxu1 %v5972_v11  ;;  %4528 = vmatprep.mubr.bf16.mxu0 %v3770_v45  ;;  %v3374_v36 = vunpack.c.h.bf16 %v8312_v25  ;;  %v3313_v41 = vunpack.c.h.bf16 %v3183_v7  ;;  %v3166_v13 = vsel %vm7940_vm12, %v7549_v12, 0 }
 0x447   : > { %5206 = vmatpush3.bf16.msra.mxu0 %v5986_v49  ;;  %v3494_v53 = vadd.f32 %v3493_v21, %v3354_v34  ;;  %5221 = vmatprep.subr.bf16.mxu1 %v5975_v63  ;;  %v3473_v15 = vadd.f32 %v3472_v17, %v3293_v5  ;;  %v3256_v2 = vunpack.c.h.bf16 %v3156_v33  ;;  %v3512_v44 = vadd.f32 %v3236_v27, %v3226_v37  ;;  %v5983_v49 = vld [vmem:[%s8598_s8 + $0x1f0] sm:$0xff]  }
 0x448   : > { %v3595_v23 = vrot.slane %v3594_v35, 1  ;;  %5235 = vmatprep.subr.bf16.mxu0 %v5989_v59  ;;  %v3203_v25 = vsel %vm7996_vm9, %v7574_v54, 0  ;;  %v3323_v57 = vunpack.c.l.bf16 %v3193_v24  ;;  %v3176_v12 = vsel %vm7953_vm0, %v8914_v62, 0  ;;  %v5984_v27 = vld [vmem:[%s8598_s8 + $0x1b0] sm:$0xff]  }
 0x449   : > { %v3495_v14 = vadd.f32 %v3494_v53, %v3364_v9  ;;  %v3474_v56 = vadd.f32 %v3473_v15, %v3303_v18  ;;  %v3266_v52 = vunpack.c.l.bf16 %v3166_v13  ;;  %v3513_v55 = vadd.f32 %v3512_v44, %v3246_v31  ;;  %v5990_v31 = vld [vmem:[%s8598_s8 + $0x200] sm:$0xff]   ;;  %v5988_v44 = vld [vmem:[%s8598_s8 + $0x1b8] sm:$0xff]  }
 0x44a   : > { %v3596_v50 = vadd.f32 %v3595_v23, %v3594_v35  ;;  %5222 = vmatpush3.bf16.msra.mxu1 %v5976_v61  ;;  %v3724_v54 = vrot.slane %v8371_v43, %v8912_v0  ;;  %v8378_v30 = vsel %vm8005_vm10, %v8915_v20, 0  ;;  %v3333_v42 = vunpack.c.h.bf16 %v3193_v24  ;;  %v8918_v24 = vld [vmem:[#allocation86_spill] sm:$0xff]  ;;  %v5993_v20 = vld [vmem:[%s8598_s8 + $0x250] sm:$0xff]  }
 0x44b   : > { %v3496_v34 = vadd.f32 %v3495_v14, %v3374_v36  ;;  %5223 = vmatprep.subr.bf16.mxu1 %v5979_v29  ;;  %v3475_v7 = vadd.f32 %v3474_v56, %v3313_v41  ;;  %v3276_v32 = vunpack.c.h.bf16 %v3166_v13  ;;  %v3514_v4 = vadd.f32 %v3513_v55, %v3256_v2  ;;  %v8919_v36 = vld [vmem:[#allocation78_spill] sm:$0xff]  ;;  %v8920_v56 = vld [vmem:[#allocation88_spill] sm:$0xff] }
 0x44c   : > { %v3631_v38 = vmul.f32 0.0044444446, %v3596_v50  ;;  %v3343_v48 = vunpack.c.l.bf16 %v3203_v25  ;;  %v3186_v5 = vsel %vm7971_vm4, %v8916_v60, 0  ;;  %v3286_v33 = vunpack.c.l.bf16 %v3176_v12  ;;  %v5991_v23 = vld [vmem:[%s8598_s8 + $0x248] sm:$0xff]  }
 0x44d   : > { %v3544_v11 = vadd.f32 %v3534_v51, %v3496_v34  ;;  %v3476_v22 = vadd.f32 %v3475_v7, %v3323_v57  ;;  %v3515_v59 = vadd.f32 %v3514_v4, %v3266_v52  ;;  %v3145_v37 = vsel %vm7910_vm3, %v8917_v58, 0  ;;  %v5992_v51 = vld [vmem:[%s8598_s8 + $0x208] sm:$0xff]   ;;  %v8431_v7 = vld [vmem:[%s6324_s21] sm:$0xff] }
 0x44e   : > { %v3695_v63 = vmul.f32 %v3660_v40, %v3631_v38  ;;  %5224 = vmatpush3.bf16.msra.mxu1 %v5980_v10  ;;  %v3353_v9 = vunpack.c.h.bf16 %v3203_v25  ;;  %v3363_v21 = vunpack.c.l.bf16 %v8378_v30  ;;  %v8399_v28 = vsel %vm7980_vm7, %v8918_v24, 0  ;;  %v8921_v10 = vld [vmem:[#allocation79_spill] sm:$0xff] }
 0x44f   : > { %3554 = vst [vmem:[#allocation2 + $0x38] sm:$0xff] %v3544_v11  ;;  %v3609_v45 = vrot.slane %v3544_v11, 4  ;;  %5225 = vmatprep.subr.bf16.mxu1 %v5983_v49  ;;  %v3477_v40 = vadd.f32 %v3476_v22, %v3333_v42  ;;  %v3296_v35 = vunpack.c.h.bf16 %v3176_v12  ;;  %v3516_v18 = vadd.f32 %v3515_v59, %v3276_v32  ;;  %v8922_v32 = vld [vmem:[#allocation24_spill] sm:$0xff]  ;;  %v8923_v59 = vld [vmem:[#allocation90_spill] sm:$0xff] }
 0x450   : > { %v3759_v0 = vadd.f32 %v3724_v54, %v3695_v63  ;;  %v3306_v61 = vunpack.c.l.bf16 %v3186_v5  ;;  %v3155_v53 = vsel %vm7924_vm8, %v8919_v36, 0  ;;  %v3225_v41 = vunpack.c.l.bf16 %v3145_v37  ;;  %v5994_v22 = vld [vmem:[%s8598_s8 + $0x210] sm:$0xff]   ;;  %v5996_v36 = vld [vmem:[%s8598_s8 + $0x218] sm:$0xff]  }
 0x451   : > { %v3610_v17 = vadd.f32 %v3609_v45, %v3544_v11  ;;  %v3478_v29 = vadd.f32 %v3477_v40, %v3343_v48  ;;  %v3517_v15 = vadd.f32 %v3516_v18, %v3286_v33  ;;  %v3235_v2 = vunpack.c.h.bf16 %v3145_v37  ;;  %v3533_v11 = vld [vmem:[#allocation2 + $0x30] sm:$0xff] }
 0x452   : > { %v3769_v13 = vpack.c.bf16 %v3759_v0, %v3759_v0  ;;  %5226 = vmatpush3.bf16.msra.mxu1 %v5984_v27  ;;  %v3373_v25 = vunpack.c.h.bf16 %v8378_v30  ;;  %v3316_v57 = vunpack.c.h.bf16 %v3186_v5  ;;  %v3245_v12 = vunpack.c.l.bf16 %v3155_v53  ;;  %v8924_v27 = vld [vmem:[#allocation80_spill] sm:$0xff] }
 0x453   : > { %v3611_v14 = vrot.slane %v3610_v17, 2  ;;  %5227 = vmatprep.subr.bf16.mxu1 %v5987_v47  ;;  %v3479_v26 = vadd.f32 %v3478_v29, %v3353_v9  ;;  %v3518_v62 = vadd.f32 %v3517_v15, %v3296_v35  ;;  %v3206_v52 = vsel %vm7996_vm9, %v8920_v56, 0 }
 0x454   : > { %4529 = vmatmul.mubr.bf16.vlgmr.msra.gmra.mrb[4].mxu0 %v3769_v13  ;;  %v3326_v55 = vunpack.c.l.bf16 %v8399_v28  ;;  %v3165_v54 = vsel %vm7940_vm12, %v8921_v10, 0  ;;  %v3255_v42 = vunpack.c.h.bf16 %v3155_v53  ;;  %v3497_v49 = vadd.f32 %v3235_v2, %v3225_v41  ;;  %v8925_v41 = vld [vmem:[#allocation82_spill] sm:$0xff] }
 0x455   : > { %v3612_v50 = vadd.f32 %v3611_v14, %v3610_v17  ;;  %5236 = vmatpush3.bf16.msra.mxu0 %v5990_v31  ;;  %v3480_v34 = vadd.f32 %v3479_v26, %v3363_v21  ;;  %v3519_v30 = vadd.f32 %v3518_v62, %v3306_v61  ;;  %v3672_v4 = vrot.slane %v8431_v7, %v8922_v32  ;;  %v5995_v21 = vld [vmem:[%s8598_s8 + $0x258] sm:$0xff]  }
 0x456   : > { %5237 = vmatprep.subr.bf16.mxu0 %v5991_v23  ;;  %5228 = vmatpush3.bf16.msra.mxu1 %v5988_v44  ;;  %v3336_v46 = vunpack.c.h.bf16 %v8399_v28  ;;  %v3265_v5 = vunpack.c.l.bf16 %v3165_v54  ;;  %v3498_v33 = vadd.f32 %v3497_v49, %v3245_v12  ;;  %v3216_v58 = vsel %vm8005_vm10, %v8923_v59, 0  ;;  %v5997_v23 = vld [vmem:[%s8598_s8 + $0x260] sm:$0xff]  }
 0x457   : > { %v3613_v38 = vrot.slane %v3612_v50, 1  ;;  %v3481_v48 = vadd.f32 %v3480_v34, %v3373_v25  ;;  %v3520_v60 = vadd.f32 %v3519_v30, %v3316_v57  ;;  %v3346_v37 = vunpack.c.l.bf16 %v3206_v52 }
 0x458   : > { %v3175_v45 = vsel %vm7953_vm0, %v8924_v27, 0  ;;  %v3275_v28 = vunpack.c.h.bf16 %v3165_v54  ;;  %v3499_v47 = vadd.f32 %v3498_v33, %v3255_v42  ;;  %v3736_v40 = vrot.slane %v8371_v43, %v8922_v32  ;;  %v8927_v32 = vld [vmem:[#allocation23_spill] sm:$0xff]  ;;  %v8929_v27 = vld [vmem:[#allocation89_spill] sm:$0xff] }
 0x459   : > { %v3614_v63 = vadd.f32 %v3613_v38, %v3612_v50  ;;  %5238 = vmatpush3.bf16.msra.mxu0 %v5992_v51  ;;  %v3543_v9 = vadd.f32 %v3533_v11, %v3481_v48  ;;  %v3521_v24 = vadd.f32 %v3520_v60, %v3326_v55  ;;  %v3356_v35 = vunpack.c.h.bf16 %v3206_v52  ;;  %v8926_v51 = vld [vmem:[#allocation85_spill] sm:$0xff]  ;;  %v5999_v55 = vld [vmem:[%s8598_s8 + $0x268] sm:$0xff]   ;;  %v6001_v60 = vld [vmem:[%s8598_s8 + $0x270] sm:$0xff]  }
 0x45a   : > { %5239 = vmatprep.subr.bf16.mxu0 %v5993_v20  ;;  %v3285_v31 = vunpack.c.l.bf16 %v3175_v45  ;;  %v3500_v16 = vadd.f32 %v3499_v47, %v3265_v5  ;;  %v3366_v53 = vunpack.c.l.bf16 %v3216_v58  ;;  %v3185_v13 = vsel %vm7971_vm4, %v8925_v41, 0  ;;  %v3536_v20 = vld [vmem:[#allocation2 + $0x48] sm:$0xff] }
 0x45b   : > { %v3634_v0 = vmul.f32 0.0044444446, %v3614_v63  ;;  %3553 = vst [vmem:[#allocation2 + $0x30] sm:$0xff] %v3543_v9  ;;  %v3603_v18 = vrot.slane %v3543_v9, 4  ;;  %v3522_v17 = vadd.f32 %v3521_v24, %v3336_v46  ;;  %v3295_v2 = vunpack.c.h.bf16 %v3175_v45  ;;  %v8928_v11 = vld [vmem:[#allocation87_spill] sm:$0xff] }
 0x45c   : > { %v3501_v44 = vadd.f32 %v3500_v16, %v3275_v28  ;;  %v3376_v25 = vunpack.c.h.bf16 %v3216_v58  ;;  %v3305_v62 = vunpack.c.l.bf16 %v3185_v13  ;;  %v3195_v56 = vsel %vm7980_vm7, %v8926_v51, 0  ;;  %v3702_v41 = vld [vmem:[%s6329_s14 + $0x8] sm:$0x3] }
 0x45d   : > { %v3698_v61 = vmul.f32 %v3672_v4, %v3634_v0  ;;  %5240 = vmatpush3.bf16.msra.mxu0 %v5994_v22  ;;  %v3604_v29 = vadd.f32 %v3603_v18, %v3543_v9  ;;  %v3523_v15 = vadd.f32 %v3522_v17, %v3346_v37  ;;  %v3315_v54 = vunpack.c.h.bf16 %v3185_v13  ;;  %v3535_v13 = vld [vmem:[#allocation2 + $0x40] sm:$0xff] }
 0x45e   : > { %5241 = vmatprep.subr.bf16.mxu0 %v5995_v21  ;;  %v3502_v12 = vadd.f32 %v3501_v44, %v3285_v31  ;;  %v3325_v49 = vunpack.c.l.bf16 %v3195_v56  ;;  %v3668_v4 = vrot.slane %v8431_v7, %v8927_v32  ;;  %v3205_v46 = vsel %vm7996_vm9, %v8928_v11, 0 }
 0x45f   : > { %v3762_v14 = vadd.f32 %v3736_v40, %v3698_v61  ;;  %v3605_v26 = vrot.slane %v3604_v29, 2  ;;  %v3524_v57 = vadd.f32 %v3523_v15, %v3356_v35  ;;  %v3335_v33 = vunpack.c.h.bf16 %v3195_v56  ;;  %v3638_v61 = vld [vmem:[%s6324_s21 + $0x8] sm:$0x3] }
 0x460   : > { %v3503_v34 = vadd.f32 %v3502_v12, %v3295_v2  ;;  %v3732_v7 = vrot.slane %v8371_v43, %v8927_v32  ;;  %v3345_v58 = vunpack.c.l.bf16 %v3205_v46  ;;  %v3215_v45 = vsel %vm8005_vm10, %v8929_v27, 0  ;;  %v6003_v43 = vld [vmem:[%s8598_s8 + $0x278] sm:$0xff]   ;;  %v6010_v32 = vld [vmem:[%s8600_s10 + $0x28] sm:$0xff]  }
 0x461   : > { %v3772_v50 = vpack.c.bf16 %v3762_v14, %v3762_v14  ;;  %5242 = vmatpush3.bf16.msra.mxu0 %v5996_v36  ;;  %v3606_v52 = vadd.f32 %v3605_v26, %v3604_v29  ;;  %v3525_v10 = vadd.f32 %v3524_v57, %v3366_v53  ;;  %v3355_v24 = vunpack.c.h.bf16 %v3205_v46 }
 0x462   : > { %5243 = vmatprep.subr.bf16.mxu0 %v5997_v23  ;;  %v3504_v38 = vadd.f32 %v3503_v34, %v3305_v62  ;;  %v3365_v40 = vunpack.c.l.bf16 %v3215_v45  ;;  %v3375_v31 = vunpack.c.h.bf16 %v3215_v45  ;;  %v3680_v23 = vrot.slane %v3638_v61, %v8854_v19 }
 0x463   : > { %4568 = vmatprep.mubr.bf16.mxu1 %v3772_v50  ;;  %v3607_v30 = vrot.slane %v3606_v52, 1  ;;  %v3526_v42 = vadd.f32 %v3525_v10, %v3376_v25  ;;  %v3744_v44 = vrot.slane %v3702_v41, %v8854_v19  ;;  %v3676_v56 = vrot.slane %v3638_v61, %v8857_v39 }
 0x464   : > { %v3505_v63 = vadd.f32 %v3504_v38, %v3315_v54  ;;  %v6009_v38 = vld [vmem:[%s8600_s10 + $0x20] sm:$0xff]   ;;  %vm6146_vm3 = vmmov 0   ;;  %vm4723_vm8 = vcmask 8192  }
 0x465   : > { %5244 = vmatpush3.bf16.msra.mxu0 %v5998_v3  ;;  %v3608_v48 = vadd.f32 %v3607_v30, %v3606_v52  ;;  %v3546_v5 = vadd.f32 %v3536_v20, %v3526_v42  ;;  %v6005_v20 = vld [vmem:[%s8600_s10] sm:$0xff]   ;;  %v6145_v30 = vmov 0.0   ;;  %v6006_v42 = vld [vmem:[%s8600_s10 + $0x8] sm:$0xff]  }
 0x466   : > { %5245 = vmatprep.subr.bf16.mxu0 %v5999_v55  ;;  %v3506_v37 = vadd.f32 %v3505_v63, %v3325_v49  ;;  %v3740_v55 = vrot.slane %v3702_v41, %v8857_v39  ;;  %5286 = vmatprep.subr.bf16.mxu1 %v6145_v30  ;;  %v6007_v39 = vld [vmem:[%s8600_s10 + $0x10] sm:$0xff]   ;;  %v6008_v49 = vld [vmem:[%s8600_s10 + $0x18] sm:$0xff]  }
 0x467   : > { %v3633_v22 = vmul.f32 0.0044444446, %v3608_v48  ;;  %3556 = vst [vmem:[#allocation2 + $0x48] sm:$0xff] %v3546_v5  ;;  %v3621_v59 = vrot.slane %v3546_v5, 4 }
 0x468   : > { %v3507_v28 = vadd.f32 %v3506_v37, %v3335_v33  ;;  %v3935_v33 = vld [vmem:[%s8930_s23] sm:$0x1] }
 0x469   : > { %5246 = vmatpush3.bf16.msra.mxu0 %v6000_v6  ;;  %v3697_v9 = vmul.f32 %v3668_v4, %v3633_v22  ;;  %v3622_v21 = vadd.f32 %v3621_v59, %v3546_v5  ;;  %v6011_v4 = vld [vmem:[%s8600_s10 + $0x30] sm:$0xff]   ;;  %v6012_v6 = vld [vmem:[%s8600_s10 + $0x38] sm:$0xff]  }
 0x46a   : > { %5247 = vmatprep.subr.bf16.mxu0 %v6001_v60  ;;  %v3508_v35 = vadd.f32 %v3507_v28, %v3345_v58 }
 0x46b   : > { %v3761_v47 = vadd.f32 %v3732_v7, %v3697_v9  ;;  %v3623_v0 = vrot.slane %v3622_v21, 2 }
 0x46c   : > { %v3509_v16 = vadd.f32 %v3508_v35, %v3355_v24 }
 0x46d   : > { %5248 = vmatpush3.bf16.msra.mxu0 %v6002_v1  ;;  %v3771_v18 = vpack.c.bf16 %v3761_v47, %v3761_v47  ;;  %v3624_v17 = vadd.f32 %v3623_v0, %v3622_v21 }
 0x46e   : > { %5249 = vmatprep.subr.bf16.mxu0 %v6003_v43  ;;  %v3510_v53 = vadd.f32 %v3509_v16, %v3365_v40 }
 0x46f   : > { %4569 = vmatmul.mubr.bf16.vlgmr.msra.gmra.mrb[4].mxu1 %v3771_v18  ;;  %v3625_v36 = vrot.slane %v3624_v17, 1 }
 0x470   : > { %v3511_v15 = vadd.f32 %v3510_v53, %v3375_v31  ;;  %5287 = vmatpush3.bf16.msra.mxu1 %v6005_v20  ;;  %5302 = vmatprep.mubr.msk.bf16.mxu1 %vm6146_vm3, %v6145_v30 }
 0x471   : > { %5250 = vmatpush3.bf16.msra.mxu0 %v6004_v8  ;;  %v3626_v29 = vadd.f32 %v3625_v36, %v3624_v17  ;;  %5288 = vmatprep.subr.bf16.mxu1 %v6145_v30 }
 0x472   : > { %v3545_v14 = vadd.f32 %v3535_v13, %v3511_v15  ;;  %v4634_v13 = vld [vmem:[%s8931_s12] sm:$0x1] }
 0x473   : > { %v3636_v2 = vmul.f32 0.0044444446, %v3626_v29 }
 0x474   : > { %3555 = vst [vmem:[#allocation2 + $0x40] sm:$0xff] %v3545_v14  ;;  %v3615_v26 = vrot.slane %v3545_v14, 4  ;;  %5289 = vmatpush3.bf16.msra.mxu1 %v6006_v42 }
 0x475   : > { %v3700_v25 = vmul.f32 %v3680_v23, %v3636_v2  ;;  %5290 = vmatprep.subr.bf16.mxu1 %v6145_v30 }
 0x476   : > { %v3616_v62 = vadd.f32 %v3615_v26, %v3545_v14 }
 0x477   : > { %v3764_v57 = vadd.f32 %v3744_v44, %v3700_v25 }
 0x478   : > { %v3617_v50 = vrot.slane %v3616_v62, 2  ;;  %5291 = vmatpush3.bf16.msra.mxu1 %v6007_v39 }
 0x479   : > { %v3774_v12 = vpack.c.bf16 %v3764_v57, %v3764_v57  ;;  %5292 = vmatprep.subr.bf16.mxu1 %v6145_v30 }
 0x47a   : > { %v3618_v3 = vadd.f32 %v3617_v50, %v3616_v62 }
 0x47b   : > { %4608 = vmatprep.mubr.bf16.mxu0 %v3774_v12 }
 0x47c   : > { %v3619_v51 = vrot.slane %v3618_v3, 1  ;;  %5293 = vmatpush3.bf16.msra.mxu1 %v6008_v49 }
 0x47d   : > { %5294 = vmatprep.subr.bf16.mxu1 %v6145_v30 }
 0x47e   : > { %v3620_v52 = vadd.f32 %v3619_v51, %v3618_v3 }
 0x480   : > { %v3635_v10 = vmul.f32 0.0044444446, %v3620_v52  ;;  %5295 = vmatpush3.bf16.msra.mxu1 %v6009_v38 }
 0x481   : > { %5296 = vmatprep.subr.bf16.mxu1 %v6145_v30 }
 0x482   : > { %v3699_v54 = vmul.f32 %v3676_v56, %v3635_v10 }
 0x484   : > { %v3763_v34 = vadd.f32 %v3740_v55, %v3699_v54  ;;  %5297 = vmatpush3.bf16.msra.mxu1 %v6010_v32 }
 0x485   : > { %5298 = vmatprep.subr.bf16.mxu1 %v6145_v30 }
 0x486   : > { %v3773_v19 = vpack.c.bf16 %v3763_v34, %v3763_v34 }
 0x488   : > { %4609 = vmatmul.mubr.bf16.vlgmr.msra.gmra.mrb[8].mxu0 %v3773_v19  ;;  %5299 = vmatpush3.bf16.msra.mxu1 %v6011_v4 }
 0x489   : > { %5300 = vmatprep.subr.bf16.mxu1 %v6145_v30 }
 0x48c   : > { %5301 = vmatpush3.bf16.msra.mxu1 %v6012_v6 }
 0x4fd   : > { %v5163_v11 = vpop.f32.mrb[0].mxu0 }
 0x4fe   : > { %v5164_v46 = vpop.f32.mrb[1].mxu0 }
 0x4ff   : > { %v5165_v48 = vadd.f32 %v5164_v46, %v5163_v11  ;;  %v5166_v60 = vpop.f32.mrb[2].mxu0 }
 0x500   : > { %v5167_v5 = vpop.f32.mrb[3].mxu0 }
 0x501   : > { %v4451_v63 = vadd.f32 %v5165_v48, %v3935_v33 }
 0x50c   : > { %v5185_v7 = vpop.f32.mrb[0].mxu1 }
 0x50d   : > { %v5186_v22 = vpop.f32.mrb[1].mxu1 }
 0x50e   : > { %v5187_v59 = vadd.f32 %v5186_v22, %v5185_v7  ;;  %v5188_v58 = vpop.f32.mrb[2].mxu1 }
 0x50f   : > { %v5189_v37 = vpop.f32.mrb[3].mxu1 }
 0x510   : > { %v4491_v1 = vadd.f32 %v5187_v59, %v4451_v63 }
 0x527   : > { %v5207_v27 = vpop.f32.mrb[4].mxu0 }
 0x528   : > { %v5208_v45 = vpop.f32.mrb[5].mxu0 }
 0x529   : > { %v5209_v9 = vadd.f32 %v5208_v45, %v5207_v27  ;;  %v5210_v43 = vpop.f32.mrb[6].mxu0 }
 0x52a   : > { %v5211_v21 = vpop.f32.mrb[7].mxu0 }
 0x52b   : > { %v4531_v24 = vadd.f32 %v5209_v9, %v4491_v1 }
 0x542   : > { %v5229_v28 = vpop.f32.mrb[4].mxu1 }
 0x543   : > { %v5230_v47 = vpop.f32.mrb[5].mxu1 }
 0x544   : > { %v5231_v0 = vadd.f32 %v5230_v47, %v5229_v28  ;;  %v5232_v40 = vpop.f32.mrb[6].mxu1 }
 0x545   : > { %v5233_v35 = vpop.f32.mrb[7].mxu1 }
 0x546   : > { %v4571_v8 = vadd.f32 %v5231_v0, %v4531_v24 }
 0x55b   : > { %v5251_v18 = vpop.f32.mrb[8].mxu0 }
 0x55c   : > { %v5252_v17 = vpop.f32.mrb[9].mxu0 }
 0x55d   : > { %v5253_v31 = vadd.f32 %v5252_v17, %v5251_v18  ;;  %v5254_v16 = vpop.f32.mrb[10].mxu0 }
 0x55e   : > { %v5255_v61 = vpop.f32.mrb[11].mxu0 }
 0x55f   : > { %v4611_v36 = vadd.f32 %v5253_v31, %v4571_v8 }
 0x561   : > { %v4616_v53 = vmax.f32 %v4611_v36, 0.0 }
 0x563   : > { %v4617_v41 = vpack.c.bf16 %v4616_v53, %v4616_v53 }
 0x565   : > { %5303 = vmatmul.mubr.bf16.vlgmr.msra.gmra.mrb[8].mxu1 %v4617_v41 }
 0x638   : > { %v4717_v29 = vpop.f32.mrb[8].mxu1 }
 0x639   : > { %v4718_v23 = vadd.f32 %v4717_v29, %v4634_v13  ;;  %v5304_v15 = vpop.f32.mrb[9].mxu1 }
 0x63a   : > { %v4720_v2 = vpop.f32.mrb[10].mxu1 }
 0x63b   : > { %4724 = vst.msk [vmem:[%s6333_s11] sm:$0x1] %vm4723_vm8, %v4718_v23  ;;  %v5305_v44 = vpop.f32.mrb[11].mxu1 }
 0x63c PF: > { %s5134_s19 = sshll.u32 %s6127_s13, 4  ;;  %s8932_s1 = sld [smem:[#allocation94_spill]] }
 0x63d   : > { %s4738_s21 = sshll.u32 %s6333_s11, 4  ;;  %s4726_s15 = scalar_lea.sflag [#allocation7], %s494_s26  ;;  %s4739_s21 = int_to_ptr.vmem [resolvable:$true] %s4738_s21 }
 0x63e   : > { %s6027_s20 = scalar_lea.vmem %s4739_s21, 16  ;;  %s6147_s24 = smov [#allocation6]  }
 0x63f   : > { %p6028_p0 = scmp.ne.s32.totalorder %s4739_s21, %s6027_s20  ;;  %s6031_s23 = sshll.u32 %s6147_s24, 4  ;;  %s6032_s23 = int_to_ptr.vmem [resolvable:$false] %s6031_s23 }
 0x640   : > { %s6033_s18 = scalar_lea.vmem %s6032_s23, 32  ;;  %p6034_p4 = scmp.lt.s32.totalorder %s4739_s21, %s6032_s23 }
 0x641   : > { %p6029_p1 = pnand %p6028_p0, %p6288_p12  ;;  %p6035_p5 = scmp.lt.s32.totalorder %s6033_s18, %s6027_s20 }
 0x642   : > { %s8534_s14 = scalar_lea.hbm %s8932_s1, %s5134_s19 }
 0x643   : > { %p6030_p2 = pneg %p6029_p1  ;;  %p6036_p6 = por %p6035_p5, %p6034_p4 }
 0x645   : > { %p6037_p7 = pnand %p6036_p6, %p6030_p2 }
 0x647   : > { %6040 = shalt.err (!%p6037_p7)
}
 0x648   : > { %s6041_s13 = scalar_lea.hbm %s8534_s14, 16  ;;  %s6045_s30 = scalar_lea.hbm %s8932_s1, 32 }
 0x649   : > { %p6042_p8 = scmp.ne.s32.totalorder %s8534_s14, %s6041_s13  ;;  %p6046_p11 = scmp.lt.u32.totalorder %s8534_s14, %s8932_s1 }
 0x64a   : > { %p6047_p13 = scmp.lt.u32.totalorder %s6045_s30, %s6041_s13  ;;  %p6049_p1 = scmp.lt.u32.totalorder %s6041_s13, %s8534_s14 }
 0x64b   : > { %p6043_p9 = pnand %p6042_p8, %p6288_p12 }
 0x64c   : > { %p6048_p0 = por %p6047_p13, %p6046_p11 }
 0x64d   : > { %p6044_p10 = pneg %p6043_p9 }
 0x64e   : > { %p6050_p2 = por %p6049_p1, %p6048_p0 }
 0x650   : > { %p6051_p4 = pnand %p6050_p2, %p6044_p10 }
 0x652   : > { %6054 = shalt.err (!%p6051_p4)
}
 0x653   : > { %5324 = dma.vmem_to_hbm [thread:$0]  (%p6288_p12), %s4739_s21, 16, %s8534_s14, %s4726_s15  }
 0x654 PF: > { %s8933_s22 = sld [smem:[#allocation10_spill]]  ;;  %p5330_p5 = scmp.ge.s32.totalorder %s6139_s16, 2 }
 0x656   : > { %p5327_p6 = pnand %p5330_p5, %p6296_p3 }
 0x65a   : > { %s4750_s20 = sand.u32 1, %s8933_s22  }
 0x65b   : > { %s4751_s24 = scalar_lea.sflag [#allocation7], %s4750_s20 }
 0x65c   : > { %6098 = dma.done.wait (!%p5327_p6), %s4751_s24, 16  }
 0x65d   : > { %6100 = vsyncadd (!%p5327_p6), %s4751_s24, 4294967280  ;;  %s31_s16 = sadd.s32 1, %s6139_s16   ;;  %s8935_s30 = sld [smem:[#allocation11_spill]] }
 0x65e   : > { %p28_p7 = scmp.ge.s32.totalorder %s31_s16, 6   ;;  %s8936_s13 = sld [smem:[#allocation12_spill]] }
 0x65f   : > { %s8937_s14 = sld [smem:[#allocation13_spill]]  ;;  %s8938_s15 = sld [smem:[#allocation14_spill]] }
 0x660   : > { %s8939_s26 = smov %s6107_s27  ;;  %s8940_s27 = smov %s6111_s0 }
 0x661   : > { %s8941_s0 = smov %s6301_s9  ;;  %s8942_s28 = smov %s6119_s29 }
 0x662   : > { %s8943_s29 = smov %s6304_s17  ;;  %30 = sbr.rel (!%p28_p7) target bundleno = 23 (0x17), region = 163 }
 0x669   :  { %4755 = vsyncpa [#allocation7], 1 }
 0x66a   :  { %4757 = vsyncpa [#allocation7 + $0x1], 1 }

</bundles_post_ra>
